<compile_context>
chip_gen: v6e
topology: v6e:2x2x1
jax: 0.10.0
libtpu: 0.0.40
codegen_flags: <defaults>
</compile_context>

<pallas_src>
import jax
import jax.numpy as jnp
from jax.experimental import pallas as pl
from jax.experimental.pallas import tpu as pltpu

M_ESTIMATORS = 4
ALPHA = 2
GAMMA = 1


# ----------------------------------------------------------------------------
# Trace-time weight transform: valid 2-D conv (k=5) -> per-dh Toeplitz matrices.
# For an input-row layout X2[h, w*Cin + c], the product
#     sum_dh  X2[oh + dh, :] @ WT[dh]
# equals conv output row `oh`, with output columns ordered
#     col = (ow % 2) * (Wout//2)*Cout + (ow // 2)*Cout + n
# so that 2x2 W-pooling inside the kernel is a static half/half lane max.
# ----------------------------------------------------------------------------
def _toeplitz_conv_weights(k, win):
    kh, kw, cin, cout = k.shape
    wout = win - kw + 1
    wp = wout // 2
    iw = jnp.arange(win)
    ow = jnp.arange(wout)
    dw = jnp.arange(kw)
    sel = (iw[None, None, :] == (ow[None, :, None] + dw[:, None, None])).astype(k.dtype)
    # r[dh, iw, c, ow, n] = K[dh, iw - ow, c, n] inside the 5-tap band, else 0
    r = jnp.einsum('doi,hdcn->hicon', sel, k)          # (kh, win, cin, wout, cout)
    r = r.reshape(kh, win, cin, wp, 2, cout)           # ow -> (ow//2, ow%2)
    r = r.transpose(0, 1, 2, 4, 3, 5)                  # (kh, win, cin, 2, wp, cout)
    return r.reshape(kh, win * cin, 2 * wp * cout)


# ----------------------------------------------------------------------------
# The fused kernel: one image per grid step, whole forward pass in VMEM.
# ----------------------------------------------------------------------------
def _packed_net_kernel(x_ref, wt1_ref, b1_ref, wt2_ref, b2_ref,
                       a1_ref, fb1_ref, a2_ref, fb2_ref, a3_ref, fb3_ref,
                       o_ref):
    f32 = jnp.float32
    bf16 = jnp.bfloat16

    xb = x_ref[...]                                  # (1, 4, 8, 96) bf16
    xc = [xb[0, p] for p in range(4)]                # input rows 4j+p, each (8, 96)

    # ---- conv1 (dense 3->12, k=5) + bias + ReLU + 2x2 pool -------------------
    # Conv output rows (28) are produced in 4 residue streams (oh mod 4) so the
    # H-pool is a plain elementwise max between streams.
    pooled = []
    for r in range(4):
        s = jnp.zeros((7, 336), f32)
        for dh in range(5):
            q = r + dh
            lhs = xc[q % 4][q // 4:q // 4 + 7, :]                 # (7, 96)
            s = s + jnp.dot(lhs, wt1_ref[dh], preferred_element_type=f32)
        s = jnp.maximum(s + b1_ref[...], 0.0)
        pooled.append(jnp.maximum(s[:, :168], s[:, 168:]))        # W-pool (parity halves)
    xe = jnp.maximum(pooled[0], pooled[1]).astype(bf16)           # pooled rows 0,2,...,12
    xo = jnp.maximum(pooled[2], pooled[3]).astype(bf16)           # pooled rows 1,3,...,13

    # ---- conv2 (4 groups of 3->8 via block-diag taps) + bias + ReLU + pool ---
    halves = []
    for par in range(2):                              # conv2 output rows 2i + par
        s = jnp.zeros((5, 320), f32)
        for dh in range(5):
            q = par + dh
            src = xe if q % 2 == 0 else xo
            lhs = src[q // 2:q // 2 + 5, :]                       # (5, 168)
            s = s + jnp.dot(lhs, wt2_ref[dh], preferred_element_type=f32)
        s = jnp.maximum(s + b2_ref[...], 0.0)
        halves.append(jnp.maximum(s[:, :160], s[:, 160:]))        # W-pool
    c2 = jnp.maximum(halves[0], halves[1]).astype(bf16)           # (5, 160) = (h, w*32+ch)

    # ---- fused FC head: 4 estimators via block matrices, lane-dense ----------
    h1 = jnp.zeros((1, 240), f32)
    for h in range(5):
        h1 = h1 + jnp.dot(c2[h:h + 1, :], a1_ref[h], preferred_element_type=f32)
    h1 = jnp.maximum(h1 + fb1_ref[...], 0.0).astype(bf16)
    h2 = jnp.dot(h1, a2_ref[...], preferred_element_type=f32)
    h2 = jnp.maximum(h2 + fb2_ref[...], 0.0).astype(bf16)
    h3 = jnp.dot(h2, a3_ref[...], preferred_element_type=f32) + fb3_ref[...]
    o_ref[0] = h3                                     # (1, 160): logits, cols m*40 + j


# ----------------------------------------------------------------------------
# Full PackedNet forward.
# ----------------------------------------------------------------------------
def packed_net_forward(x_nchw, params):
    M = M_ESTIMATORS
    B = x_nchw.shape[0]
    f32, bf16 = jnp.float32, jnp.bfloat16

    # ---- trace-time parameter transforms (tiny, fused by XLA) ----------------
    wt1 = _toeplitz_conv_weights(params["w_conv1"][0], 32).astype(bf16)        # (5, 96, 336)
    b1row = jnp.tile(params["b_conv1"].reshape(12), 28)[None, :].astype(f32)   # (1, 336)

    k2 = jnp.zeros((5, 5, 12, 32), f32)                 # grouped conv2 -> block-diag taps
    for g in range(M):
        k2 = k2.at[:, :, 3 * g:3 * g + 3, 8 * g:8 * g + 8].set(params["w_conv2"][g])
    wt2 = _toeplitz_conv_weights(k2, 14).astype(bf16)                           # (5, 168, 320)
    b2row = jnp.tile(params["b_conv2"].reshape(32), 10)[None, :].astype(f32)    # (1, 320)

    # fc1 rows are in torch (c,h,w) flatten order -> regroup to the kernel's (h,w,c)
    w1 = params["w_fc1"].reshape(M, 8, 5, 5, 60).transpose(0, 2, 3, 1, 4)       # (g,h,w,c,j)
    a1 = jnp.zeros((5, 5, 32, 240), f32)
    for g in range(M):
        a1 = a1.at[:, :, 8 * g:8 * g + 8, 60 * g:60 * g + 60].set(w1[g])
    a1 = a1.reshape(5, 160, 240).astype(bf16)
    fb1 = params["b_fc1"].reshape(1, 240).astype(f32)

    a2 = jnp.zeros((240, 168), f32)                      # block-diagonal fc2 / fc3
    a3 = jnp.zeros((168, 160), f32)
    for g in range(M):
        a2 = a2.at[60 * g:60 * (g + 1), 42 * g:42 * (g + 1)].set(params["w_fc2"][g])
        a3 = a3.at[42 * g:42 * (g + 1), 40 * g:40 * (g + 1)].set(params["w_fc3"][g])
    a2, a3 = a2.astype(bf16), a3.astype(bf16)
    fb2 = params["b_fc2"].reshape(1, 168).astype(f32)
    fb3 = params["b_fc3"].reshape(1, 160).astype(f32)

    # ---- input: NCHW -> per-image (H, W*C) rows, grouped by row residue mod 4 -
    x = jnp.transpose(x_nchw, (0, 2, 3, 1)).reshape(B, 32, 96)   # (B, H, W*Cin)
    x = x.reshape(B, 8, 4, 96).transpose(0, 2, 1, 3)             # (B, 4, 8, 96): [b,p,j]=row 4j+p
    x = x.astype(bf16)

    out = pl.pallas_call(
        _packed_net_kernel,
        out_shape=jax.ShapeDtypeStruct((B, 1, 160), f32),
        grid=(B,),
        in_specs=[
            pl.BlockSpec((1, 4, 8, 96), lambda e: (e, 0, 0, 0)),
            pl.BlockSpec((5, 96, 336), lambda e: (0, 0, 0)),
            pl.BlockSpec((1, 336), lambda e: (0, 0)),
            pl.BlockSpec((5, 168, 320), lambda e: (0, 0, 0)),
            pl.BlockSpec((1, 320), lambda e: (0, 0)),
            pl.BlockSpec((5, 160, 240), lambda e: (0, 0, 0)),
            pl.BlockSpec((1, 240), lambda e: (0, 0)),
            pl.BlockSpec((240, 168), lambda e: (0, 0)),
            pl.BlockSpec((1, 168), lambda e: (0, 0)),
            pl.BlockSpec((168, 160), lambda e: (0, 0)),
            pl.BlockSpec((1, 160), lambda e: (0, 0)),
        ],
        out_specs=pl.BlockSpec((1, 1, 160), lambda e: (e, 0, 0)),
        compiler_params=pltpu.CompilerParams(dimension_semantics=("parallel",)),
    )(x, wt1, b1row, wt2, b2row, a1, fb1, a2, fb2, a3, fb3)

    # (B, 1, 160) -> '(m e) c': row index m*B + e, 10*M logits per sample.
    y = out.reshape(B, M, 40)
    return jnp.transpose(y, (1, 0, 2)).reshape(M * B, 10 * M)


# ----------------------------------------------------------------------------
# Deterministic synthetic parameter init (shapes implied by PackedNet.__init__)
# ----------------------------------------------------------------------------
def init_params(key):
    ks = jax.random.split(key, 10)

    def init(k, shape, fan_in):
        return jax.random.normal(k, shape, jnp.float32) / jnp.sqrt(float(fan_in))

    return {
        # conv1: first=True -> groups=1, 3 -> 6*alpha = 12 channels, k=5
        "w_conv1": init(ks[0], (1, 5, 5, 3, 12), 5 * 5 * 3),
        "b_conv1": init(ks[1], (1, 1, 12), 5 * 5 * 3),
        # conv2: groups=M=4, 12 -> 32 channels (3 -> 8 per group), k=5
        "w_conv2": init(ks[2], (4, 5, 5, 3, 8), 5 * 5 * 3),
        "b_conv2": init(ks[3], (4, 1, 8), 5 * 5 * 3),
        # fc1: extended 800 -> 240, groups=4  => per group 200 -> 60 (rows in (c,h,w) order)
        "w_fc1": init(ks[4], (4, 200, 60), 200),
        "b_fc1": init(ks[5], (4, 1, 60), 200),
        # fc2: extended 240 -> 168, groups=4  => per group 60 -> 42
        "w_fc2": init(ks[6], (4, 60, 42), 60),
        "b_fc2": init(ks[7], (4, 1, 42), 60),
        # fc3 (last): extended 168 -> 160, groups=4 => per group 42 -> 40
        "w_fc3": init(ks[8], (4, 42, 40), 42),
        "b_fc3": init(ks[9], (4, 1, 40), 42),
    }


if __name__ == "__main__":
    key = jax.random.PRNGKey(0)
    kx, kp = jax.random.split(key)

    # CIFAR-like input (spatial 32 so that two conv5 + pool2 stages give 5x5).
    batch = 2
    x = jax.random.normal(kx, (batch, 3, 32, 32), jnp.float32)   # NCHW, like PyTorch
    params = init_params(kp)

    fwd = jax.jit(packed_net_forward)
    out = fwd(x, params)
    out = jax.block_until_ready(out)

    assert out.shape == (M_ESTIMATORS * batch, 10 * M_ESTIMATORS), out.shape
    assert bool(jnp.all(jnp.isfinite(out)))
    print("KERNEL_OK")
</pallas_src>

<mosaic_0001>
module attributes {stable_mosaic.version = 11 : i64} {
  func.func @_packed_net_kernel(%arg0: i32, %arg1: memref<1x4x8x96xbf16, #tpu.memory_space<vmem>>, %arg2: memref<5x96x336xbf16, #tpu.memory_space<vmem>>, %arg3: memref<1x336xf32, #tpu.memory_space<vmem>>, %arg4: memref<5x168x320xbf16, #tpu.memory_space<vmem>>, %arg5: memref<1x320xf32, #tpu.memory_space<vmem>>, %arg6: memref<5x160x240xbf16, #tpu.memory_space<vmem>>, %arg7: memref<1x240xf32, #tpu.memory_space<vmem>>, %arg8: memref<240x168xbf16, #tpu.memory_space<vmem>>, %arg9: memref<1x168xf32, #tpu.memory_space<vmem>>, %arg10: memref<168x160xbf16, #tpu.memory_space<vmem>>, %arg11: memref<1x160xf32, #tpu.memory_space<vmem>>, %arg12: memref<1x1x160xf32, #tpu.memory_space<vmem>>) attributes {dimension_semantics = [#tpu.dimension_semantics<parallel>], iteration_bounds = array<i64: 2>, scalar_prefetch = 0 : i64, scratch_operands = 0 : i64, tpu.core_type = #tpu.core_type<tc>, window_params = [{transform_indices = @transform_0, window_bounds = array<i64: 1, 4, 8, 96>}, {pipeline_mode = #tpu.pipeline_mode<synchronous>, transform_indices = @transform_1, window_bounds = array<i64: 5, 96, 336>}, {pipeline_mode = #tpu.pipeline_mode<synchronous>, transform_indices = @transform_2, window_bounds = array<i64: 1, 336>}, {pipeline_mode = #tpu.pipeline_mode<synchronous>, transform_indices = @transform_3, window_bounds = array<i64: 5, 168, 320>}, {pipeline_mode = #tpu.pipeline_mode<synchronous>, transform_indices = @transform_4, window_bounds = array<i64: 1, 320>}, {pipeline_mode = #tpu.pipeline_mode<synchronous>, transform_indices = @transform_5, window_bounds = array<i64: 5, 160, 240>}, {pipeline_mode = #tpu.pipeline_mode<synchronous>, transform_indices = @transform_6, window_bounds = array<i64: 1, 240>}, {pipeline_mode = #tpu.pipeline_mode<synchronous>, transform_indices = @transform_7, window_bounds = array<i64: 240, 168>}, {pipeline_mode = #tpu.pipeline_mode<synchronous>, transform_indices = @transform_8, window_bounds = array<i64: 1, 168>}, {pipeline_mode = #tpu.pipeline_mode<synchronous>, transform_indices = @transform_9, window_bounds = array<i64: 168, 160>}, {pipeline_mode = #tpu.pipeline_mode<synchronous>, transform_indices = @transform_10, window_bounds = array<i64: 1, 160>}, {transform_indices = @transform_11, window_bounds = array<i64: 1, 1, 160>}]} {
    %c0 = arith.constant 0 : index
    %c0_0 = arith.constant 0 : index
    %c0_1 = arith.constant 0 : index
    %c0_2 = arith.constant 0 : index
    %0 = vector.load %arg1[%c0, %c0_0, %c0_1, %c0_2] : memref<1x4x8x96xbf16, #tpu.memory_space<vmem>>, vector<1x4x8x96xbf16>
    %1 = vector.extract_strided_slice %0 {offsets = [0, 0, 0, 0], sizes = [1, 1, 8, 96], strides = [1, 1, 1, 1]} : vector<1x4x8x96xbf16> to vector<1x1x8x96xbf16>
    %2 = vector.shape_cast %1 : vector<1x1x8x96xbf16> to vector<8x96xbf16>
    %3 = vector.extract_strided_slice %0 {offsets = [0, 1, 0, 0], sizes = [1, 1, 8, 96], strides = [1, 1, 1, 1]} : vector<1x4x8x96xbf16> to vector<1x1x8x96xbf16>
    %4 = vector.shape_cast %3 : vector<1x1x8x96xbf16> to vector<8x96xbf16>
    %5 = vector.extract_strided_slice %0 {offsets = [0, 2, 0, 0], sizes = [1, 1, 8, 96], strides = [1, 1, 1, 1]} : vector<1x4x8x96xbf16> to vector<1x1x8x96xbf16>
    %6 = vector.shape_cast %5 : vector<1x1x8x96xbf16> to vector<8x96xbf16>
    %7 = vector.extract_strided_slice %0 {offsets = [0, 3, 0, 0], sizes = [1, 1, 8, 96], strides = [1, 1, 1, 1]} : vector<1x4x8x96xbf16> to vector<1x1x8x96xbf16>
    %8 = vector.shape_cast %7 : vector<1x1x8x96xbf16> to vector<8x96xbf16>
    %cst = arith.constant 0.000000e+00 : f32
    %9 = vector.broadcast %cst : f32 to vector<7x336xf32>
    %10 = vector.extract_strided_slice %2 {offsets = [0, 0], sizes = [7, 96], strides = [1, 1]} : vector<8x96xbf16> to vector<7x96xbf16>
    %c0_3 = arith.constant 0 : index
    %c0_4 = arith.constant 0 : index
    %c0_5 = arith.constant 0 : index
    %11 = vector.load %arg2[%c0_3, %c0_4, %c0_5] : memref<5x96x336xbf16, #tpu.memory_space<vmem>>, vector<1x96x336xbf16>
    %12 = vector.shape_cast %11 : vector<1x96x336xbf16> to vector<96x336xbf16>
    %cst_6 = arith.constant dense<0.000000e+00> : vector<7x336xf32>
    %13 = tpu.matmul %10, %12, %cst_6 {dimension_numbers = #tpu.dot_dimension_numbers<[1], [0], [0], [1], [0, 0, 1, 1], [], []>} : vector<7x96xbf16>, vector<96x336xbf16>, vector<7x336xf32> -> vector<7x336xf32>
    %14 = arith.addf %9, %13 : vector<7x336xf32>
    %15 = vector.extract_strided_slice %4 {offsets = [0, 0], sizes = [7, 96], strides = [1, 1]} : vector<8x96xbf16> to vector<7x96xbf16>
    %c1 = arith.constant 1 : index
    %c0_7 = arith.constant 0 : index
    %c0_8 = arith.constant 0 : index
    %16 = vector.load %arg2[%c1, %c0_7, %c0_8] : memref<5x96x336xbf16, #tpu.memory_space<vmem>>, vector<1x96x336xbf16>
    %17 = vector.shape_cast %16 : vector<1x96x336xbf16> to vector<96x336xbf16>
    %cst_9 = arith.constant dense<0.000000e+00> : vector<7x336xf32>
    %18 = tpu.matmul %15, %17, %cst_9 {dimension_numbers = #tpu.dot_dimension_numbers<[1], [0], [0], [1], [0, 0, 1, 1], [], []>} : vector<7x96xbf16>, vector<96x336xbf16>, vector<7x336xf32> -> vector<7x336xf32>
    %19 = arith.addf %14, %18 : vector<7x336xf32>
    %20 = vector.extract_strided_slice %6 {offsets = [0, 0], sizes = [7, 96], strides = [1, 1]} : vector<8x96xbf16> to vector<7x96xbf16>
    %c2 = arith.constant 2 : index
    %c0_10 = arith.constant 0 : index
    %c0_11 = arith.constant 0 : index
    %21 = vector.load %arg2[%c2, %c0_10, %c0_11] : memref<5x96x336xbf16, #tpu.memory_space<vmem>>, vector<1x96x336xbf16>
    %22 = vector.shape_cast %21 : vector<1x96x336xbf16> to vector<96x336xbf16>
    %cst_12 = arith.constant dense<0.000000e+00> : vector<7x336xf32>
    %23 = tpu.matmul %20, %22, %cst_12 {dimension_numbers = #tpu.dot_dimension_numbers<[1], [0], [0], [1], [0, 0, 1, 1], [], []>} : vector<7x96xbf16>, vector<96x336xbf16>, vector<7x336xf32> -> vector<7x336xf32>
    %24 = arith.addf %19, %23 : vector<7x336xf32>
    %25 = vector.extract_strided_slice %8 {offsets = [0, 0], sizes = [7, 96], strides = [1, 1]} : vector<8x96xbf16> to vector<7x96xbf16>
    %c3 = arith.constant 3 : index
    %c0_13 = arith.constant 0 : index
    %c0_14 = arith.constant 0 : index
    %26 = vector.load %arg2[%c3, %c0_13, %c0_14] : memref<5x96x336xbf16, #tpu.memory_space<vmem>>, vector<1x96x336xbf16>
    %27 = vector.shape_cast %26 : vector<1x96x336xbf16> to vector<96x336xbf16>
    %cst_15 = arith.constant dense<0.000000e+00> : vector<7x336xf32>
    %28 = tpu.matmul %25, %27, %cst_15 {dimension_numbers = #tpu.dot_dimension_numbers<[1], [0], [0], [1], [0, 0, 1, 1], [], []>} : vector<7x96xbf16>, vector<96x336xbf16>, vector<7x336xf32> -> vector<7x336xf32>
    %29 = arith.addf %24, %28 : vector<7x336xf32>
    %30 = vector.extract_strided_slice %2 {offsets = [1, 0], sizes = [7, 96], strides = [1, 1]} : vector<8x96xbf16> to vector<7x96xbf16>
    %c4 = arith.constant 4 : index
    %c0_16 = arith.constant 0 : index
    %c0_17 = arith.constant 0 : index
    %31 = vector.load %arg2[%c4, %c0_16, %c0_17] : memref<5x96x336xbf16, #tpu.memory_space<vmem>>, vector<1x96x336xbf16>
    %32 = vector.shape_cast %31 : vector<1x96x336xbf16> to vector<96x336xbf16>
    %cst_18 = arith.constant dense<0.000000e+00> : vector<7x336xf32>
    %33 = tpu.matmul %30, %32, %cst_18 {dimension_numbers = #tpu.dot_dimension_numbers<[1], [0], [0], [1], [0, 0, 1, 1], [], []>} : vector<7x96xbf16>, vector<96x336xbf16>, vector<7x336xf32> -> vector<7x336xf32>
    %34 = arith.addf %29, %33 : vector<7x336xf32>
    %c0_19 = arith.constant 0 : index
    %c0_20 = arith.constant 0 : index
    %35 = vector.load %arg3[%c0_19, %c0_20] : memref<1x336xf32, #tpu.memory_space<vmem>>, vector<1x336xf32>
    %36 = vector.broadcast %35 : vector<1x336xf32> to vector<7x336xf32>
    %37 = arith.addf %34, %36 : vector<7x336xf32>
    %cst_21 = arith.constant 0.000000e+00 : f32
    %38 = vector.broadcast %cst_21 : f32 to vector<7x336xf32>
    %39 = arith.maximumf %37, %38 : vector<7x336xf32>
    %40 = vector.extract_strided_slice %39 {offsets = [0, 0], sizes = [7, 168], strides = [1, 1]} : vector<7x336xf32> to vector<7x168xf32>
    %41 = vector.extract_strided_slice %39 {offsets = [0, 168], sizes = [7, 168], strides = [1, 1]} : vector<7x336xf32> to vector<7x168xf32>
    %42 = arith.maximumf %40, %41 : vector<7x168xf32>
    %cst_22 = arith.constant 0.000000e+00 : f32
    %43 = vector.broadcast %cst_22 : f32 to vector<7x336xf32>
    %44 = vector.extract_strided_slice %4 {offsets = [0, 0], sizes = [7, 96], strides = [1, 1]} : vector<8x96xbf16> to vector<7x96xbf16>
    %c0_23 = arith.constant 0 : index
    %c0_24 = arith.constant 0 : index
    %c0_25 = arith.constant 0 : index
    %45 = vector.load %arg2[%c0_23, %c0_24, %c0_25] : memref<5x96x336xbf16, #tpu.memory_space<vmem>>, vector<1x96x336xbf16>
    %46 = vector.shape_cast %45 : vector<1x96x336xbf16> to vector<96x336xbf16>
    %cst_26 = arith.constant dense<0.000000e+00> : vector<7x336xf32>
    %47 = tpu.matmul %44, %46, %cst_26 {dimension_numbers = #tpu.dot_dimension_numbers<[1], [0], [0], [1], [0, 0, 1, 1], [], []>} : vector<7x96xbf16>, vector<96x336xbf16>, vector<7x336xf32> -> vector<7x336xf32>
    %48 = arith.addf %43, %47 : vector<7x336xf32>
    %49 = vector.extract_strided_slice %6 {offsets = [0, 0], sizes = [7, 96], strides = [1, 1]} : vector<8x96xbf16> to vector<7x96xbf16>
    %c1_27 = arith.constant 1 : index
    %c0_28 = arith.constant 0 : index
    %c0_29 = arith.constant 0 : index
    %50 = vector.load %arg2[%c1_27, %c0_28, %c0_29] : memref<5x96x336xbf16, #tpu.memory_space<vmem>>, vector<1x96x336xbf16>
    %51 = vector.shape_cast %50 : vector<1x96x336xbf16> to vector<96x336xbf16>
    %cst_30 = arith.constant dense<0.000000e+00> : vector<7x336xf32>
    %52 = tpu.matmul %49, %51, %cst_30 {dimension_numbers = #tpu.dot_dimension_numbers<[1], [0], [0], [1], [0, 0, 1, 1], [], []>} : vector<7x96xbf16>, vector<96x336xbf16>, vector<7x336xf32> -> vector<7x336xf32>
    %53 = arith.addf %48, %52 : vector<7x336xf32>
    %54 = vector.extract_strided_slice %8 {offsets = [0, 0], sizes = [7, 96], strides = [1, 1]} : vector<8x96xbf16> to vector<7x96xbf16>
    %c2_31 = arith.constant 2 : index
    %c0_32 = arith.constant 0 : index
    %c0_33 = arith.constant 0 : index
    %55 = vector.load %arg2[%c2_31, %c0_32, %c0_33] : memref<5x96x336xbf16, #tpu.memory_space<vmem>>, vector<1x96x336xbf16>
    %56 = vector.shape_cast %55 : vector<1x96x336xbf16> to vector<96x336xbf16>
    %cst_34 = arith.constant dense<0.000000e+00> : vector<7x336xf32>
    %57 = tpu.matmul %54, %56, %cst_34 {dimension_numbers = #tpu.dot_dimension_numbers<[1], [0], [0], [1], [0, 0, 1, 1], [], []>} : vector<7x96xbf16>, vector<96x336xbf16>, vector<7x336xf32> -> vector<7x336xf32>
    %58 = arith.addf %53, %57 : vector<7x336xf32>
    %59 = vector.extract_strided_slice %2 {offsets = [1, 0], sizes = [7, 96], strides = [1, 1]} : vector<8x96xbf16> to vector<7x96xbf16>
    %c3_35 = arith.constant 3 : index
    %c0_36 = arith.constant 0 : index
    %c0_37 = arith.constant 0 : index
    %60 = vector.load %arg2[%c3_35, %c0_36, %c0_37] : memref<5x96x336xbf16, #tpu.memory_space<vmem>>, vector<1x96x336xbf16>
    %61 = vector.shape_cast %60 : vector<1x96x336xbf16> to vector<96x336xbf16>
    %cst_38 = arith.constant dense<0.000000e+00> : vector<7x336xf32>
    %62 = tpu.matmul %59, %61, %cst_38 {dimension_numbers = #tpu.dot_dimension_numbers<[1], [0], [0], [1], [0, 0, 1, 1], [], []>} : vector<7x96xbf16>, vector<96x336xbf16>, vector<7x336xf32> -> vector<7x336xf32>
    %63 = arith.addf %58, %62 : vector<7x336xf32>
    %64 = vector.extract_strided_slice %4 {offsets = [1, 0], sizes = [7, 96], strides = [1, 1]} : vector<8x96xbf16> to vector<7x96xbf16>
    %c4_39 = arith.constant 4 : index
    %c0_40 = arith.constant 0 : index
    %c0_41 = arith.constant 0 : index
    %65 = vector.load %arg2[%c4_39, %c0_40, %c0_41] : memref<5x96x336xbf16, #tpu.memory_space<vmem>>, vector<1x96x336xbf16>
    %66 = vector.shape_cast %65 : vector<1x96x336xbf16> to vector<96x336xbf16>
    %cst_42 = arith.constant dense<0.000000e+00> : vector<7x336xf32>
    %67 = tpu.matmul %64, %66, %cst_42 {dimension_numbers = #tpu.dot_dimension_numbers<[1], [0], [0], [1], [0, 0, 1, 1], [], []>} : vector<7x96xbf16>, vector<96x336xbf16>, vector<7x336xf32> -> vector<7x336xf32>
    %68 = arith.addf %63, %67 : vector<7x336xf32>
    %c0_43 = arith.constant 0 : index
    %c0_44 = arith.constant 0 : index
    %69 = vector.load %arg3[%c0_43, %c0_44] : memref<1x336xf32, #tpu.memory_space<vmem>>, vector<1x336xf32>
    %70 = vector.broadcast %69 : vector<1x336xf32> to vector<7x336xf32>
    %71 = arith.addf %68, %70 : vector<7x336xf32>
    %cst_45 = arith.constant 0.000000e+00 : f32
    %72 = vector.broadcast %cst_45 : f32 to vector<7x336xf32>
    %73 = arith.maximumf %71, %72 : vector<7x336xf32>
    %74 = vector.extract_strided_slice %73 {offsets = [0, 0], sizes = [7, 168], strides = [1, 1]} : vector<7x336xf32> to vector<7x168xf32>
    %75 = vector.extract_strided_slice %73 {offsets = [0, 168], sizes = [7, 168], strides = [1, 1]} : vector<7x336xf32> to vector<7x168xf32>
    %76 = arith.maximumf %74, %75 : vector<7x168xf32>
    %cst_46 = arith.constant 0.000000e+00 : f32
    %77 = vector.broadcast %cst_46 : f32 to vector<7x336xf32>
    %78 = vector.extract_strided_slice %6 {offsets = [0, 0], sizes = [7, 96], strides = [1, 1]} : vector<8x96xbf16> to vector<7x96xbf16>
    %c0_47 = arith.constant 0 : index
    %c0_48 = arith.constant 0 : index
    %c0_49 = arith.constant 0 : index
    %79 = vector.load %arg2[%c0_47, %c0_48, %c0_49] : memref<5x96x336xbf16, #tpu.memory_space<vmem>>, vector<1x96x336xbf16>
    %80 = vector.shape_cast %79 : vector<1x96x336xbf16> to vector<96x336xbf16>
    %cst_50 = arith.constant dense<0.000000e+00> : vector<7x336xf32>
    %81 = tpu.matmul %78, %80, %cst_50 {dimension_numbers = #tpu.dot_dimension_numbers<[1], [0], [0], [1], [0, 0, 1, 1], [], []>} : vector<7x96xbf16>, vector<96x336xbf16>, vector<7x336xf32> -> vector<7x336xf32>
    %82 = arith.addf %77, %81 : vector<7x336xf32>
    %83 = vector.extract_strided_slice %8 {offsets = [0, 0], sizes = [7, 96], strides = [1, 1]} : vector<8x96xbf16> to vector<7x96xbf16>
    %c1_51 = arith.constant 1 : index
    %c0_52 = arith.constant 0 : index
    %c0_53 = arith.constant 0 : index
    %84 = vector.load %arg2[%c1_51, %c0_52, %c0_53] : memref<5x96x336xbf16, #tpu.memory_space<vmem>>, vector<1x96x336xbf16>
    %85 = vector.shape_cast %84 : vector<1x96x336xbf16> to vector<96x336xbf16>
    %cst_54 = arith.constant dense<0.000000e+00> : vector<7x336xf32>
    %86 = tpu.matmul %83, %85, %cst_54 {dimension_numbers = #tpu.dot_dimension_numbers<[1], [0], [0], [1], [0, 0, 1, 1], [], []>} : vector<7x96xbf16>, vector<96x336xbf16>, vector<7x336xf32> -> vector<7x336xf32>
    %87 = arith.addf %82, %86 : vector<7x336xf32>
    %88 = vector.extract_strided_slice %2 {offsets = [1, 0], sizes = [7, 96], strides = [1, 1]} : vector<8x96xbf16> to vector<7x96xbf16>
    %c2_55 = arith.constant 2 : index
    %c0_56 = arith.constant 0 : index
    %c0_57 = arith.constant 0 : index
    %89 = vector.load %arg2[%c2_55, %c0_56, %c0_57] : memref<5x96x336xbf16, #tpu.memory_space<vmem>>, vector<1x96x336xbf16>
    %90 = vector.shape_cast %89 : vector<1x96x336xbf16> to vector<96x336xbf16>
    %cst_58 = arith.constant dense<0.000000e+00> : vector<7x336xf32>
    %91 = tpu.matmul %88, %90, %cst_58 {dimension_numbers = #tpu.dot_dimension_numbers<[1], [0], [0], [1], [0, 0, 1, 1], [], []>} : vector<7x96xbf16>, vector<96x336xbf16>, vector<7x336xf32> -> vector<7x336xf32>
    %92 = arith.addf %87, %91 : vector<7x336xf32>
    %93 = vector.extract_strided_slice %4 {offsets = [1, 0], sizes = [7, 96], strides = [1, 1]} : vector<8x96xbf16> to vector<7x96xbf16>
    %c3_59 = arith.constant 3 : index
    %c0_60 = arith.constant 0 : index
    %c0_61 = arith.constant 0 : index
    %94 = vector.load %arg2[%c3_59, %c0_60, %c0_61] : memref<5x96x336xbf16, #tpu.memory_space<vmem>>, vector<1x96x336xbf16>
    %95 = vector.shape_cast %94 : vector<1x96x336xbf16> to vector<96x336xbf16>
    %cst_62 = arith.constant dense<0.000000e+00> : vector<7x336xf32>
    %96 = tpu.matmul %93, %95, %cst_62 {dimension_numbers = #tpu.dot_dimension_numbers<[1], [0], [0], [1], [0, 0, 1, 1], [], []>} : vector<7x96xbf16>, vector<96x336xbf16>, vector<7x336xf32> -> vector<7x336xf32>
    %97 = arith.addf %92, %96 : vector<7x336xf32>
    %98 = vector.extract_strided_slice %6 {offsets = [1, 0], sizes = [7, 96], strides = [1, 1]} : vector<8x96xbf16> to vector<7x96xbf16>
    %c4_63 = arith.constant 4 : index
    %c0_64 = arith.constant 0 : index
    %c0_65 = arith.constant 0 : index
    %99 = vector.load %arg2[%c4_63, %c0_64, %c0_65] : memref<5x96x336xbf16, #tpu.memory_space<vmem>>, vector<1x96x336xbf16>
    %100 = vector.shape_cast %99 : vector<1x96x336xbf16> to vector<96x336xbf16>
    %cst_66 = arith.constant dense<0.000000e+00> : vector<7x336xf32>
    %101 = tpu.matmul %98, %100, %cst_66 {dimension_numbers = #tpu.dot_dimension_numbers<[1], [0], [0], [1], [0, 0, 1, 1], [], []>} : vector<7x96xbf16>, vector<96x336xbf16>, vector<7x336xf32> -> vector<7x336xf32>
    %102 = arith.addf %97, %101 : vector<7x336xf32>
    %c0_67 = arith.constant 0 : index
    %c0_68 = arith.constant 0 : index
    %103 = vector.load %arg3[%c0_67, %c0_68] : memref<1x336xf32, #tpu.memory_space<vmem>>, vector<1x336xf32>
    %104 = vector.broadcast %103 : vector<1x336xf32> to vector<7x336xf32>
    %105 = arith.addf %102, %104 : vector<7x336xf32>
    %cst_69 = arith.constant 0.000000e+00 : f32
    %106 = vector.broadcast %cst_69 : f32 to vector<7x336xf32>
    %107 = arith.maximumf %105, %106 : vector<7x336xf32>
    %108 = vector.extract_strided_slice %107 {offsets = [0, 0], sizes = [7, 168], strides = [1, 1]} : vector<7x336xf32> to vector<7x168xf32>
    %109 = vector.extract_strided_slice %107 {offsets = [0, 168], sizes = [7, 168], strides = [1, 1]} : vector<7x336xf32> to vector<7x168xf32>
    %110 = arith.maximumf %108, %109 : vector<7x168xf32>
    %cst_70 = arith.constant 0.000000e+00 : f32
    %111 = vector.broadcast %cst_70 : f32 to vector<7x336xf32>
    %112 = vector.extract_strided_slice %8 {offsets = [0, 0], sizes = [7, 96], strides = [1, 1]} : vector<8x96xbf16> to vector<7x96xbf16>
    %c0_71 = arith.constant 0 : index
    %c0_72 = arith.constant 0 : index
    %c0_73 = arith.constant 0 : index
    %113 = vector.load %arg2[%c0_71, %c0_72, %c0_73] : memref<5x96x336xbf16, #tpu.memory_space<vmem>>, vector<1x96x336xbf16>
    %114 = vector.shape_cast %113 : vector<1x96x336xbf16> to vector<96x336xbf16>
    %cst_74 = arith.constant dense<0.000000e+00> : vector<7x336xf32>
    %115 = tpu.matmul %112, %114, %cst_74 {dimension_numbers = #tpu.dot_dimension_numbers<[1], [0], [0], [1], [0, 0, 1, 1], [], []>} : vector<7x96xbf16>, vector<96x336xbf16>, vector<7x336xf32> -> vector<7x336xf32>
    %116 = arith.addf %111, %115 : vector<7x336xf32>
    %117 = vector.extract_strided_slice %2 {offsets = [1, 0], sizes = [7, 96], strides = [1, 1]} : vector<8x96xbf16> to vector<7x96xbf16>
    %c1_75 = arith.constant 1 : index
    %c0_76 = arith.constant 0 : index
    %c0_77 = arith.constant 0 : index
    %118 = vector.load %arg2[%c1_75, %c0_76, %c0_77] : memref<5x96x336xbf16, #tpu.memory_space<vmem>>, vector<1x96x336xbf16>
    %119 = vector.shape_cast %118 : vector<1x96x336xbf16> to vector<96x336xbf16>
    %cst_78 = arith.constant dense<0.000000e+00> : vector<7x336xf32>
    %120 = tpu.matmul %117, %119, %cst_78 {dimension_numbers = #tpu.dot_dimension_numbers<[1], [0], [0], [1], [0, 0, 1, 1], [], []>} : vector<7x96xbf16>, vector<96x336xbf16>, vector<7x336xf32> -> vector<7x336xf32>
    %121 = arith.addf %116, %120 : vector<7x336xf32>
    %122 = vector.extract_strided_slice %4 {offsets = [1, 0], sizes = [7, 96], strides = [1, 1]} : vector<8x96xbf16> to vector<7x96xbf16>
    %c2_79 = arith.constant 2 : index
    %c0_80 = arith.constant 0 : index
    %c0_81 = arith.constant 0 : index
    %123 = vector.load %arg2[%c2_79, %c0_80, %c0_81] : memref<5x96x336xbf16, #tpu.memory_space<vmem>>, vector<1x96x336xbf16>
    %124 = vector.shape_cast %123 : vector<1x96x336xbf16> to vector<96x336xbf16>
    %cst_82 = arith.constant dense<0.000000e+00> : vector<7x336xf32>
    %125 = tpu.matmul %122, %124, %cst_82 {dimension_numbers = #tpu.dot_dimension_numbers<[1], [0], [0], [1], [0, 0, 1, 1], [], []>} : vector<7x96xbf16>, vector<96x336xbf16>, vector<7x336xf32> -> vector<7x336xf32>
    %126 = arith.addf %121, %125 : vector<7x336xf32>
    %127 = vector.extract_strided_slice %6 {offsets = [1, 0], sizes = [7, 96], strides = [1, 1]} : vector<8x96xbf16> to vector<7x96xbf16>
    %c3_83 = arith.constant 3 : index
    %c0_84 = arith.constant 0 : index
    %c0_85 = arith.constant 0 : index
    %128 = vector.load %arg2[%c3_83, %c0_84, %c0_85] : memref<5x96x336xbf16, #tpu.memory_space<vmem>>, vector<1x96x336xbf16>
    %129 = vector.shape_cast %128 : vector<1x96x336xbf16> to vector<96x336xbf16>
    %cst_86 = arith.constant dense<0.000000e+00> : vector<7x336xf32>
    %130 = tpu.matmul %127, %129, %cst_86 {dimension_numbers = #tpu.dot_dimension_numbers<[1], [0], [0], [1], [0, 0, 1, 1], [], []>} : vector<7x96xbf16>, vector<96x336xbf16>, vector<7x336xf32> -> vector<7x336xf32>
    %131 = arith.addf %126, %130 : vector<7x336xf32>
    %132 = vector.extract_strided_slice %8 {offsets = [1, 0], sizes = [7, 96], strides = [1, 1]} : vector<8x96xbf16> to vector<7x96xbf16>
    %c4_87 = arith.constant 4 : index
    %c0_88 = arith.constant 0 : index
    %c0_89 = arith.constant 0 : index
    %133 = vector.load %arg2[%c4_87, %c0_88, %c0_89] : memref<5x96x336xbf16, #tpu.memory_space<vmem>>, vector<1x96x336xbf16>
    %134 = vector.shape_cast %133 : vector<1x96x336xbf16> to vector<96x336xbf16>
    %cst_90 = arith.constant dense<0.000000e+00> : vector<7x336xf32>
    %135 = tpu.matmul %132, %134, %cst_90 {dimension_numbers = #tpu.dot_dimension_numbers<[1], [0], [0], [1], [0, 0, 1, 1], [], []>} : vector<7x96xbf16>, vector<96x336xbf16>, vector<7x336xf32> -> vector<7x336xf32>
    %136 = arith.addf %131, %135 : vector<7x336xf32>
    %c0_91 = arith.constant 0 : index
    %c0_92 = arith.constant 0 : index
    %137 = vector.load %arg3[%c0_91, %c0_92] : memref<1x336xf32, #tpu.memory_space<vmem>>, vector<1x336xf32>
    %138 = vector.broadcast %137 : vector<1x336xf32> to vector<7x336xf32>
    %139 = arith.addf %136, %138 : vector<7x336xf32>
    %cst_93 = arith.constant 0.000000e+00 : f32
    %140 = vector.broadcast %cst_93 : f32 to vector<7x336xf32>
    %141 = arith.maximumf %139, %140 : vector<7x336xf32>
    %142 = vector.extract_strided_slice %141 {offsets = [0, 0], sizes = [7, 168], strides = [1, 1]} : vector<7x336xf32> to vector<7x168xf32>
    %143 = vector.extract_strided_slice %141 {offsets = [0, 168], sizes = [7, 168], strides = [1, 1]} : vector<7x336xf32> to vector<7x168xf32>
    %144 = arith.maximumf %142, %143 : vector<7x168xf32>
    %145 = arith.maximumf %42, %76 : vector<7x168xf32>
    %146 = arith.truncf %145 : vector<7x168xf32> to vector<7x168xbf16>
    %147 = arith.maximumf %110, %144 : vector<7x168xf32>
    %148 = arith.truncf %147 : vector<7x168xf32> to vector<7x168xbf16>
    %cst_94 = arith.constant 0.000000e+00 : f32
    %149 = vector.broadcast %cst_94 : f32 to vector<5x320xf32>
    %150 = vector.extract_strided_slice %146 {offsets = [0, 0], sizes = [5, 168], strides = [1, 1]} : vector<7x168xbf16> to vector<5x168xbf16>
    %c0_95 = arith.constant 0 : index
    %c0_96 = arith.constant 0 : index
    %c0_97 = arith.constant 0 : index
    %151 = vector.load %arg4[%c0_95, %c0_96, %c0_97] : memref<5x168x320xbf16, #tpu.memory_space<vmem>>, vector<1x168x320xbf16>
    %152 = vector.shape_cast %151 : vector<1x168x320xbf16> to vector<168x320xbf16>
    %cst_98 = arith.constant dense<0.000000e+00> : vector<5x320xf32>
    %153 = tpu.matmul %150, %152, %cst_98 {dimension_numbers = #tpu.dot_dimension_numbers<[1], [0], [0], [1], [0, 0, 1, 1], [], []>} : vector<5x168xbf16>, vector<168x320xbf16>, vector<5x320xf32> -> vector<5x320xf32>
    %154 = arith.addf %149, %153 : vector<5x320xf32>
    %155 = vector.extract_strided_slice %148 {offsets = [0, 0], sizes = [5, 168], strides = [1, 1]} : vector<7x168xbf16> to vector<5x168xbf16>
    %c1_99 = arith.constant 1 : index
    %c0_100 = arith.constant 0 : index
    %c0_101 = arith.constant 0 : index
    %156 = vector.load %arg4[%c1_99, %c0_100, %c0_101] : memref<5x168x320xbf16, #tpu.memory_space<vmem>>, vector<1x168x320xbf16>
    %157 = vector.shape_cast %156 : vector<1x168x320xbf16> to vector<168x320xbf16>
    %cst_102 = arith.constant dense<0.000000e+00> : vector<5x320xf32>
    %158 = tpu.matmul %155, %157, %cst_102 {dimension_numbers = #tpu.dot_dimension_numbers<[1], [0], [0], [1], [0, 0, 1, 1], [], []>} : vector<5x168xbf16>, vector<168x320xbf16>, vector<5x320xf32> -> vector<5x320xf32>
    %159 = arith.addf %154, %158 : vector<5x320xf32>
    %160 = vector.extract_strided_slice %146 {offsets = [1, 0], sizes = [5, 168], strides = [1, 1]} : vector<7x168xbf16> to vector<5x168xbf16>
    %c2_103 = arith.constant 2 : index
    %c0_104 = arith.constant 0 : index
    %c0_105 = arith.constant 0 : index
    %161 = vector.load %arg4[%c2_103, %c0_104, %c0_105] : memref<5x168x320xbf16, #tpu.memory_space<vmem>>, vector<1x168x320xbf16>
    %162 = vector.shape_cast %161 : vector<1x168x320xbf16> to vector<168x320xbf16>
    %cst_106 = arith.constant dense<0.000000e+00> : vector<5x320xf32>
    %163 = tpu.matmul %160, %162, %cst_106 {dimension_numbers = #tpu.dot_dimension_numbers<[1], [0], [0], [1], [0, 0, 1, 1], [], []>} : vector<5x168xbf16>, vector<168x320xbf16>, vector<5x320xf32> -> vector<5x320xf32>
    %164 = arith.addf %159, %163 : vector<5x320xf32>
    %165 = vector.extract_strided_slice %148 {offsets = [1, 0], sizes = [5, 168], strides = [1, 1]} : vector<7x168xbf16> to vector<5x168xbf16>
    %c3_107 = arith.constant 3 : index
    %c0_108 = arith.constant 0 : index
    %c0_109 = arith.constant 0 : index
    %166 = vector.load %arg4[%c3_107, %c0_108, %c0_109] : memref<5x168x320xbf16, #tpu.memory_space<vmem>>, vector<1x168x320xbf16>
    %167 = vector.shape_cast %166 : vector<1x168x320xbf16> to vector<168x320xbf16>
    %cst_110 = arith.constant dense<0.000000e+00> : vector<5x320xf32>
    %168 = tpu.matmul %165, %167, %cst_110 {dimension_numbers = #tpu.dot_dimension_numbers<[1], [0], [0], [1], [0, 0, 1, 1], [], []>} : vector<5x168xbf16>, vector<168x320xbf16>, vector<5x320xf32> -> vector<5x320xf32>
    %169 = arith.addf %164, %168 : vector<5x320xf32>
    %170 = vector.extract_strided_slice %146 {offsets = [2, 0], sizes = [5, 168], strides = [1, 1]} : vector<7x168xbf16> to vector<5x168xbf16>
    %c4_111 = arith.constant 4 : index
    %c0_112 = arith.constant 0 : index
    %c0_113 = arith.constant 0 : index
    %171 = vector.load %arg4[%c4_111, %c0_112, %c0_113] : memref<5x168x320xbf16, #tpu.memory_space<vmem>>, vector<1x168x320xbf16>
    %172 = vector.shape_cast %171 : vector<1x168x320xbf16> to vector<168x320xbf16>
    %cst_114 = arith.constant dense<0.000000e+00> : vector<5x320xf32>
    %173 = tpu.matmul %170, %172, %cst_114 {dimension_numbers = #tpu.dot_dimension_numbers<[1], [0], [0], [1], [0, 0, 1, 1], [], []>} : vector<5x168xbf16>, vector<168x320xbf16>, vector<5x320xf32> -> vector<5x320xf32>
    %174 = arith.addf %169, %173 : vector<5x320xf32>
    %c0_115 = arith.constant 0 : index
    %c0_116 = arith.constant 0 : index
    %175 = vector.load %arg5[%c0_115, %c0_116] : memref<1x320xf32, #tpu.memory_space<vmem>>, vector<1x320xf32>
    %176 = vector.broadcast %175 : vector<1x320xf32> to vector<5x320xf32>
    %177 = arith.addf %174, %176 : vector<5x320xf32>
    %cst_117 = arith.constant 0.000000e+00 : f32
    %178 = vector.broadcast %cst_117 : f32 to vector<5x320xf32>
    %179 = arith.maximumf %177, %178 : vector<5x320xf32>
    %180 = vector.extract_strided_slice %179 {offsets = [0, 0], sizes = [5, 160], strides = [1, 1]} : vector<5x320xf32> to vector<5x160xf32>
    %181 = vector.extract_strided_slice %179 {offsets = [0, 160], sizes = [5, 160], strides = [1, 1]} : vector<5x320xf32> to vector<5x160xf32>
    %182 = arith.maximumf %180, %181 : vector<5x160xf32>
    %cst_118 = arith.constant 0.000000e+00 : f32
    %183 = vector.broadcast %cst_118 : f32 to vector<5x320xf32>
    %184 = vector.extract_strided_slice %148 {offsets = [0, 0], sizes = [5, 168], strides = [1, 1]} : vector<7x168xbf16> to vector<5x168xbf16>
    %c0_119 = arith.constant 0 : index
    %c0_120 = arith.constant 0 : index
    %c0_121 = arith.constant 0 : index
    %185 = vector.load %arg4[%c0_119, %c0_120, %c0_121] : memref<5x168x320xbf16, #tpu.memory_space<vmem>>, vector<1x168x320xbf16>
    %186 = vector.shape_cast %185 : vector<1x168x320xbf16> to vector<168x320xbf16>
    %cst_122 = arith.constant dense<0.000000e+00> : vector<5x320xf32>
    %187 = tpu.matmul %184, %186, %cst_122 {dimension_numbers = #tpu.dot_dimension_numbers<[1], [0], [0], [1], [0, 0, 1, 1], [], []>} : vector<5x168xbf16>, vector<168x320xbf16>, vector<5x320xf32> -> vector<5x320xf32>
    %188 = arith.addf %183, %187 : vector<5x320xf32>
    %189 = vector.extract_strided_slice %146 {offsets = [1, 0], sizes = [5, 168], strides = [1, 1]} : vector<7x168xbf16> to vector<5x168xbf16>
    %c1_123 = arith.constant 1 : index
    %c0_124 = arith.constant 0 : index
    %c0_125 = arith.constant 0 : index
    %190 = vector.load %arg4[%c1_123, %c0_124, %c0_125] : memref<5x168x320xbf16, #tpu.memory_space<vmem>>, vector<1x168x320xbf16>
    %191 = vector.shape_cast %190 : vector<1x168x320xbf16> to vector<168x320xbf16>
    %cst_126 = arith.constant dense<0.000000e+00> : vector<5x320xf32>
    %192 = tpu.matmul %189, %191, %cst_126 {dimension_numbers = #tpu.dot_dimension_numbers<[1], [0], [0], [1], [0, 0, 1, 1], [], []>} : vector<5x168xbf16>, vector<168x320xbf16>, vector<5x320xf32> -> vector<5x320xf32>
    %193 = arith.addf %188, %192 : vector<5x320xf32>
    %194 = vector.extract_strided_slice %148 {offsets = [1, 0], sizes = [5, 168], strides = [1, 1]} : vector<7x168xbf16> to vector<5x168xbf16>
    %c2_127 = arith.constant 2 : index
    %c0_128 = arith.constant 0 : index
    %c0_129 = arith.constant 0 : index
    %195 = vector.load %arg4[%c2_127, %c0_128, %c0_129] : memref<5x168x320xbf16, #tpu.memory_space<vmem>>, vector<1x168x320xbf16>
    %196 = vector.shape_cast %195 : vector<1x168x320xbf16> to vector<168x320xbf16>
    %cst_130 = arith.constant dense<0.000000e+00> : vector<5x320xf32>
    %197 = tpu.matmul %194, %196, %cst_130 {dimension_numbers = #tpu.dot_dimension_numbers<[1], [0], [0], [1], [0, 0, 1, 1], [], []>} : vector<5x168xbf16>, vector<168x320xbf16>, vector<5x320xf32> -> vector<5x320xf32>
    %198 = arith.addf %193, %197 : vector<5x320xf32>
    %199 = vector.extract_strided_slice %146 {offsets = [2, 0], sizes = [5, 168], strides = [1, 1]} : vector<7x168xbf16> to vector<5x168xbf16>
    %c3_131 = arith.constant 3 : index
    %c0_132 = arith.constant 0 : index
    %c0_133 = arith.constant 0 : index
    %200 = vector.load %arg4[%c3_131, %c0_132, %c0_133] : memref<5x168x320xbf16, #tpu.memory_space<vmem>>, vector<1x168x320xbf16>
    %201 = vector.shape_cast %200 : vector<1x168x320xbf16> to vector<168x320xbf16>
    %cst_134 = arith.constant dense<0.000000e+00> : vector<5x320xf32>
    %202 = tpu.matmul %199, %201, %cst_134 {dimension_numbers = #tpu.dot_dimension_numbers<[1], [0], [0], [1], [0, 0, 1, 1], [], []>} : vector<5x168xbf16>, vector<168x320xbf16>, vector<5x320xf32> -> vector<5x320xf32>
    %203 = arith.addf %198, %202 : vector<5x320xf32>
    %204 = vector.extract_strided_slice %148 {offsets = [2, 0], sizes = [5, 168], strides = [1, 1]} : vector<7x168xbf16> to vector<5x168xbf16>
    %c4_135 = arith.constant 4 : index
    %c0_136 = arith.constant 0 : index
    %c0_137 = arith.constant 0 : index
    %205 = vector.load %arg4[%c4_135, %c0_136, %c0_137] : memref<5x168x320xbf16, #tpu.memory_space<vmem>>, vector<1x168x320xbf16>
    %206 = vector.shape_cast %205 : vector<1x168x320xbf16> to vector<168x320xbf16>
    %cst_138 = arith.constant dense<0.000000e+00> : vector<5x320xf32>
    %207 = tpu.matmul %204, %206, %cst_138 {dimension_numbers = #tpu.dot_dimension_numbers<[1], [0], [0], [1], [0, 0, 1, 1], [], []>} : vector<5x168xbf16>, vector<168x320xbf16>, vector<5x320xf32> -> vector<5x320xf32>
    %208 = arith.addf %203, %207 : vector<5x320xf32>
    %c0_139 = arith.constant 0 : index
    %c0_140 = arith.constant 0 : index
    %209 = vector.load %arg5[%c0_139, %c0_140] : memref<1x320xf32, #tpu.memory_space<vmem>>, vector<1x320xf32>
    %210 = vector.broadcast %209 : vector<1x320xf32> to vector<5x320xf32>
    %211 = arith.addf %208, %210 : vector<5x320xf32>
    %cst_141 = arith.constant 0.000000e+00 : f32
    %212 = vector.broadcast %cst_141 : f32 to vector<5x320xf32>
    %213 = arith.maximumf %211, %212 : vector<5x320xf32>
    %214 = vector.extract_strided_slice %213 {offsets = [0, 0], sizes = [5, 160], strides = [1, 1]} : vector<5x320xf32> to vector<5x160xf32>
    %215 = vector.extract_strided_slice %213 {offsets = [0, 160], sizes = [5, 160], strides = [1, 1]} : vector<5x320xf32> to vector<5x160xf32>
    %216 = arith.maximumf %214, %215 : vector<5x160xf32>
    %217 = arith.maximumf %182, %216 : vector<5x160xf32>
    %218 = arith.truncf %217 : vector<5x160xf32> to vector<5x160xbf16>
    %cst_142 = arith.constant 0.000000e+00 : f32
    %219 = vector.broadcast %cst_142 : f32 to vector<1x240xf32>
    %220 = vector.extract_strided_slice %218 {offsets = [0, 0], sizes = [1, 160], strides = [1, 1]} : vector<5x160xbf16> to vector<1x160xbf16>
    %c0_143 = arith.constant 0 : index
    %c0_144 = arith.constant 0 : index
    %c0_145 = arith.constant 0 : index
    %221 = vector.load %arg6[%c0_143, %c0_144, %c0_145] : memref<5x160x240xbf16, #tpu.memory_space<vmem>>, vector<1x160x240xbf16>
    %222 = vector.shape_cast %221 : vector<1x160x240xbf16> to vector<160x240xbf16>
    %cst_146 = arith.constant dense<0.000000e+00> : vector<1x240xf32>
    %223 = tpu.matmul %220, %222, %cst_146 {dimension_numbers = #tpu.dot_dimension_numbers<[1], [0], [0], [1], [0, 0, 1, 1], [], []>} : vector<1x160xbf16>, vector<160x240xbf16>, vector<1x240xf32> -> vector<1x240xf32>
    %224 = arith.addf %219, %223 : vector<1x240xf32>
    %225 = vector.extract_strided_slice %218 {offsets = [1, 0], sizes = [1, 160], strides = [1, 1]} : vector<5x160xbf16> to vector<1x160xbf16>
    %c1_147 = arith.constant 1 : index
    %c0_148 = arith.constant 0 : index
    %c0_149 = arith.constant 0 : index
    %226 = vector.load %arg6[%c1_147, %c0_148, %c0_149] : memref<5x160x240xbf16, #tpu.memory_space<vmem>>, vector<1x160x240xbf16>
    %227 = vector.shape_cast %226 : vector<1x160x240xbf16> to vector<160x240xbf16>
    %cst_150 = arith.constant dense<0.000000e+00> : vector<1x240xf32>
    %228 = tpu.matmul %225, %227, %cst_150 {dimension_numbers = #tpu.dot_dimension_numbers<[1], [0], [0], [1], [0, 0, 1, 1], [], []>} : vector<1x160xbf16>, vector<160x240xbf16>, vector<1x240xf32> -> vector<1x240xf32>
    %229 = arith.addf %224, %228 : vector<1x240xf32>
    %230 = vector.extract_strided_slice %218 {offsets = [2, 0], sizes = [1, 160], strides = [1, 1]} : vector<5x160xbf16> to vector<1x160xbf16>
    %c2_151 = arith.constant 2 : index
    %c0_152 = arith.constant 0 : index
    %c0_153 = arith.constant 0 : index
    %231 = vector.load %arg6[%c2_151, %c0_152, %c0_153] : memref<5x160x240xbf16, #tpu.memory_space<vmem>>, vector<1x160x240xbf16>
    %232 = vector.shape_cast %231 : vector<1x160x240xbf16> to vector<160x240xbf16>
    %cst_154 = arith.constant dense<0.000000e+00> : vector<1x240xf32>
    %233 = tpu.matmul %230, %232, %cst_154 {dimension_numbers = #tpu.dot_dimension_numbers<[1], [0], [0], [1], [0, 0, 1, 1], [], []>} : vector<1x160xbf16>, vector<160x240xbf16>, vector<1x240xf32> -> vector<1x240xf32>
    %234 = arith.addf %229, %233 : vector<1x240xf32>
    %235 = vector.extract_strided_slice %218 {offsets = [3, 0], sizes = [1, 160], strides = [1, 1]} : vector<5x160xbf16> to vector<1x160xbf16>
    %c3_155 = arith.constant 3 : index
    %c0_156 = arith.constant 0 : index
    %c0_157 = arith.constant 0 : index
    %236 = vector.load %arg6[%c3_155, %c0_156, %c0_157] : memref<5x160x240xbf16, #tpu.memory_space<vmem>>, vector<1x160x240xbf16>
    %237 = vector.shape_cast %236 : vector<1x160x240xbf16> to vector<160x240xbf16>
    %cst_158 = arith.constant dense<0.000000e+00> : vector<1x240xf32>
    %238 = tpu.matmul %235, %237, %cst_158 {dimension_numbers = #tpu.dot_dimension_numbers<[1], [0], [0], [1], [0, 0, 1, 1], [], []>} : vector<1x160xbf16>, vector<160x240xbf16>, vector<1x240xf32> -> vector<1x240xf32>
    %239 = arith.addf %234, %238 : vector<1x240xf32>
    %240 = vector.extract_strided_slice %218 {offsets = [4, 0], sizes = [1, 160], strides = [1, 1]} : vector<5x160xbf16> to vector<1x160xbf16>
    %c4_159 = arith.constant 4 : index
    %c0_160 = arith.constant 0 : index
    %c0_161 = arith.constant 0 : index
    %241 = vector.load %arg6[%c4_159, %c0_160, %c0_161] : memref<5x160x240xbf16, #tpu.memory_space<vmem>>, vector<1x160x240xbf16>
    %242 = vector.shape_cast %241 : vector<1x160x240xbf16> to vector<160x240xbf16>
    %cst_162 = arith.constant dense<0.000000e+00> : vector<1x240xf32>
    %243 = tpu.matmul %240, %242, %cst_162 {dimension_numbers = #tpu.dot_dimension_numbers<[1], [0], [0], [1], [0, 0, 1, 1], [], []>} : vector<1x160xbf16>, vector<160x240xbf16>, vector<1x240xf32> -> vector<1x240xf32>
    %244 = arith.addf %239, %243 : vector<1x240xf32>
    %c0_163 = arith.constant 0 : index
    %c0_164 = arith.constant 0 : index
    %245 = vector.load %arg7[%c0_163, %c0_164] : memref<1x240xf32, #tpu.memory_space<vmem>>, vector<1x240xf32>
    %246 = arith.addf %244, %245 : vector<1x240xf32>
    %cst_165 = arith.constant 0.000000e+00 : f32
    %247 = vector.broadcast %cst_165 : f32 to vector<1x240xf32>
    %248 = arith.maximumf %246, %247 : vector<1x240xf32>
    %249 = arith.truncf %248 : vector<1x240xf32> to vector<1x240xbf16>
    %c0_166 = arith.constant 0 : index
    %c0_167 = arith.constant 0 : index
    %250 = vector.load %arg8[%c0_166, %c0_167] : memref<240x168xbf16, #tpu.memory_space<vmem>>, vector<240x168xbf16>
    %cst_168 = arith.constant dense<0.000000e+00> : vector<1x168xf32>
    %251 = tpu.matmul %249, %250, %cst_168 {dimension_numbers = #tpu.dot_dimension_numbers<[1], [0], [0], [1], [0, 0, 1, 1], [], []>} : vector<1x240xbf16>, vector<240x168xbf16>, vector<1x168xf32> -> vector<1x168xf32>
    %c0_169 = arith.constant 0 : index
    %c0_170 = arith.constant 0 : index
    %252 = vector.load %arg9[%c0_169, %c0_170] : memref<1x168xf32, #tpu.memory_space<vmem>>, vector<1x168xf32>
    %253 = arith.addf %251, %252 : vector<1x168xf32>
    %cst_171 = arith.constant 0.000000e+00 : f32
    %254 = vector.broadcast %cst_171 : f32 to vector<1x168xf32>
    %255 = arith.maximumf %253, %254 : vector<1x168xf32>
    %256 = arith.truncf %255 : vector<1x168xf32> to vector<1x168xbf16>
    %c0_172 = arith.constant 0 : index
    %c0_173 = arith.constant 0 : index
    %257 = vector.load %arg10[%c0_172, %c0_173] : memref<168x160xbf16, #tpu.memory_space<vmem>>, vector<168x160xbf16>
    %cst_174 = arith.constant dense<0.000000e+00> : vector<1x160xf32>
    %258 = tpu.matmul %256, %257, %cst_174 {dimension_numbers = #tpu.dot_dimension_numbers<[1], [0], [0], [1], [0, 0, 1, 1], [], []>} : vector<1x168xbf16>, vector<168x160xbf16>, vector<1x160xf32> -> vector<1x160xf32>
    %c0_175 = arith.constant 0 : index
    %c0_176 = arith.constant 0 : index
    %259 = vector.load %arg11[%c0_175, %c0_176] : memref<1x160xf32, #tpu.memory_space<vmem>>, vector<1x160xf32>
    %260 = arith.addf %258, %259 : vector<1x160xf32>
    %c0_177 = arith.constant 0 : index
    %c0_178 = arith.constant 0 : index
    %c0_179 = arith.constant 0 : index
    %261 = vector.load %arg12[%c0_177, %c0_178, %c0_179] : memref<1x1x160xf32, #tpu.memory_space<vmem>>, vector<1x1x160xf32>
    %262 = vector.shape_cast %261 : vector<1x1x160xf32> to vector<1x160xf32>
    %263 = vector.shape_cast %260 : vector<1x160xf32> to vector<1x1x160xf32>
    tpu.vector_store %arg12[%c0_177, %c0_178, %c0_179], %263 {strides = array<i32>} : memref<1x1x160xf32, #tpu.memory_space<vmem>>, vector<1x1x160xf32>,
    return
  }
  func.func @transform_0(%arg0: i32) -> (i32, i32, i32, i32) {
    %c0_i32 = arith.constant 0 : i32
    %c0_i32_0 = arith.constant 0 : i32
    %c0_i32_1 = arith.constant 0 : i32
    %c0_i32_2 = arith.constant 0 : i32
    return %arg0, %c0_i32, %c0_i32_0, %c0_i32_1 : i32, i32, i32, i32
  }
  func.func @transform_1(%arg0: i32) -> (i32, i32, i32) {
    %c0_i32 = arith.constant 0 : i32
    %c0_i32_0 = arith.constant 0 : i32
    %c0_i32_1 = arith.constant 0 : i32
    %c0_i32_2 = arith.constant 0 : i32
    return %c0_i32, %c0_i32_0, %c0_i32_1 : i32, i32, i32
  }
  func.func @transform_2(%arg0: i32) -> (i32, i32) {
    %c0_i32 = arith.constant 0 : i32
    %c0_i32_0 = arith.constant 0 : i32
    %c0_i32_1 = arith.constant 0 : i32
    return %c0_i32, %c0_i32_0 : i32, i32
  }
  func.func @transform_3(%arg0: i32) -> (i32, i32, i32) {
    %c0_i32 = arith.constant 0 : i32
    %c0_i32_0 = arith.constant 0 : i32
    %c0_i32_1 = arith.constant 0 : i32
    %c0_i32_2 = arith.constant 0 : i32
    return %c0_i32, %c0_i32_0, %c0_i32_1 : i32, i32, i32
  }
  func.func @transform_4(%arg0: i32) -> (i32, i32) {
    %c0_i32 = arith.constant 0 : i32
    %c0_i32_0 = arith.constant 0 : i32
    %c0_i32_1 = arith.constant 0 : i32
    return %c0_i32, %c0_i32_0 : i32, i32
  }
  func.func @transform_5(%arg0: i32) -> (i32, i32, i32) {
    %c0_i32 = arith.constant 0 : i32
    %c0_i32_0 = arith.constant 0 : i32
    %c0_i32_1 = arith.constant 0 : i32
    %c0_i32_2 = arith.constant 0 : i32
    return %c0_i32, %c0_i32_0, %c0_i32_1 : i32, i32, i32
  }
  func.func @transform_6(%arg0: i32) -> (i32, i32) {
    %c0_i32 = arith.constant 0 : i32
    %c0_i32_0 = arith.constant 0 : i32
    %c0_i32_1 = arith.constant 0 : i32
    return %c0_i32, %c0_i32_0 : i32, i32
  }
  func.func @transform_7(%arg0: i32) -> (i32, i32) {
    %c0_i32 = arith.constant 0 : i32
    %c0_i32_0 = arith.constant 0 : i32
    %c0_i32_1 = arith.constant 0 : i32
    return %c0_i32, %c0_i32_0 : i32, i32
  }
  func.func @transform_8(%arg0: i32) -> (i32, i32) {
    %c0_i32 = arith.constant 0 : i32
    %c0_i32_0 = arith.constant 0 : i32
    %c0_i32_1 = arith.constant 0 : i32
    return %c0_i32, %c0_i32_0 : i32, i32
  }
  func.func @transform_9(%arg0: i32) -> (i32, i32) {
    %c0_i32 = arith.constant 0 : i32
    %c0_i32_0 = arith.constant 0 : i32
    %c0_i32_1 = arith.constant 0 : i32
    return %c0_i32, %c0_i32_0 : i32, i32
  }
  func.func @transform_10(%arg0: i32) -> (i32, i32) {
    %c0_i32 = arith.constant 0 : i32
    %c0_i32_0 = arith.constant 0 : i32
    %c0_i32_1 = arith.constant 0 : i32
    return %c0_i32, %c0_i32_0 : i32, i32
  }
  func.func @transform_11(%arg0: i32) -> (i32, i32, i32) {
    %c0_i32 = arith.constant 0 : i32
    %c0_i32_0 = arith.constant 0 : i32
    %c0_i32_1 = arith.constant 0 : i32
    return %arg0, %c0_i32, %c0_i32_0 : i32, i32, i32
  }
}

</mosaic_0001>

<bundles_post_ra>
// kernel: tile.10
= control target key start
LH: loop header
LB: loop body
LE: loop exit
PB: predicated region body
PF: predicated region fallthrough
CT: control target
= control target key end

     0   :  { %s40_s0 = inlined_call_operand.vmem [shape: f32[12], index: 0, kind: input, shape index: {}]   ;;  %s41_s1 = inlined_call_operand.vmem [shape: f32[28,12], index: 1, kind: output, shape index: {}]  }
   0x1   :  { %v4_v0 = vld [vmem:[%s40_s0] ss:$0 sm:$0xff] }
   0x2   :  { %5 = vst [vmem:[%s41_s1] sm:$0xff] %v4_v0  ;;  %12 = vst [vmem:[%s41_s1 + $0x8] sm:$0xff] %v4_v0 }
   0x3   :  { %13 = vst [vmem:[%s41_s1 + $0x10] sm:$0xff] %v4_v0  ;;  %14 = vst [vmem:[%s41_s1 + $0x18] sm:$0xff] %v4_v0 }

// kernel: tile.11
= control target key start
LH: loop header
LB: loop body
LE: loop exit
PB: predicated region body
PF: predicated region fallthrough
CT: control target
= control target key end

     0   :  { %vm9_vm0 = vcmask 31744   ;;  %vm13_vm1 = vcmask 64512   ;;  %s278_s14 = smov 124   ;;  %s279_s15 = smov 112   ;;  %vm3_vm2 = vcmask 97280   ;;  %vm16_vm3 = vcmask 1048544   ;;  %s418_s0 = inlined_call_operand.vmem [shape: f32[28,12], index: 0, kind: input, shape index: {}]   ;;  %s419_s1 = inlined_call_operand.vmem [shape: f32[1,336], index: 1, kind: output, shape index: {}]  }
   0x1   :  { %v220_v0 = vld [vmem:[%s418_s0 + $0x15] sm:$0x1]   ;;  %v224_v3 = vld [vmem:[%s418_s0 + $0x14] sm:$0x1]   ;;  %v222_v4 = vld [vmem:[%s418_s0 + $0xa] sm:$0x1]  }
   0x2   :  { %v221_v1 = vld [vmem:[%s418_s0 + $0x15] sm:$0x1]   ;;  %34 = vrot.lane.b32.xlu1 %v224_v3, %s279_s15  ;;  %v223_v5 = vld [vmem:[%s418_s0 + $0xa] sm:$0x1]   ;;  %v225_v7 = vld [vmem:[%s418_s0 + $0x9] sm:$0x1]  }
   0x3   :  { %v10_v2 = vsel %vm9_vm0, %v221_v1, %v220_v0  ;;  %v24_v6 = vsel %vm13_vm1, %v223_v5, %v222_v4  ;;  %s280_s20 = smov 120   ;;  %s281_s21 = smov 108   ;;  %v226_v8 = vld [vmem:[%s418_s0 + $0x13] sm:$0x1]   ;;  %v227_v9 = vld [vmem:[%s418_s0 + $0x8] sm:$0x1]  }
   0x4   :  { %11 = vrot.lane.b32.xlu0 %v10_v2, %s278_s14  ;;  %s282_s26 = smov 100   ;;  %s283_s27 = smov 96   ;;  %v228_v10 = vld [vmem:[%s418_s0 + $0x12] sm:$0x1]   ;;  %v229_v11 = vld [vmem:[%s418_s0 + $0x7] sm:$0x1]  }
   0x5   :  { %s284_s3 = smov 88   ;;  %s285_s4 = smov 84   ;;  %v230_v12 = vld [vmem:[%s418_s0 + $0x11] sm:$0x1]   ;;  %v231_v13 = vld [vmem:[%s418_s0 + $0x6] sm:$0x1]  }
   0x6   :  { %41 = vrot.lane.b32.xlu1 %v225_v7, %s281_s21  ;;  %v2_v14 = vld [vmem:[%s418_s0] sm:$0x1]   ;;  %s286_s11 = smov 76   ;;  %s287_s12 = smov 72   ;;  %v232_v15 = vld [vmem:[%s418_s0 + $0x1b] sm:$0x1]  }
   0x7   :  { %4 = vst.msk [vmem:[#allocation0] sm:$0x1] %vm3_vm2, %v2_v14   ;;  %v233_v16 = vld [vmem:[%s418_s0 + $0x10] sm:$0x1]   ;;  %s288_s17 = smov 68   ;;  %s289_s18 = smov 64  }
   0x8   :  { %25 = vrot.lane.b32.xlu0 %v24_v6, %s280_s20  ;;  %v234_v17 = vld [vmem:[%s418_s0 + $0x5] sm:$0x1]   ;;  %v235_v18 = vld [vmem:[%s418_s0 + $0x1a] sm:$0x1]   ;;  %s290_s23 = smov 60   ;;  %s291_s24 = smov 56  }
   0x9   :  { %v236_v19 = vld [vmem:[%s418_s0 + $0xf] sm:$0x1]   ;;  %v237_v20 = vld [vmem:[%s418_s0 + $0x4] sm:$0x1]   ;;  %s292_s29 = smov 52   ;;  %s293_s30 = smov 48  }
   0xa   :  { %54 = vrot.lane.b32.xlu1 %v227_v9, %s283_s27  ;;  %v238_v21 = vld [vmem:[%s418_s0 + $0x19] sm:$0x1]   ;;  %v239_v22 = vld [vmem:[%s418_s0 + $0xe] sm:$0x1]   ;;  %s294_s6 = smov 44   ;;  %s295_s7 = smov 40  }
   0xb   :  { %v240_v23 = vld [vmem:[%s418_s0 + $0x3] sm:$0x1]   ;;  %v241_v24 = vld [vmem:[%s418_s0 + $0x18] sm:$0x1]   ;;  %s297_s13 = smov 32   ;;  %s299_s19 = smov 24  }
   0xc   :  { %47 = vrot.lane.b32.xlu0 %v226_v8, %s282_s26  ;;  %v242_v25 = vld [vmem:[%s418_s0 + $0xd] sm:$0x1]   ;;  %v243_v26 = vld [vmem:[%s418_s0 + $0x2] sm:$0x1]   ;;  %v244_v27 = vld [vmem:[%s418_s0 + $0x17] sm:$0x1]  }
   0xd   :  { %v245_v28 = vld [vmem:[%s418_s0 + $0xc] sm:$0x1]   ;;  %s301_s25 = smov 16   ;;  %v246_v29 = vld [vmem:[%s418_s0 + $0x1] sm:$0x1]   ;;  %s303_s2 = smov 8  }
   0xe   :  { %67 = vrot.lane.b32.xlu1 %v229_v11, %s285_s4  ;;  %v247_v30 = vld [vmem:[%s418_s0 + $0x16] sm:$0x1]   ;;  %v248_v31 = vld [vmem:[%s418_s0 + $0xb] sm:$0x1]   ;;  %s304_s0 = smov 4   ;;  %vm30_vm4 = vcmask 1048512  }
   0xf   :  { %vm36_vm5 = vcmask 1015680   ;;  %vm43_vm6 = vcmask 982880   ;;  %vm49_vm7 = vcmask 917280   ;;  %vm56_vm8 = vcmask 884480  }
  0x10   :  { %60 = vrot.lane.b32.xlu0 %v228_v10, %s284_s3  ;;  %vm62_vm9 = vcmask 818880   ;;  %vm69_vm10 = vcmask 786080   ;;  %vm75_vm11 = vcmask 720480   ;;  %vm82_vm12 = vcmask 687680  }
  0x11   :  { %vm88_vm13 = vcmask 654880   ;;  %vm95_vm14 = vcmask 622080   ;;  %vm102_vm15 = vcmask 589280   ;;  %vm122_vm2 = vcmask 490880  }
  0x12   :  { %80 = vrot.lane.b32.xlu1 %v231_v13, %s287_s12  ;;  %s296_s12 = smov 36  }
  0x14   :  { %73 = vrot.lane.b32.xlu0 %v230_v12, %s286_s11 }
  0x16   :  { %93 = vrot.lane.b32.xlu1 %v233_v16, %s289_s18  ;;  %s298_s18 = smov 28  }
  0x18   :  { %86 = vrot.lane.b32.xlu0 %v232_v15, %s288_s17 }
  0x1a   :  { %106 = vrot.lane.b32.xlu1 %v235_v18, %s291_s24  ;;  %s300_s24 = smov 20  }
  0x1c   :  { %100 = vrot.lane.b32.xlu0 %v234_v17, %s290_s23 }
  0x1e   :  { %120 = vrot.lane.b32.xlu1 %v237_v20, %s293_s30  ;;  %s302_s30 = smov 12  }
  0x20   :  { %113 = vrot.lane.b32.xlu0 %v236_v19, %s292_s29 }
  0x22   :  { %133 = vrot.lane.b32.xlu1 %v239_v22, %s295_s7 }
  0x24   :  { %126 = vrot.lane.b32.xlu0 %v238_v21, %s294_s6 }
  0x26   :  { %146 = vrot.lane.b32.xlu1 %v241_v24, %s297_s13 }
  0x28   :  { %140 = vrot.lane.b32.xlu0 %v240_v23, %s296_s12 }
  0x2a   :  { %160 = vrot.lane.b32.xlu1 %v243_v26, %s299_s19 }
  0x2c   :  { %153 = vrot.lane.b32.xlu0 %v242_v25, %s298_s18 }
  0x2e   :  { %173 = vrot.lane.b32.xlu1 %v245_v28, %s301_s25 }
  0x30   :  { %166 = vrot.lane.b32.xlu0 %v244_v27, %s300_s24 }
  0x32   :  { %186 = vrot.lane.b32.xlu1 %v247_v30, %s303_s2 }
  0x34   :  { %180 = vrot.lane.b32.xlu0 %v246_v29, %s302_s30 }
  0x38   :  { %193 = vrot.lane.b32.xlu0 %v248_v31, %s304_s0 }
  0x74   :  { %v35_v33 = vpop.permute.xlu1 %34  }
  0x76   :  { %v12_v32 = vpop.permute.xlu0 %11  }
  0x77   :  { %15 = vst.msk [vmem:[#allocation0 + $0x10] sm:$0x1] %vm13_vm1, %v12_v32   ;;  %vm115_vm1 = vcmask 523680  }
  0x78   :  { %18 = vst.msk [vmem:[#allocation0 + $0x8] sm:$0x1] %vm16_vm3, %v12_v32   ;;  %v42_v35 = vpop.permute.xlu1 %41   ;;  %vm128_vm3 = vcmask 458080  }
  0x7a   :  { %v26_v34 = vpop.permute.xlu0 %25  }
  0x7b   :  { %29 = vst.msk [vmem:[#allocation0 + $0x8] sm:$0x1] %vm9_vm0, %v26_v34   ;;  %vm108_vm0 = vcmask 556480  }
  0x7c   :  { %31 = vst.msk [vmem:[#allocation0] sm:$0x1] %vm30_vm4, %v26_v34   ;;  %v55_v37 = vpop.permute.xlu1 %54   ;;  %vm135_vm4 = vcmask 425280  }
  0x7d   :  { %38 = vst.msk [vmem:[#allocation0 + $0x8] sm:$0x1] %vm36_vm5, %v35_v33   ;;  %vm142_vm5 = vcmask 392480  }
  0x7e   :  { %44 = vst.msk [vmem:[#allocation0] sm:$0x1] %vm43_vm6, %v42_v35   ;;  %v48_v36 = vpop.permute.xlu0 %47   ;;  %vm148_vm6 = vcmask 359680  }
  0x7f   :  { %51 = vst.msk [vmem:[#allocation0 + $0x8] sm:$0x1] %vm49_vm7, %v48_v36   ;;  %vm155_vm7 = vcmask 326880  }
  0x80   :  { %57 = vst.msk [vmem:[#allocation0] sm:$0x1] %vm56_vm8, %v55_v37   ;;  %v68_v39 = vpop.permute.xlu1 %67   ;;  %vm162_vm8 = vcmask 294080  }
  0x81   :  { %70 = vst.msk [vmem:[#allocation0] sm:$0x1] %vm69_vm10, %v68_v39   ;;  %vm175_vm10 = vcmask 228480  }
  0x82   :  { %v61_v38 = vpop.permute.xlu0 %60  }
  0x83   :  { %64 = vst.msk [vmem:[#allocation0 + $0x8] sm:$0x1] %vm62_vm9, %v61_v38   ;;  %vm168_vm9 = vcmask 261280  }
  0x84   :  { %v81_v41 = vpop.permute.xlu1 %80  }
  0x85   :  { %83 = vst.msk [vmem:[#allocation0] sm:$0x1] %vm82_vm12, %v81_v41   ;;  %vm188_vm12 = vcmask 162880  }
  0x86   :  { %v74_v40 = vpop.permute.xlu0 %73  }
  0x87   :  { %77 = vst.msk [vmem:[#allocation0 + $0x8] sm:$0x1] %vm75_vm11, %v74_v40   ;;  %vm182_vm11 = vcmask 195680  }
  0x88   :  { %v94_v43 = vpop.permute.xlu1 %93  }
  0x89   :  { %97 = vst.msk [vmem:[#allocation0 + $0x8] sm:$0x1] %vm95_vm14, %v94_v43  }
  0x8a   :  { %v87_v42 = vpop.permute.xlu0 %86  }
  0x8b   :  { %90 = vst.msk [vmem:[#allocation0 + $0x10] sm:$0x1] %vm88_vm13, %v87_v42   ;;  %vm195_vm13 = vcmask 130080  }
  0x8c   :  { %v107_v45 = vpop.permute.xlu1 %106  }
  0x8d   :  { %110 = vst.msk [vmem:[#allocation0 + $0x10] sm:$0x1] %vm108_vm0, %v107_v45  }
  0x8e   :  { %v101_v44 = vpop.permute.xlu0 %100  }
  0x8f   :  { %103 = vst.msk [vmem:[#allocation0] sm:$0x1] %vm102_vm15, %v101_v44  }
  0x90   :  { %v121_v47 = vpop.permute.xlu1 %120  }
  0x91   :  { %123 = vst.msk [vmem:[#allocation0] sm:$0x1] %vm122_vm2, %v121_v47  }
  0x92   :  { %v114_v46 = vpop.permute.xlu0 %113  }
  0x93   :  { %117 = vst.msk [vmem:[#allocation0 + $0x8] sm:$0x1] %vm115_vm1, %v114_v46  }
  0x94   :  { %v134_v49 = vpop.permute.xlu1 %133  }
  0x95   :  { %137 = vst.msk [vmem:[#allocation0 + $0x8] sm:$0x1] %vm135_vm4, %v134_v49  }
  0x96   :  { %v127_v48 = vpop.permute.xlu0 %126  }
  0x97   :  { %130 = vst.msk [vmem:[#allocation0 + $0x10] sm:$0x1] %vm128_vm3, %v127_v48  }
  0x98   :  { %v147_v51 = vpop.permute.xlu1 %146  }
  0x99   :  { %150 = vst.msk [vmem:[#allocation0 + $0x10] sm:$0x1] %vm148_vm6, %v147_v51  }
  0x9a   :  { %v141_v50 = vpop.permute.xlu0 %140  }
  0x9b   :  { %143 = vst.msk [vmem:[#allocation0] sm:$0x1] %vm142_vm5, %v141_v50  }
  0x9c   :  { %v161_v53 = vpop.permute.xlu1 %160  }
  0x9d   :  { %163 = vst.msk [vmem:[#allocation0] sm:$0x1] %vm162_vm8, %v161_v53  }
  0x9e   :  { %v154_v52 = vpop.permute.xlu0 %153  }
  0x9f   :  { %157 = vst.msk [vmem:[#allocation0 + $0x8] sm:$0x1] %vm155_vm7, %v154_v52  }
  0xa0   :  { %v174_v55 = vpop.permute.xlu1 %173  }
  0xa1   :  { %177 = vst.msk [vmem:[#allocation0 + $0x8] sm:$0x1] %vm175_vm10, %v174_v55  }
  0xa2   :  { %v167_v54 = vpop.permute.xlu0 %166  }
  0xa3   :  { %170 = vst.msk [vmem:[#allocation0 + $0x10] sm:$0x1] %vm168_vm9, %v167_v54  }
  0xa4   :  { %v187_v57 = vpop.permute.xlu1 %186  }
  0xa5   :  { %190 = vst.msk [vmem:[#allocation0 + $0x10] sm:$0x1] %vm188_vm12, %v187_v57  }
  0xa6   :  { %v181_v56 = vpop.permute.xlu0 %180  }
  0xa7   :  { %183 = vst.msk [vmem:[#allocation0] sm:$0x1] %vm182_vm11, %v181_v56  }
  0xaa   :  { %v194_v58 = vpop.permute.xlu0 %193  }
  0xab   :  { %197 = vst.msk [vmem:[#allocation0 + $0x8] sm:$0x1] %vm195_vm13, %v194_v58  }
  0xac   :  { %v213_v60 = vld [vmem:[#allocation0 + $0x10] sm:$0x1] }
  0xad   :  { %250 = vst [vmem:[%s419_s1 + $0x2] sm:$0x1] %v213_v60 }
  0xae   :  { %v202_v59 = vld [vmem:[#allocation0] sm:$0x1] }
  0xaf   :  { %205 = vst [vmem:[%s419_s1] sm:$0x1] %v202_v59 }
  0xb2   :  { %v207_v61 = vld [vmem:[#allocation0 + $0x8] sm:$0x1] }
  0xb3   :  { %249 = vst [vmem:[%s419_s1 + $0x1] sm:$0x1] %v207_v61 }

// kernel: tile.13
= control target key start
LH: loop header
LB: loop body
LE: loop exit
PB: predicated region body
PF: predicated region fallthrough
CT: control target
= control target key end

     0   :  { %vm8_vm0 = vcmask 64512   ;;  %s40_s8 = smov 8   ;;  %s41_s9 = smov 16   ;;  %vm14_vm1 = vcmask 261312   ;;  %vm20_vm2 = vcmask 195712   ;;  %vm26_vm3 = vcmask 130112   ;;  %s58_s0 = inlined_call_operand.vmem [shape: f32[4,8], index: 0, kind: input, shape index: {}]   ;;  %s59_s1 = inlined_call_operand.vmem [shape: f32[32], index: 1, kind: output, shape index: {}]  }
   0x1   :  { %v5_v0 = vld [vmem:[%s58_s0] sm:$0xf]  ;;  %s39_s0 = smov 24  }
   0x2   :  { %6 = vst [vmem:[#allocation1] sm:$0xf] %v5_v0 }
   0x9   :  { %v11_v1 = vld [vmem:[#allocation1 + $0x3] sm:$0x1]   ;;  %v23_v2 = vld [vmem:[#allocation1 + $0x1] sm:$0x1]   ;;  %v7_v3 = vld [vmem:[#allocation1] sm:$0x1]  }
   0xa   :  { %12 = vrot.lane.b32.xlu0 %v11_v1, %s39_s0  ;;  %24 = vrot.lane.b32.xlu1 %v23_v2, %s40_s8  ;;  %v17_v4 = vld [vmem:[#allocation1 + $0x2] sm:$0x1]   ;;  %9 = vst.msk [vmem:[#allocation0] sm:$0x1] %vm8_vm0, %v7_v3  }
   0xe   :  { %18 = vrot.lane.b32.xlu0 %v17_v4, %s41_s9 }
  0x7c   :  { %v13_v5 = vpop.permute.xlu0 %12   ;;  %v25_v6 = vpop.permute.xlu1 %24  }
  0x7d   :  { %15 = vst.msk [vmem:[#allocation0] sm:$0x1] %vm14_vm1, %v13_v5  }
  0x80   :  { %v19_v7 = vpop.permute.xlu0 %18  }
  0x81   :  { %21 = vst.msk [vmem:[#allocation0] sm:$0x1] %vm20_vm2, %v19_v7  }
  0x82   :  { %27 = vst.msk [vmem:[#allocation0] sm:$0x1] %vm26_vm3, %v25_v6  }
  0x89   :  { %v32_v8 = vld [vmem:[#allocation0] sm:$0x1] }
  0x8a   :  { %35 = vst [vmem:[%s59_s1] sm:$0x1] %v32_v8 }

// kernel: tile.14
= control target key start
LH: loop header
LB: loop body
LE: loop exit
PB: predicated region body
PF: predicated region fallthrough
CT: control target
= control target key end

     0   :  { %s28_s0 = inlined_call_operand.vmem [shape: f32[32], index: 0, kind: input, shape index: {}]   ;;  %s29_s1 = inlined_call_operand.vmem [shape: f32[10,32], index: 1, kind: output, shape index: {}]  }
   0x1   :  { %v4_v0 = vld [vmem:[%s28_s0] ss:$0 sm:$0xff] }
   0x2   :  { %5 = vst [vmem:[%s29_s1] sm:$0xff] %v4_v0  ;;  %8 = vst [vmem:[%s29_s1 + $0x8] sm:$0xff] %v4_v0 }

// kernel: tile.15
= control target key start
LH: loop header
LB: loop body
LE: loop exit
PB: predicated region body
PF: predicated region fallthrough
CT: control target
= control target key end

     0   :  { %s6_s6 = smov 3  ;;  %s13_s11 = smov 3  ;;  %vm3_vm0 = vcmask 261120   ;;  %vm10_vm1 = vcmask 1048320   ;;  %vm17_vm2 = vcmask 785920   ;;  %vm23_vm3 = vcmask 523520   ;;  %s89_s0 = inlined_call_operand.vmem [shape: f32[10,32], index: 0, kind: input, shape index: {}]   ;;  %s90_s1 = inlined_call_operand.vmem [shape: f32[1,320], index: 1, kind: output, shape index: {}]  }
   0x1   :  { %v49_v0 = vld [vmem:[%s89_s0 + $0x1] ss:$4 sm:$0x7]   ;;  %v47_v1 = vld [vmem:[%s89_s0 + $0x3] ss:$4 sm:%s6_s6]   ;;  %s55_s12 = smov 96  }
   0x2   :  { %8 = vrot.lane.b32.xlu0 %v47_v1, %s55_s12  ;;  %v2_v2 = vld [vmem:[%s89_s0] ss:$4 sm:$0x7]   ;;  %v48_v3 = vld [vmem:[%s89_s0 + $0x2] ss:$4 sm:%s13_s11]   ;;  %s56_s0 = smov 32  }
   0x3   :  { %21 = vrot.lane.b32.xlu1 %v49_v0, %s56_s0  ;;  %4 = vst.msk [vmem:[#allocation0] ss:$8 sm:$0x7] %vm3_vm0, %v2_v2   ;;  %s57_s17 = smov 64  }
   0x6   :  { %15 = vrot.lane.b32.xlu0 %v48_v3, %s57_s17 }
  0x74   :  { %v9_v4 = vpop.permute.xlu0 %8  }
  0x75   :  { %11 = vst.msk [vmem:[#allocation0] ss:$8 sm:$0x3] %vm10_vm1, %v9_v4   ;;  %v22_v5 = vpop.permute.xlu1 %21  }
  0x78   :  { %v16_v6 = vpop.permute.xlu0 %15  }
  0x79   :  { %18 = vst.msk [vmem:[#allocation0] ss:$8 sm:$0x3] %vm17_vm2, %v16_v6  }
  0x7a   :  { %24 = vst.msk [vmem:[#allocation0] ss:$8 sm:$0x7] %vm23_vm3, %v22_v5  }
  0x81   :  { %v29_v7 = vld [vmem:[#allocation0] sm:$0x1]  ;;  %v34_v8 = vld [vmem:[#allocation0 + $0x8] sm:$0x1]  ;;  %v40_v9 = vld [vmem:[#allocation0 + $0x10] sm:$0x1] }
  0x82   :  { %32 = vst [vmem:[%s90_s1] sm:$0x1] %v29_v7  ;;  %50 = vst [vmem:[%s90_s1 + $0x1] sm:$0x1] %v34_v8 }
  0x83   :  { %51 = vst [vmem:[%s90_s1 + $0x2] sm:$0x1] %v40_v9 }

// kernel: packed_net_forward.1
= control target key start
LH: loop header
LB: loop body
LE: loop exit
PB: predicated region body
PF: predicated region fallthrough
CT: control target
= control target key end

     0   :  { %s8340_s17 = smov 0   ;;  %s11780_s0 = inlined_call_operand.vmem [shape: bf16[2,4,8,96], index: 0, kind: input, shape index: {}]   ;;  %s11781_s1 = inlined_call_operand.vmem [shape: bf16[5,96,336], index: 1, kind: input, shape index: {}]   ;;  %s11782_s2 = inlined_call_operand.vmem [shape: f32[1,336], index: 2, kind: input, shape index: {}]   ;;  %s11783_s3 = inlined_call_operand.vmem [shape: bf16[5,168,320], index: 3, kind: input, shape index: {}]   ;;  %s11784_s4 = inlined_call_operand.vmem [shape: f32[1,320], index: 4, kind: input, shape index: {}]   ;;  %s11785_s5 = inlined_call_operand.vmem [shape: bf16[5,160,240], index: 5, kind: input, shape index: {}]   ;;  %s11786_s6 = inlined_call_operand.vmem [shape: f32[1,240], index: 6, kind: input, shape index: {}]   ;;  %s11787_s7 = inlined_call_operand.vmem [shape: bf16[240,168], index: 7, kind: input, shape index: {}]   ;;  %s11788_s8 = inlined_call_operand.vmem [shape: f32[1,168], index: 8, kind: input, shape index: {}]   ;;  %s11789_s9 = inlined_call_operand.vmem [shape: bf16[168,160], index: 9, kind: input, shape index: {}]   ;;  %s11790_s10 = inlined_call_operand.vmem [shape: f32[1,160], index: 10, kind: input, shape index: {}]   ;;  %s11791_s11 = inlined_call_operand.vmem [shape: f32[2,1,160], index: 11, kind: output, shape index: {}]  }
   0x1 LB: > { %s6220_s18 = sadd.s32 4294967295, %s8272_s17   ;;  %p6224_p0 = scmp.ge.s32.totalorder %s8272_s17, 1  ;;  %s8272_s17 = sphi %s8340_s17, %s21_s17  }
   0x2   : > { %p337_p1 = scmp.lt.s32.totalorder %s8272_s17, 3 }
   0x4   : > { %p338_p2 = pnand %p6224_p0, %p337_p1 }
   0x6   : > { %341 = sbr.rel (%p338_p2) target bundleno = 2235 (0x8bb), region = 64 }
   0xb   : > { %v7568_v0 = vld [vmem:[%s11781_s1 + $0x10c] ss:$12 sps:$4 sm:$0xff]   ;;  %v11804_v1 = vmov 0.0   ;;  %v7570_v2 = vld [vmem:[%s11781_s1 + $0x110] ss:$12 sps:$4 sm:$0xff]   ;;  %vm8275_vm0 = vmmov 0  }
   0xc   : > { %7204 = vmatprep.subr.bf16.mxu1 %v11804_v1  ;;  %7216 = vmatprep.mubr.msk.bf16.mxu1 %vm8275_vm0, %v11804_v1  ;;  %v7571_v3 = vld [vmem:[%s11781_s1 + $0x108] ss:$12 sps:$4 sm:$0xff]   ;;  %v11792_v5 = vmov 0   ;;  %v7574_v6 = vld [vmem:[%s11781_s1 + $0xf8] ss:$12 sps:$4 sm:$0xff]   ;;  %p376_p3 = scmp.lt.s32.totalorder %s6220_s18, 1 }
   0xd   : > { %543 = vmatprep.subr.bf16.mxu0 %v7568_v0  ;;  %7205 = vmatpush3.bf16.msra.mxu1 %v7570_v2  ;;  %v7572_v4 = vld [vmem:[%s11781_s1 + $0xf4] ss:$12 sps:$4 sm:$0xff]   ;;  %v7575_v7 = vld [vmem:[%s11781_s1 + $0xf0] ss:$12 sps:$4 sm:$0xff]   ;;  %v7579_v10 = vld [vmem:[%s11781_s1 + $0xd8] ss:$12 sps:$4 sm:$0xff]  }
   0xe   : > { %571 = vmatprep.mubr.bf16.mxu0 %v11792_v5  ;;  %544 = vmatpush1.bf16.msra.mxu0 %v7571_v3  ;;  %v7576_v8 = vld [vmem:[%s11781_s1 + $0xdc] ss:$12 sps:$4 sm:$0xff]   ;;  %v7578_v9 = vld [vmem:[%s11781_s1 + $0xe0] ss:$12 sps:$4 sm:$0xff]   ;;  %v7580_v11 = vld [vmem:[%s11781_s1 + $0xc4] ss:$12 sps:$4 sm:$0xff]  }
   0xf   : > { %7206 = vmatprep.subr.bf16.mxu1 %v11804_v1  ;;  %545 = vmatprep.subr.bf16.mxu0 %v7572_v4  ;;  %v7582_v12 = vld [vmem:[%s11781_s1 + $0xc8] ss:$12 sps:$4 sm:$0xff]   ;;  %v7583_v13 = vld [vmem:[%s11781_s1 + $0xc0] ss:$12 sps:$4 sm:$0xff]   ;;  %s12321_s18 = smov (!%p376_p3, %s6220_s18), 1  ;;  %vm535_vm1 = vcmask 785408  }
  0x10   : > { %v7584_v14 = vld [vmem:[%s11781_s1 + $0xac] ss:$12 sps:$4 sm:$0xff]   ;;  %v7586_v15 = vld [vmem:[%s11781_s1 + $0xb0] ss:$12 sps:$4 sm:$0xff]   ;;  %v7587_v16 = vld [vmem:[%s11781_s1 + $0xa8] ss:$12 sps:$4 sm:$0xff]  }
  0x11   : > { %7207 = vmatpush3.bf16.msra.mxu1 %v7574_v6  ;;  %v7588_v17 = vld [vmem:[%s11781_s1 + $0x94] ss:$12 sps:$4 sm:$0xff]   ;;  %s7063_s15 = sshll.u32 %s12321_s18, 4  ;;  %v7590_v18 = vld [vmem:[%s11781_s1 + $0x98] ss:$12 sps:$4 sm:$0xff]   ;;  %s8277_s26 = smov 88  }
  0x12   : > { %546 = vmatpush1.bf16.msra.mxu0 %v7575_v7  ;;  %7208 = vmatprep.subr.bf16.mxu1 %v11804_v1  ;;  %v7591_v19 = vld [vmem:[%s11781_s1 + $0x90] ss:$12 sps:$4 sm:$0xff]   ;;  %s8421_s24 = scalar_lea.vmem %s11780_s0, %s7063_s15  ;;  %v7595_v22 = vld [vmem:[%s11781_s1 + $0x80] ss:$12 sps:$4 sm:$0xff]   ;;  %v7596_v23 = vld [vmem:[%s11781_s1 + $0x78] ss:$12 sps:$4 sm:$0xff]  }
  0x13   : > { %547 = vmatprep.subr.bf16.mxu0 %v7576_v8  ;;  %v7593_v20 = vld [vmem:[%s11781_s1 + $0x7c] ss:$12 sps:$4 sm:$0xff]   ;;  %v387_v21 = vld [vmem:[%s8421_s24 + $0x4] sm:$0xf]  ;;  %v7600_v26 = vld [vmem:[%s11781_s1 + $0x60] ss:$12 sps:$4 sm:$0xff]  }
  0x14   : > { %v7597_v24 = vld [vmem:[%s11781_s1 + $0x64] ss:$12 sps:$4 sm:$0xff]   ;;  %v7599_v25 = vld [vmem:[%s11781_s1 + $0x68] ss:$12 sps:$4 sm:$0xff]   ;;  %v7601_v27 = vld [vmem:[%s11781_s1 + $0x4c] ss:$12 sps:$4 sm:$0xff]  }
  0x15   : > { %7209 = vmatpush3.bf16.msra.mxu1 %v7578_v9  ;;  %v7603_v28 = vld [vmem:[%s11781_s1 + $0x50] ss:$12 sps:$4 sm:$0xff]   ;;  %v7604_v29 = vld [vmem:[%s11781_s1 + $0x48] ss:$12 sps:$4 sm:$0xff]   ;;  %v7607_v31 = vld [vmem:[%s11781_s1 + $0x38] ss:$12 sps:$4 sm:$0xff]  }
  0x16   : > { %548 = vmatpush1.bf16.msra.mxu0 %v7579_v10  ;;  %7210 = vmatprep.subr.bf16.mxu1 %v11804_v1  ;;  %v7605_v30 = vld [vmem:[%s11781_s1 + $0x34] ss:$12 sps:$4 sm:$0xff]   ;;  %v7608_v32 = vld [vmem:[%s11781_s1 + $0x30] ss:$12 sps:$4 sm:$0xff]   ;;  %v7612_v35 = vld [vmem:[%s11781_s1 + $0x18] ss:$12 sps:$4 sm:$0xff]  }
  0x17   : > { %549 = vmatprep.subr.bf16.mxu0 %v7580_v11  ;;  %v7609_v33 = vld [vmem:[%s11781_s1 + $0x1c] ss:$12 sps:$4 sm:$0xff]   ;;  %v7611_v34 = vld [vmem:[%s11781_s1 + $0x20] ss:$12 sps:$4 sm:$0xff]   ;;  %v7613_v36 = vld [vmem:[%s11781_s1 + $0x4] ss:$12 sps:$4 sm:$0xff]  }
  0x18   : > { %v7615_v37 = vld [vmem:[%s11781_s1 + $0x8] ss:$12 sps:$4 sm:$0xff]   ;;  %v7616_v38 = vld [vmem:[%s11781_s1] ss:$12 sps:$4 sm:$0xff]   ;;  %v7621_v42 = vld [vmem:[%s11781_s1 + $0x198] ss:$12 sps:$4 sm:$0xff]  }
  0x19   : > { %7211 = vmatpush3.bf16.msra.mxu1 %v7582_v12  ;;  %v7618_v39 = vld [vmem:[%s11781_s1 + $0x19c] ss:$12 sps:$4 sm:$0xff]   ;;  %v8493_v40 = vld [vmem:[%s8421_s24] sm:$0xf]  ;;  %v7622_v43 = vld [vmem:[%s11781_s1 + $0x184] ss:$12 sps:$4 sm:$0xff]  }
  0x1a   : > { %550 = vmatpush1.bf16.msra.mxu0 %v7583_v13  ;;  %7212 = vmatprep.subr.bf16.mxu1 %v11804_v1  ;;  %v7620_v41 = vld [vmem:[%s11781_s1 + $0x1a0] ss:$12 sps:$4 sm:$0xff]   ;;  %v7624_v44 = vld [vmem:[%s11781_s1 + $0x188] ss:$12 sps:$4 sm:$0xff]   ;;  %v7628_v47 = vld [vmem:[%s11781_s1 + $0x170] ss:$12 sps:$4 sm:$0xff]  }
  0x1b   : > { %551 = vmatprep.subr.bf16.mxu0 %v7584_v14  ;;  %v7625_v45 = vld [vmem:[%s11781_s1 + $0x180] ss:$12 sps:$4 sm:$0xff]   ;;  %v7629_v48 = vld [vmem:[%s11781_s1 + $0x168] ss:$12 sps:$4 sm:$0xff]   ;;  %v7632_v50 = vld [vmem:[%s11781_s1 + $0x158] ss:$12 sps:$4 sm:$0xff]  }
  0x1c   : > { %v7626_v46 = vld [vmem:[%s11781_s1 + $0x16c] ss:$12 sps:$4 sm:$0xff]   ;;  %v7630_v49 = vld [vmem:[%s11781_s1 + $0x154] ss:$12 sps:$4 sm:$0xff]   ;;  %v7633_v51 = vld [vmem:[%s11781_s1 + $0x150] ss:$12 sps:$4 sm:$0xff]  }
  0x1d   : > { %7213 = vmatpush3.bf16.msra.mxu1 %v7586_v15  ;;  %v7634_v52 = vld [vmem:[%s11781_s1 + $0x13c] ss:$12 sps:$4 sm:$0xff]   ;;  %v7636_v53 = vld [vmem:[%s11781_s1 + $0x140] ss:$12 sps:$4 sm:$0xff]   ;;  %v7637_v54 = vld [vmem:[%s11781_s1 + $0x138] ss:$12 sps:$4 sm:$0xff]  }
  0x1e   : > { %552 = vmatpush1.bf16.msra.mxu0 %v7587_v16  ;;  %7214 = vmatprep.subr.bf16.mxu1 %v11804_v1  ;;  %v7638_v55 = vld [vmem:[%s11781_s1 + $0x124] ss:$12 sps:$4 sm:$0xff]   ;;  %v7640_v56 = vld [vmem:[%s11781_s1 + $0x128] ss:$12 sps:$4 sm:$0xff]   ;;  %v7641_v57 = vld [vmem:[%s11781_s1 + $0x120] ss:$12 sps:$4 sm:$0xff]  }
  0x1f   : > { %553 = vmatprep.subr.bf16.mxu0 %v7588_v17  ;;  %v7642_v58 = vld [vmem:[%s11781_s1 + $0x22c] ss:$12 sps:$4 sm:$0xff]   ;;  %v8563_v59 = vld [vmem:[%s8421_s24 + $0x8] sm:$0xf]  ;;  %v7644_v60 = vld [vmem:[%s11781_s1 + $0x230] ss:$12 sps:$4 sm:$0xff]  }
  0x20   : > { %v7645_v61 = vld [vmem:[%s11781_s1 + $0x228] ss:$12 sps:$4 sm:$0xff]   ;;  %v7648_v63 = vld [vmem:[%s11781_s1 + $0x218] ss:$12 sps:$4 sm:$0xff]   ;;  %v7649_v0 = vld [vmem:[%s11781_s1 + $0x210] ss:$12 sps:$4 sm:$0xff]  }
  0x21   : > { %7215 = vmatpush3.bf16.msra.mxu1 %v7590_v18  ;;  %v7646_v62 = vld [vmem:[%s11781_s1 + $0x214] ss:$12 sps:$4 sm:$0xff]   ;;  %v7650_v2 = vld [vmem:[%s11781_s1 + $0x1fc] ss:$12 sps:$4 sm:$0xff]   ;;  %v7653_v4 = vld [vmem:[%s11781_s1 + $0x1f8] ss:$12 sps:$4 sm:$0xff]  }
  0x22   : > { %554 = vmatpush1.bf16.msra.mxu0 %v7591_v19  ;;  %7220 = vmatprep.subr.bf16.mxu1 %v11804_v1  ;;  %v7652_v3 = vld [vmem:[%s11781_s1 + $0x200] ss:$12 sps:$4 sm:$0xff]   ;;  %v8601_v6 = vld [vmem:[%s11781_s1 + $0x1e4] ss:$12 sps:$4 sm:$0xff]   ;;  %v8607_v7 = vld [vmem:[%s11781_s1 + $0x1e8] ss:$12 sps:$4 sm:$0xff]  }
  0x23   : > { %723 = vmatprep.subr.bf16.mxu0 %v7593_v20  ;;  %v8612_v8 = vld [vmem:[%s11781_s1 + $0x1e0] ss:$12 sps:$4 sm:$0xff]   ;;  %v8624_v10 = vld [vmem:[%s11781_s1 + $0x1d0] ss:$12 sps:$4 sm:$0xff]   ;;  %v8629_v11 = vld [vmem:[%s11781_s1 + $0x1c8] ss:$12 sps:$4 sm:$0xff]  }
  0x24   : > { %7217 = vmatmul.mubr.msk.bf16.vlgmr.msra.gmra.mxu1 %vm535_vm1, %v387_v21  ;;  %v8617_v9 = vld [vmem:[%s11781_s1 + $0x1cc] ss:$12 sps:$4 sm:$0xff]   ;;  %v8635_v12 = vld [vmem:[%s11781_s1 + $0x1b4] ss:$12 sps:$4 sm:$0xff]   ;;  %v8648_v14 = vld [vmem:[%s11781_s1 + $0x1b0] ss:$12 sps:$4 sm:$0xff]  }
  0x25   : > { %6270 = vmatmul.mubr.msk.bf16.vlgmr.msra.gmra.mxu0 %vm535_vm1, %v387_v21  ;;  %7221 = vmatpush3.bf16.msra.mxu1 %v7595_v22  ;;  %v8643_v13 = vld [vmem:[%s11781_s1 + $0x1b8] ss:$12 sps:$4 sm:$0xff]   ;;  %v8654_v15 = vld [vmem:[%s11781_s1 + $0x2bc] ss:$12 sps:$4 sm:$0xff]   ;;  %v8659_v16 = vld [vmem:[%s8421_s24 + $0xc] sm:$0xf] }
  0x26   : > { %724 = vmatpush1.bf16.msra.mxu0 %v7596_v23  ;;  %7222 = vmatprep.subr.bf16.mxu1 %v11804_v1  ;;  %v8665_v17 = vld [vmem:[%s11781_s1 + $0x2c0] ss:$12 sps:$4 sm:$0xff]   ;;  %v8670_v18 = vld [vmem:[%s11781_s1 + $0x2b8] ss:$12 sps:$4 sm:$0xff]   ;;  %v8684_v20 = vld [vmem:[%s11781_s1 + $0x2a8] ss:$12 sps:$4 sm:$0xff]  }
  0x27   : > { %725 = vmatprep.subr.bf16.mxu0 %v7597_v24  ;;  %7232 = vmatprep.mubr.msk.bf16.mxu1 %vm8275_vm0, %v11804_v1  ;;  %v8676_v19 = vld [vmem:[%s11781_s1 + $0x2a4] ss:$12 sps:$4 sm:$0xff]   ;;  %v8691_v21 = vld [vmem:[%s11781_s1 + $0x2a0] ss:$12 sps:$4 sm:$0xff]   ;;  %v8714_v24 = vld [vmem:[%s11781_s1 + $0x288] ss:$12 sps:$4 sm:$0xff]  }
  0x28   : > { %751 = vmatprep.mubr.bf16.mxu0 %v11792_v5  ;;  %v8699_v22 = vld [vmem:[%s11781_s1 + $0x28c] ss:$12 sps:$4 sm:$0xff]   ;;  %v8707_v23 = vld [vmem:[%s11781_s1 + $0x290] ss:$12 sps:$4 sm:$0xff]   ;;  %vm1463_vm2 = vcmask 719872   ;;  %vm3066_vm3 = vcmask 1043456  }
  0x29   : > { %7223 = vmatpush3.bf16.msra.mxu1 %v7599_v25  ;;  %v8721_v25 = vld [vmem:[%s11781_s1 + $0x274] ss:$12 sps:$4 sm:$0xff]   ;;  %vm3062_vm4 = vcmask 326656   ;;  %s8278_s29 = smov 96   ;;  %vm4997_vm5 = vcmask 261120   ;;  %vm5907_vm6 = vcmask 916480  }
  0x2a   : > { %726 = vmatpush1.bf16.msra.mxu0 %v7600_v26  ;;  %7224 = vmatprep.subr.bf16.mxu1 %v11804_v1  ;;  %v8729_v26 = vld [vmem:[%s11781_s1 + $0x278] ss:$12 sps:$4 sm:$0xff]   ;;  %s6227_s19 = sshll.u32 %s12321_s18, 1 }
  0x2b   : > { %727 = vmatprep.subr.bf16.mxu0 %v7601_v27  ;;  %v6404_v27 = vcombine.low %v8493_v40, %v8493_v40 }
  0x2d   : > { %7225 = vmatpush3.bf16.msra.mxu1 %v7603_v28  ;;  %v8736_v28 = vld [vmem:[%s11781_s1 + $0x270] ss:$12 sps:$4 sm:$0xff]  }
  0x2e   : > { %728 = vmatpush1.bf16.msra.mxu0 %v7604_v29  ;;  %7226 = vmatprep.subr.bf16.mxu1 %v11804_v1  ;;  %v8742_v29 = vld [vmem:[%s11781_s1 + $0x25c] ss:$12 sps:$4 sm:$0xff]  }
  0x2f   : > { %729 = vmatprep.subr.bf16.mxu0 %v7605_v30  ;;  %v8750_v30 = vld [vmem:[%s11781_s1 + $0x260] ss:$12 sps:$4 sm:$0xff]  }
  0x31   : > { %7227 = vmatpush3.bf16.msra.mxu1 %v7607_v31  ;;  %v1247_v31 = vshll.u32 %v6404_v27, 16 }
  0x32   : > { %730 = vmatpush1.bf16.msra.mxu0 %v7608_v32  ;;  %7228 = vmatprep.subr.bf16.mxu1 %v11804_v1  ;;  %v8755_v32 = vld [vmem:[%s11781_s1 + $0x258] ss:$12 sps:$4 sm:$0xff]  }
  0x33   : > { %731 = vmatprep.subr.bf16.mxu0 %v7609_v33  ;;  %v8761_v33 = vld [vmem:[%s11781_s1 + $0x244] ss:$12 sps:$4 sm:$0xff]  }
  0x35   : > { %7229 = vmatpush3.bf16.msra.mxu1 %v7611_v34  ;;  %v1245_v34 = vshrl.u32 %v6404_v27, 16  ;;  %v8985_v27 = vld [vmem:[%s11781_s1 + $0x30] ss:$12 sps:$4 sm:$0xff]  }
  0x36   : > { %732 = vmatpush1.bf16.msra.mxu0 %v7612_v35  ;;  %7230 = vmatprep.subr.bf16.mxu1 %v11804_v1  ;;  %v8769_v35 = vld [vmem:[%s11781_s1 + $0x248] ss:$12 sps:$4 sm:$0xff]   ;;  %11994 = vst [vmem:[#allocation2_spill] sm:$0xff] %v8985_v27 }
  0x37   : > { %733 = vmatprep.subr.bf16.mxu0 %v7613_v36  ;;  %v1249_v36 = vrot.slane %v1247_v31, 1  ;;  %v8992_v31 = vld [vmem:[%s11781_s1 + $0x1c] ss:$12 sps:$4 sm:$0xff]  }
  0x38   : > { %11995 = vst [vmem:[#allocation3_spill] sm:$0xff] %v8992_v31 }
  0x39   : > { %7231 = vmatpush3.bf16.msra.mxu1 %v7615_v37  ;;  %v8774_v37 = vld [vmem:[%s11781_s1 + $0x240] ss:$12 sps:$4 sm:$0xff]  }
  0x3a   : > { %734 = vmatpush1.bf16.msra.mxu0 %v7616_v38  ;;  %7236 = vmatprep.subr.bf16.mxu1 %v11804_v1  ;;  %v8780_v38 = vor.u32 %v1249_v36, %v1245_v34  ;;  %v8998_v34 = vld [vmem:[%s11781_s1 + $0x20] ss:$12 sps:$4 sm:$0xff]   ;;  %v9004_v36 = vld [vmem:[%s11781_s1 + $0x18] ss:$12 sps:$4 sm:$0xff]  }
  0x3b   : > { %928 = vmatprep.subr.bf16.mxu0 %v7618_v39  ;;  %v8788_v39 = vld [vmem:[%s11781_s1 + $0x10c] ss:$12 sps:$4 sm:$0xff]   ;;  %11996 = vst [vmem:[#allocation4_spill] sm:$0xff] %v8998_v34  ;;  %11997 = vst [vmem:[#allocation5_spill] sm:$0xff] %v9004_v36 }
  0x3c   : > { %7233 = vmatmul.mubr.msk.bf16.vlgmr.msra.gmra.mxu1 %vm535_vm1, %v8493_v40 }
  0x3d   : > { %6290 = vmatmul.mubr.msk.bf16.vlgmr.msra.gmra.mxu0 %vm535_vm1, %v8493_v40  ;;  %7237 = vmatpush3.bf16.msra.mxu1 %v7620_v41  ;;  %v8798_v40 = vld [vmem:[%s11781_s1 + $0x110] ss:$12 sps:$4 sm:$0xff]   ;;  %v8804_v41 = vld [vmem:[%s11781_s1 + $0x108] ss:$12 sps:$4 sm:$0xff]  }
  0x3e   : > { %929 = vmatpush1.bf16.msra.mxu0 %v7621_v42  ;;  %7238 = vmatprep.subr.bf16.mxu1 %v11804_v1  ;;  %v8811_v42 = vld [vmem:[%s11781_s1 + $0xf4] ss:$12 sps:$4 sm:$0xff]  }
  0x3f   : > { %930 = vmatprep.subr.bf16.mxu0 %v7622_v43  ;;  %7248 = vmatprep.mubr.msk.bf16.mxu1 %vm8275_vm0, %v11804_v1  ;;  %v8820_v43 = vld [vmem:[%s11781_s1 + $0xf8] ss:$12 sps:$4 sm:$0xff]  }
  0x40   : > { %956 = vmatprep.mubr.bf16.mxu0 %v11792_v5 }
  0x41   : > { %7239 = vmatpush3.bf16.msra.mxu1 %v7624_v44  ;;  %v8826_v44 = vld [vmem:[%s11781_s1 + $0xf0] ss:$12 sps:$4 sm:$0xff]  }
  0x42   : > { %931 = vmatpush1.bf16.msra.mxu0 %v7625_v45  ;;  %7240 = vmatprep.subr.bf16.mxu1 %v11804_v1  ;;  %v8833_v45 = vld [vmem:[%s11781_s1 + $0xdc] ss:$12 sps:$4 sm:$0xff]  }
  0x43   : > { %932 = vmatprep.subr.bf16.mxu0 %v7626_v46  ;;  %v8839_v46 = vld [vmem:[%s11781_s1 + $0xe0] ss:$12 sps:$4 sm:$0xff]  }
  0x45   : > { %7241 = vmatpush3.bf16.msra.mxu1 %v7628_v47  ;;  %v8845_v47 = vld [vmem:[%s11781_s1 + $0xd8] ss:$12 sps:$4 sm:$0xff]  }
  0x46   : > { %933 = vmatpush1.bf16.msra.mxu0 %v7629_v48  ;;  %7242 = vmatprep.subr.bf16.mxu1 %v11804_v1  ;;  %v8852_v48 = vld [vmem:[%s11781_s1 + $0xc4] ss:$12 sps:$4 sm:$0xff]  }
  0x47   : > { %934 = vmatprep.subr.bf16.mxu0 %v7630_v49  ;;  %v8858_v49 = vld [vmem:[%s11781_s1 + $0xc8] ss:$12 sps:$4 sm:$0xff]  }
  0x49   : > { %7243 = vmatpush3.bf16.msra.mxu1 %v7632_v50  ;;  %v8864_v50 = vld [vmem:[%s11781_s1 + $0xc0] ss:$12 sps:$4 sm:$0xff]  }
  0x4a   : > { %935 = vmatpush1.bf16.msra.mxu0 %v7633_v51  ;;  %7244 = vmatprep.subr.bf16.mxu1 %v11804_v1  ;;  %v8871_v51 = vld [vmem:[%s11781_s1 + $0xac] ss:$12 sps:$4 sm:$0xff]  }
  0x4b   : > { %936 = vmatprep.subr.bf16.mxu0 %v7634_v52  ;;  %v8877_v52 = vld [vmem:[%s11781_s1 + $0xb0] ss:$12 sps:$4 sm:$0xff]  }
  0x4d   : > { %7245 = vmatpush3.bf16.msra.mxu1 %v7636_v53  ;;  %v8883_v53 = vld [vmem:[%s11781_s1 + $0xa8] ss:$12 sps:$4 sm:$0xff]  }
  0x4e   : > { %937 = vmatpush1.bf16.msra.mxu0 %v7637_v54  ;;  %7246 = vmatprep.subr.bf16.mxu1 %v11804_v1  ;;  %v8890_v54 = vld [vmem:[%s11781_s1 + $0x94] ss:$12 sps:$4 sm:$0xff]  }
  0x4f   : > { %938 = vmatprep.subr.bf16.mxu0 %v7638_v55  ;;  %v8896_v55 = vld [vmem:[%s11781_s1 + $0x98] ss:$12 sps:$4 sm:$0xff]  }
  0x51   : > { %7247 = vmatpush3.bf16.msra.mxu1 %v7640_v56  ;;  %v8902_v56 = vld [vmem:[%s11781_s1 + $0x90] ss:$12 sps:$4 sm:$0xff]  }
  0x52   : > { %939 = vmatpush1.bf16.msra.mxu0 %v7641_v57  ;;  %7252 = vmatprep.subr.bf16.mxu1 %v11804_v1  ;;  %v8909_v57 = vld [vmem:[%s11781_s1 + $0x7c] ss:$12 sps:$4 sm:$0xff]  }
  0x53   : > { %1136 = vmatprep.subr.bf16.mxu0 %v7642_v58  ;;  %v8919_v58 = vld [vmem:[%s11781_s1 + $0x80] ss:$12 sps:$4 sm:$0xff]  }
  0x54   : > { %7249 = vmatmul.mubr.msk.bf16.vlgmr.msra.gmra.mxu1 %vm535_vm1, %v8563_v59 }
  0x55   : > { %6334 = vmatmul.mubr.msk.bf16.vlgmr.msra.gmra.mxu0 %vm535_vm1, %v8563_v59  ;;  %7253 = vmatpush3.bf16.msra.mxu1 %v7644_v60  ;;  %v8925_v60 = vld [vmem:[%s11781_s1 + $0x78] ss:$12 sps:$4 sm:$0xff]  }
  0x56   : > { %1137 = vmatpush1.bf16.msra.mxu0 %v7645_v61  ;;  %7254 = vmatprep.subr.bf16.mxu1 %v11804_v1  ;;  %v8941_v61 = vld [vmem:[%s11781_s1 + $0x68] ss:$12 sps:$4 sm:$0xff]  }
  0x57   : > { %1138 = vmatprep.subr.bf16.mxu0 %v7646_v62  ;;  %7264 = vmatprep.mubr.msk.bf16.mxu1 %vm8275_vm0, %v11804_v1  ;;  %v8947_v62 = vld [vmem:[%s11781_s1 + $0x60] ss:$12 sps:$4 sm:$0xff]  }
  0x58   : > { %1164 = vmatprep.mubr.bf16.mxu0 %v11792_v5 }
  0x59   : > { %7255 = vmatpush3.bf16.msra.mxu1 %v7648_v63  ;;  %v8954_v63 = vld [vmem:[%s11781_s1 + $0x4c] ss:$12 sps:$4 sm:$0xff]  }
  0x5a   : > { %1139 = vmatpush1.bf16.msra.mxu0 %v7649_v0  ;;  %7256 = vmatprep.subr.bf16.mxu1 %v11804_v1  ;;  %v8960_v0 = vld [vmem:[%s11781_s1 + $0x50] ss:$12 sps:$4 sm:$0xff]  }
  0x5b   : > { %1140 = vmatprep.subr.bf16.mxu0 %v7650_v2  ;;  %v8966_v2 = vld [vmem:[%s11781_s1 + $0x48] ss:$12 sps:$4 sm:$0xff]  }
  0x5d   : > { %7257 = vmatpush3.bf16.msra.mxu1 %v7652_v3  ;;  %v8973_v3 = vld [vmem:[%s11781_s1 + $0x34] ss:$12 sps:$4 sm:$0xff]  }
  0x5e   : > { %1141 = vmatpush1.bf16.msra.mxu0 %v7653_v4  ;;  %7258 = vmatprep.subr.bf16.mxu1 %v11804_v1  ;;  %v8979_v4 = vld [vmem:[%s11781_s1 + $0x38] ss:$12 sps:$4 sm:$0xff]  }
  0x5f   : > { %1142 = vmatprep.subr.bf16.mxu0 %v8601_v6 }
  0x61   : > { %7259 = vmatpush3.bf16.msra.mxu1 %v8607_v7 }
  0x62   : > { %1143 = vmatpush1.bf16.msra.mxu0 %v8612_v8  ;;  %7260 = vmatprep.subr.bf16.mxu1 %v11804_v1 }
  0x63   : > { %1144 = vmatprep.subr.bf16.mxu0 %v8617_v9 }
  0x65   : > { %7261 = vmatpush3.bf16.msra.mxu1 %v8624_v10 }
  0x66   : > { %1145 = vmatpush1.bf16.msra.mxu0 %v8629_v11  ;;  %7262 = vmatprep.subr.bf16.mxu1 %v11804_v1 }
  0x67   : > { %1146 = vmatprep.subr.bf16.mxu0 %v8635_v12 }
  0x69   : > { %7263 = vmatpush3.bf16.msra.mxu1 %v8643_v13 }
  0x6a   : > { %1147 = vmatpush1.bf16.msra.mxu0 %v8648_v14  ;;  %7268 = vmatprep.subr.bf16.mxu1 %v11804_v1 }
  0x6b   : > { %1354 = vmatprep.subr.bf16.mxu0 %v8654_v15 }
  0x6c   : > { %7265 = vmatmul.mubr.msk.bf16.vlgmr.msra.gmra.mxu1 %vm535_vm1, %v8659_v16 }
  0x6d   : > { %6378 = vmatmul.mubr.msk.bf16.vlgmr.msra.gmra.mxu0 %vm535_vm1, %v8659_v16  ;;  %7269 = vmatpush3.bf16.msra.mxu1 %v8665_v17 }
  0x6e   : > { %1355 = vmatpush1.bf16.msra.mxu0 %v8670_v18  ;;  %7270 = vmatprep.subr.bf16.mxu1 %v11804_v1 }
  0x6f   : > { %1356 = vmatprep.subr.bf16.mxu0 %v8676_v19  ;;  %7280 = vmatprep.mubr.msk.bf16.mxu1 %vm8275_vm0, %v11804_v1 }
  0x70   : > { %1382 = vmatprep.mubr.bf16.mxu0 %v11792_v5 }
  0x71   : > { %7271 = vmatpush3.bf16.msra.mxu1 %v8684_v20 }
  0x72   : > { %1357 = vmatpush1.bf16.msra.mxu0 %v8691_v21  ;;  %7272 = vmatprep.subr.bf16.mxu1 %v11804_v1 }
  0x73   : > { %1358 = vmatprep.subr.bf16.mxu0 %v8699_v22 }
  0x75   : > { %7273 = vmatpush3.bf16.msra.mxu1 %v8707_v23 }
  0x76   : > { %1359 = vmatpush1.bf16.msra.mxu0 %v8714_v24  ;;  %7274 = vmatprep.subr.bf16.mxu1 %v11804_v1 }
  0x77   : > { %1360 = vmatprep.subr.bf16.mxu0 %v8721_v25 }
  0x79   : > { %7275 = vmatpush3.bf16.msra.mxu1 %v8729_v26 }
  0x7a   : > { %1361 = vmatpush1.bf16.msra.mxu0 %v8736_v28  ;;  %7276 = vmatprep.subr.bf16.mxu1 %v11804_v1 }
  0x7b   : > { %1362 = vmatprep.subr.bf16.mxu0 %v8742_v29 }
  0x7d   : > { %7277 = vmatpush3.bf16.msra.mxu1 %v8750_v30 }
  0x7e   : > { %1363 = vmatpush1.bf16.msra.mxu0 %v8755_v32  ;;  %7278 = vmatprep.subr.bf16.mxu1 %v11804_v1 }
  0x7f   : > { %1364 = vmatprep.subr.bf16.mxu0 %v8761_v33 }
  0x81   : > { %7279 = vmatpush3.bf16.msra.mxu1 %v8769_v35 }
  0x82   : > { %1365 = vmatpush1.bf16.msra.mxu0 %v8774_v37  ;;  %7284 = vmatprep.subr.bf16.mxu1 %v11804_v1 }
  0x83   : > { %1473 = vmatprep.subr.bf16.mxu0 %v8788_v39 }
  0x84   : > { %7281 = vmatmul.mubr.msk.bf16.vlgmr.msra.gmra.mxu1 %vm535_vm1, %v8780_v38 }
  0x85   : > { %6423 = vmatmul.mubr.msk.bf16.vlgmr.msra.gmra.mxu0 %vm535_vm1, %v8780_v38  ;;  %7285 = vmatpush3.bf16.msra.mxu1 %v8798_v40 }
  0x86   : > { %1474 = vmatpush1.bf16.msra.mxu0 %v8804_v41  ;;  %7286 = vmatprep.subr.bf16.mxu1 %v11804_v1 }
  0x87   : > { %1475 = vmatprep.subr.bf16.mxu0 %v8811_v42  ;;  %7296 = vmatprep.mubr.msk.bf16.mxu1 %vm8275_vm0, %v11804_v1 }
  0x88   : > { %1501 = vmatprep.mubr.bf16.mxu0 %v11792_v5 }
  0x89   : > { %7287 = vmatpush3.bf16.msra.mxu1 %v8820_v43 }
  0x8a   : > { %1476 = vmatpush1.bf16.msra.mxu0 %v8826_v44  ;;  %7288 = vmatprep.subr.bf16.mxu1 %v11804_v1 }
  0x8b   : > { %1477 = vmatprep.subr.bf16.mxu0 %v8833_v45 }
  0x8d   : > { %7289 = vmatpush3.bf16.msra.mxu1 %v8839_v46 }
  0x8e   : > { %1478 = vmatpush1.bf16.msra.mxu0 %v8845_v47  ;;  %7290 = vmatprep.subr.bf16.mxu1 %v11804_v1 }
  0x8f   : > { %1479 = vmatprep.subr.bf16.mxu0 %v8852_v48 }
  0x91   : > { %7291 = vmatpush3.bf16.msra.mxu1 %v8858_v49 }
  0x92   : > { %1480 = vmatpush1.bf16.msra.mxu0 %v8864_v50  ;;  %7292 = vmatprep.subr.bf16.mxu1 %v11804_v1 }
  0x93   : > { %1481 = vmatprep.subr.bf16.mxu0 %v8871_v51 }
  0x95   : > { %7293 = vmatpush3.bf16.msra.mxu1 %v8877_v52 }
  0x96   : > { %1482 = vmatpush1.bf16.msra.mxu0 %v8883_v53  ;;  %7294 = vmatprep.subr.bf16.mxu1 %v11804_v1 }
  0x97   : > { %1483 = vmatprep.subr.bf16.mxu0 %v8890_v54 }
  0x99   : > { %7295 = vmatpush3.bf16.msra.mxu1 %v8896_v55 }
  0x9a   : > { %1484 = vmatpush1.bf16.msra.mxu0 %v8902_v56  ;;  %7300 = vmatprep.subr.bf16.mxu1 %v11804_v1 }
  0x9b   : > { %1554 = vmatprep.subr.bf16.mxu0 %v8909_v57 }
  0x9c   : > { %7297 = vmatmul.mubr.msk.bf16.vlgmr.msra.gmra.mxu1 %vm535_vm1, %v8563_v59 }
  0x9d   : > { %6425 = vmatmul.mubr.msk.bf16.vlgmr.msra.gmra.mxu0 %vm535_vm1, %v8563_v59  ;;  %7301 = vmatpush3.bf16.msra.mxu1 %v8919_v58  ;;  %v8932_v59 = vld [vmem:[%s11781_s1 + $0x64] ss:$12 sps:$4 sm:$0xff]  }
  0x9e   : > { %1555 = vmatpush1.bf16.msra.mxu0 %v8925_v60  ;;  %7302 = vmatprep.subr.bf16.mxu1 %v11804_v1 }
  0x9f   : > { %1556 = vmatprep.subr.bf16.mxu0 %v8932_v59  ;;  %7312 = vmatprep.mubr.msk.bf16.mxu1 %vm8275_vm0, %v11804_v1 }
  0xa0   : > { %1582 = vmatprep.mubr.bf16.mxu0 %v11792_v5  ;;  %v9011_v5 = vld [vmem:[%s11781_s1 + $0x4] ss:$12 sps:$4 sm:$0xff]  }
  0xa1   : > { %7303 = vmatpush3.bf16.msra.mxu1 %v8941_v61  ;;  %11998 = vst [vmem:[#allocation6_spill] sm:$0xff] %v9011_v5 }
  0xa2   : > { %1557 = vmatpush1.bf16.msra.mxu0 %v8947_v62  ;;  %7304 = vmatprep.subr.bf16.mxu1 %v11804_v1 }
  0xa3   : > { %1558 = vmatprep.subr.bf16.mxu0 %v8954_v63 }
  0xa5   : > { %7305 = vmatpush3.bf16.msra.mxu1 %v8960_v0 }
  0xa6   : > { %1559 = vmatpush1.bf16.msra.mxu0 %v8966_v2  ;;  %7306 = vmatprep.subr.bf16.mxu1 %v11804_v1 }
  0xa7   : > { %1560 = vmatprep.subr.bf16.mxu0 %v8973_v3 }
  0xa9   : > { %7307 = vmatpush3.bf16.msra.mxu1 %v8979_v4 }
  0xaa   : > { %1561 = vmatpush1.bf16.msra.mxu0 %v8985_v27  ;;  %7308 = vmatprep.subr.bf16.mxu1 %v11804_v1  ;;  %v9065_v27 = vld [vmem:[%s11781_s1 + $0x188] ss:$12 sps:$4 sm:$0xff]  }
  0xab   : > { %1562 = vmatprep.subr.bf16.mxu0 %v8992_v31  ;;  %v9034_v31 = vld [vmem:[%s8421_s24 + $0x4] sm:$0xf]  ;;  %12007 = vst [vmem:[#allocation13_spill] sm:$0xff] %v9065_v27 }
  0xad   : > { %7309 = vmatpush3.bf16.msra.mxu1 %v8998_v34  ;;  %v9017_v34 = vld [vmem:[%s11781_s1 + $0x8] ss:$12 sps:$4 sm:$0xff]  }
  0xae   : > { %1563 = vmatpush1.bf16.msra.mxu0 %v9004_v36  ;;  %7310 = vmatprep.subr.bf16.mxu1 %v11804_v1  ;;  %11999 = vst [vmem:[#allocation7_spill] sm:$0xff] %v9017_v34  ;;  %v9023_v36 = vld [vmem:[%s11781_s1] ss:$12 sps:$4 sm:$0xff]  }
  0xaf   : > { %1564 = vmatprep.subr.bf16.mxu0 %v9011_v5  ;;  %12000 = vst [vmem:[#allocation8_spill] sm:$0xff] %v9023_v36  ;;  %v9030_v5 = vld [vmem:[%s11781_s1 + $0x19c] ss:$12 sps:$4 sm:$0xff]  }
  0xb0   : > { %12001 = vst [vmem:[#allocation9_spill] sm:$0xff] %v9030_v5 }
  0xb1   : > { %7311 = vmatpush3.bf16.msra.mxu1 %v9017_v34  ;;  %v9056_v34 = vld [vmem:[%s11781_s1 + $0x184] ss:$12 sps:$4 sm:$0xff]  }
  0xb2   : > { %1565 = vmatpush1.bf16.msra.mxu0 %v9023_v36  ;;  %7316 = vmatprep.subr.bf16.mxu1 %v11804_v1  ;;  %v9043_v36 = vld [vmem:[%s11781_s1 + $0x1a0] ss:$12 sps:$4 sm:$0xff]   ;;  %v9049_v1 = vld [vmem:[%s11781_s1 + $0x198] ss:$12 sps:$4 sm:$0xff]   ;;  %12005 = vst [vmem:[#allocation12_spill] sm:$0xff] %v9056_v34 }
  0xb3   : > { %1635 = vmatprep.subr.bf16.mxu0 %v9030_v5  ;;  %12002 = vst [vmem:[#allocation10_spill] sm:$0xff] %v9043_v36  ;;  %12003 = vst [vmem:[#allocation11_spill] sm:$0xff] %v9049_v1  ;;  %v12004_v5 = vmov 0.0  }
  0xb4   : > { %7313 = vmatmul.mubr.msk.bf16.vlgmr.msra.gmra.mxu1 %vm535_vm1, %v9034_v31 }
  0xb5   : > { %6427 = vmatmul.mubr.msk.bf16.vlgmr.msra.gmra.mxu0 %vm535_vm1, %v9034_v31  ;;  %7317 = vmatpush3.bf16.msra.mxu1 %v9043_v36  ;;  %v12006_v36 = vmov 0  }
  0xb6   : > { %1636 = vmatpush1.bf16.msra.mxu0 %v9049_v1  ;;  %7318 = vmatprep.subr.bf16.mxu1 %v12004_v5  ;;  %v9071_v1 = vld [vmem:[%s11781_s1 + $0x180] ss:$12 sps:$4 sm:$0xff]  }
  0xb7   : > { %1637 = vmatprep.subr.bf16.mxu0 %v9056_v34  ;;  %7328 = vmatprep.mubr.msk.bf16.mxu1 %vm8275_vm0, %v12004_v5  ;;  %12008 = vst [vmem:[#allocation14_spill] sm:$0xff] %v9071_v1  ;;  %v9078_v34 = vld [vmem:[%s11781_s1 + $0x16c] ss:$12 sps:$4 sm:$0xff]  }
  0xb8   : > { %1663 = vmatprep.mubr.bf16.mxu0 %v12006_v36  ;;  %12009 = vst [vmem:[#allocation15_spill] sm:$0xff] %v9078_v34 }
  0xb9   : > { %7319 = vmatpush3.bf16.msra.mxu1 %v9065_v27  ;;  %v9084_v27 = vld [vmem:[%s11781_s1 + $0x170] ss:$12 sps:$4 sm:$0xff]  }
  0xba   : > { %1638 = vmatpush1.bf16.msra.mxu0 %v9071_v1  ;;  %7320 = vmatprep.subr.bf16.mxu1 %v12004_v5  ;;  %12010 = vst [vmem:[#allocation16_spill] sm:$0xff] %v9084_v27  ;;  %v9090_v1 = vld [vmem:[%s11781_s1 + $0x168] ss:$12 sps:$4 sm:$0xff]  }
  0xbb   : > { %1639 = vmatprep.subr.bf16.mxu0 %v9078_v34  ;;  %12011 = vst [vmem:[#allocation17_spill] sm:$0xff] %v9090_v1  ;;  %v9097_v34 = vld [vmem:[%s11781_s1 + $0x154] ss:$12 sps:$4 sm:$0xff]  }
  0xbc   : > { %12012 = vst [vmem:[#allocation18_spill] sm:$0xff] %v9097_v34 }
  0xbd   : > { %7321 = vmatpush3.bf16.msra.mxu1 %v9084_v27  ;;  %v9103_v27 = vld [vmem:[%s11781_s1 + $0x158] ss:$12 sps:$4 sm:$0xff]  }
  0xbe   : > { %1640 = vmatpush1.bf16.msra.mxu0 %v9090_v1  ;;  %7322 = vmatprep.subr.bf16.mxu1 %v12004_v5  ;;  %12013 = vst [vmem:[#allocation19_spill] sm:$0xff] %v9103_v27  ;;  %v9109_v1 = vld [vmem:[%s11781_s1 + $0x150] ss:$12 sps:$4 sm:$0xff]  }
  0xbf   : > { %1641 = vmatprep.subr.bf16.mxu0 %v9097_v34  ;;  %12014 = vst [vmem:[#allocation20_spill] sm:$0xff] %v9109_v1  ;;  %v9116_v34 = vld [vmem:[%s11781_s1 + $0x13c] ss:$12 sps:$4 sm:$0xff]  }
  0xc0   : > { %12015 = vst [vmem:[#allocation21_spill] sm:$0xff] %v9116_v34 }
  0xc1   : > { %7323 = vmatpush3.bf16.msra.mxu1 %v9103_v27  ;;  %v9122_v27 = vld [vmem:[%s11781_s1 + $0x140] ss:$12 sps:$4 sm:$0xff]  }
  0xc2   : > { %1642 = vmatpush1.bf16.msra.mxu0 %v9109_v1  ;;  %7324 = vmatprep.subr.bf16.mxu1 %v12004_v5  ;;  %12016 = vst [vmem:[#allocation22_spill] sm:$0xff] %v9122_v27  ;;  %v9128_v1 = vld [vmem:[%s11781_s1 + $0x138] ss:$12 sps:$4 sm:$0xff]  }
  0xc3   : > { %1643 = vmatprep.subr.bf16.mxu0 %v9116_v34  ;;  %12017 = vst [vmem:[#allocation23_spill] sm:$0xff] %v9128_v1  ;;  %v9135_v34 = vld [vmem:[%s11781_s1 + $0x124] ss:$12 sps:$4 sm:$0xff]  }
  0xc4   : > { %12018 = vst [vmem:[#allocation24_spill] sm:$0xff] %v9135_v34 }
  0xc5   : > { %7325 = vmatpush3.bf16.msra.mxu1 %v9122_v27  ;;  %v9141_v27 = vld [vmem:[%s11781_s1 + $0x128] ss:$12 sps:$4 sm:$0xff]  }
  0xc6   : > { %1644 = vmatpush1.bf16.msra.mxu0 %v9128_v1  ;;  %7326 = vmatprep.subr.bf16.mxu1 %v12004_v5  ;;  %12019 = vst [vmem:[#allocation25_spill] sm:$0xff] %v9141_v27  ;;  %v9147_v1 = vld [vmem:[%s11781_s1 + $0x120] ss:$12 sps:$4 sm:$0xff]  }
  0xc7   : > { %1645 = vmatprep.subr.bf16.mxu0 %v9135_v34  ;;  %12020 = vst [vmem:[#allocation26_spill] sm:$0xff] %v9147_v1  ;;  %v9154_v34 = vld [vmem:[%s11781_s1 + $0x22c] ss:$12 sps:$4 sm:$0xff]  }
  0xc9   : > { %7327 = vmatpush3.bf16.msra.mxu1 %v9141_v27  ;;  %v9164_v27 = vld [vmem:[%s11781_s1 + $0x230] ss:$12 sps:$4 sm:$0xff]  }
  0xca   : > { %1646 = vmatpush1.bf16.msra.mxu0 %v9147_v1  ;;  %7332 = vmatprep.subr.bf16.mxu1 %v12004_v5  ;;  %12021 = vst [vmem:[#allocation27_spill] sm:$0xff] %v9164_v27  ;;  %v9170_v1 = vld [vmem:[%s11781_s1 + $0x228] ss:$12 sps:$4 sm:$0xff]  }
  0xcb   : > { %1719 = vmatprep.subr.bf16.mxu0 %v9154_v34  ;;  %12022 = vst [vmem:[#allocation28_spill] sm:$0xff] %v9170_v1 }
  0xcc   : > { %7329 = vmatmul.mubr.msk.bf16.vlgmr.msra.gmra.mxu1 %vm535_vm1, %v8659_v16 }
  0xcd   : > { %6429 = vmatmul.mubr.msk.bf16.vlgmr.msra.gmra.mxu0 %vm535_vm1, %v8659_v16  ;;  %7333 = vmatpush3.bf16.msra.mxu1 %v9164_v27  ;;  %v9177_v16 = vld [vmem:[%s11781_s1 + $0x214] ss:$12 sps:$4 sm:$0xff]   ;;  %v9186_v27 = vld [vmem:[%s11781_s1 + $0x218] ss:$12 sps:$4 sm:$0xff]  }
  0xce   : > { %1720 = vmatpush1.bf16.msra.mxu0 %v9170_v1  ;;  %7334 = vmatprep.subr.bf16.mxu1 %v12004_v5  ;;  %12023 = vst [vmem:[#allocation29_spill] sm:$0xff] %v9177_v16  ;;  %12024 = vst [vmem:[#allocation30_spill] sm:$0xff] %v9186_v27  ;;  %v9192_v1 = vld [vmem:[%s11781_s1 + $0x210] ss:$12 sps:$4 sm:$0xff]  }
  0xcf   : > { %1721 = vmatprep.subr.bf16.mxu0 %v9177_v16  ;;  %7344 = vmatprep.mubr.msk.bf16.mxu1 %vm8275_vm0, %v12004_v5  ;;  %12025 = vst [vmem:[#allocation31_spill] sm:$0xff] %v9192_v1  ;;  %v9199_v16 = vld [vmem:[%s11781_s1 + $0x1fc] ss:$12 sps:$4 sm:$0xff]  }
  0xd0   : > { %1747 = vmatprep.mubr.bf16.mxu0 %v12006_v36 }
  0xd1   : > { %7335 = vmatpush3.bf16.msra.mxu1 %v9186_v27  ;;  %v9205_v27 = vld [vmem:[%s11781_s1 + $0x200] ss:$12 sps:$4 sm:$0xff]  }
  0xd2   : > { %1722 = vmatpush1.bf16.msra.mxu0 %v9192_v1  ;;  %7336 = vmatprep.subr.bf16.mxu1 %v12004_v5  ;;  %v9211_v1 = vld [vmem:[%s11781_s1 + $0x1f8] ss:$12 sps:$4 sm:$0xff]  }
  0xd3   : > { %1723 = vmatprep.subr.bf16.mxu0 %v9199_v16 }
  0xd5   : > { %7337 = vmatpush3.bf16.msra.mxu1 %v9205_v27 }
  0xd6   : > { %1724 = vmatpush1.bf16.msra.mxu0 %v9211_v1  ;;  %7338 = vmatprep.subr.bf16.mxu1 %v12004_v5 }
  0xd7   : > { %1725 = vmatprep.subr.bf16.mxu0 %v8601_v6 }
  0xd9   : > { %7339 = vmatpush3.bf16.msra.mxu1 %v8607_v7 }
  0xda   : > { %1726 = vmatpush1.bf16.msra.mxu0 %v8612_v8  ;;  %7340 = vmatprep.subr.bf16.mxu1 %v12004_v5 }
  0xdb   : > { %1727 = vmatprep.subr.bf16.mxu0 %v8617_v9 }
  0xdd   : > { %7341 = vmatpush3.bf16.msra.mxu1 %v8624_v10 }
  0xde   : > { %1728 = vmatpush1.bf16.msra.mxu0 %v8629_v11  ;;  %7342 = vmatprep.subr.bf16.mxu1 %v12004_v5 }
  0xdf   : > { %1729 = vmatprep.subr.bf16.mxu0 %v8635_v12 }
  0xe1   : > { %7343 = vmatpush3.bf16.msra.mxu1 %v8643_v13 }
  0xe2   : > { %1730 = vmatpush1.bf16.msra.mxu0 %v8648_v14  ;;  %7348 = vmatprep.subr.bf16.mxu1 %v12004_v5  ;;  %v6433_v14 = vcombine.low %v9034_v31, %v9034_v31 }
  0xe3   : > { %1816 = vmatprep.subr.bf16.mxu0 %v8654_v15 }
  0xe4   : > { %v614_v6 = vpop.f32.mrf.mxu1  ;;  %7345 = vmatmul.mubr.msk.bf16.vlgmr.msra.gmra.mxu1 %vm535_vm1, %v8780_v38  ;;  %v1805_v15 = vshll.u32 %v6433_v14, 16 }
  0xe5   : > { %v573_v7 = vpop.f32.mrf.mxu0  ;;  %6431 = vmatmul.mubr.msk.bf16.vlgmr.msra.gmra.mxu0 %vm535_vm1, %v8780_v38  ;;  %7349 = vmatpush3.bf16.msra.mxu1 %v8665_v17  ;;  %v1803_v17 = vshrl.u32 %v6433_v14, 16  ;;  %v12038_v14 = vld [vmem:[#allocation14_spill] sm:$0xff] }
  0xe6   : > { %v7218_v8 = vpop.f32.mrf.mxu1  ;;  %1817 = vmatpush1.bf16.msra.mxu0 %v8670_v18  ;;  %7350 = vmatprep.subr.bf16.mxu1 %v12004_v5  ;;  %v1807_v18 = vrot.slane %v1805_v15, 1 }
  0xe7   : > { %v575_v9 = vpop.f32.mrf.mxu0  ;;  %1818 = vmatprep.subr.bf16.mxu0 %v8676_v19  ;;  %7360 = vmatprep.mubr.msk.bf16.mxu1 %vm8275_vm0, %v12004_v5 }
  0xe8   : > { %v617_v10 = vpop.f32.mrf.mxu1  ;;  %1844 = vmatprep.mubr.bf16.mxu0 %v12006_v36  ;;  %v9257_v19 = vor.u32 %v1807_v18, %v1803_v17  ;;  %v12039_v17 = vld [vmem:[#allocation15_spill] sm:$0xff]  ;;  %v12040_v18 = vld [vmem:[#allocation16_spill] sm:$0xff] }
  0xe9   : > { %v577_v11 = vpop.f32.mrf.mxu0  ;;  %7351 = vmatpush3.bf16.msra.mxu1 %v8684_v20 }
  0xea   : > { %v7219_v12 = vpop.f32.mrf.mxu1  ;;  %1819 = vmatpush1.bf16.msra.mxu0 %v8691_v21  ;;  %7352 = vmatprep.subr.bf16.mxu1 %v12004_v5 }
  0xeb   : > { %v578_v13 = vpop.f32.mrf.mxu0  ;;  %1820 = vmatprep.subr.bf16.mxu0 %v8699_v22  ;;  %v12037_v12 = vld [vmem:[#allocation13_spill] sm:$0xff] }
  0xed   : > { %7353 = vmatpush3.bf16.msra.mxu1 %v8707_v23 }
  0xee   : > { %1821 = vmatpush1.bf16.msra.mxu0 %v8714_v24  ;;  %7354 = vmatprep.subr.bf16.mxu1 %v12004_v5 }
  0xef   : > { %1822 = vmatprep.subr.bf16.mxu0 %v8721_v25 }
  0xf1   : > { %7355 = vmatpush3.bf16.msra.mxu1 %v8729_v26 }
  0xf2   : > { %1823 = vmatpush1.bf16.msra.mxu0 %v8736_v28  ;;  %7356 = vmatprep.subr.bf16.mxu1 %v12004_v5 }
  0xf3   : > { %1824 = vmatprep.subr.bf16.mxu0 %v8742_v29 }
  0xf5   : > { %7357 = vmatpush3.bf16.msra.mxu1 %v8750_v30 }
  0xf6   : > { %1825 = vmatpush1.bf16.msra.mxu0 %v8755_v32  ;;  %7358 = vmatprep.subr.bf16.mxu1 %v12004_v5 }
  0xf7   : > { %1826 = vmatprep.subr.bf16.mxu0 %v8761_v33 }
  0xf9   : > { %7359 = vmatpush3.bf16.msra.mxu1 %v8769_v35  ;;  %v9301_v35 = vld [vmem:[%s8421_s24 + $0xc] sm:$0xf] }
  0xfa   : > { %1827 = vmatpush1.bf16.msra.mxu0 %v8774_v37  ;;  %7364 = vmatprep.subr.bf16.mxu1 %v12004_v5 }
  0xfb   : > { %1917 = vmatprep.subr.bf16.mxu0 %v8788_v39 }
  0xfc   : > { %v794_v20 = vpop.f32.mrf.mxu1  ;;  %7361 = vmatmul.mubr.msk.bf16.vlgmr.msra.gmra.mxu1 %vm535_vm1, %v9257_v19 }
  0xfd   : > { %v9265_v21 = vadd.f32 %v794_v20, %v614_v6  ;;  %v753_v22 = vpop.f32.mrf.mxu0  ;;  %6434 = vmatmul.mubr.msk.bf16.vlgmr.msra.gmra.mxu0 %vm535_vm1, %v9257_v19  ;;  %7365 = vmatpush3.bf16.msra.mxu1 %v8798_v40  ;;  %v12041_v20 = vld [vmem:[#allocation17_spill] sm:$0xff] }
  0xfe   : > { %v754_v23 = vadd.f32 %v753_v22, %v573_v7  ;;  %v7234_v24 = vpop.f32.mrf.mxu1  ;;  %1918 = vmatpush1.bf16.msra.mxu0 %v8804_v41  ;;  %7366 = vmatprep.subr.bf16.mxu1 %v12004_v5  ;;  %v12035_v7 = vld [vmem:[#allocation11_spill] sm:$0xff]  ;;  %v12042_v22 = vld [vmem:[#allocation18_spill] sm:$0xff] }
  0xff   : > { %v755_v25 = vpop.f32.mrf.mxu0  ;;  %1919 = vmatprep.subr.bf16.mxu0 %v8811_v42  ;;  %7376 = vmatprep.mubr.msk.bf16.mxu1 %vm8275_vm0, %v12004_v5  ;;  %v12043_v24 = vld [vmem:[#allocation19_spill] sm:$0xff] }
 0x100   : > { %v9275_v26 = vadd.f32 %v755_v25, %v575_v9  ;;  %v797_v28 = vpop.f32.mrf.mxu1  ;;  %1945 = vmatprep.mubr.bf16.mxu0 %v12006_v36  ;;  %v12036_v9 = vld [vmem:[#allocation12_spill] sm:$0xff] }
 0x101   : > { %v757_v29 = vpop.f32.mrf.mxu0  ;;  %7367 = vmatpush3.bf16.msra.mxu1 %v8820_v43  ;;  %v12044_v25 = vld [vmem:[#allocation20_spill] sm:$0xff]  ;;  %v12045_v28 = vld [vmem:[#allocation21_spill] sm:$0xff] }
 0x102   : > { %v7235_v30 = vpop.f32.mrf.mxu1  ;;  %1920 = vmatpush1.bf16.msra.mxu0 %v8826_v44  ;;  %7368 = vmatprep.subr.bf16.mxu1 %v12004_v5 }
 0x103   : > { %v758_v32 = vpop.f32.mrf.mxu0  ;;  %1921 = vmatprep.subr.bf16.mxu0 %v8833_v45  ;;  %v12047_v30 = vld [vmem:[#allocation22_spill] sm:$0xff] }
 0x104   : > { %v12048_v32 = vld [vmem:[#allocation23_spill] sm:$0xff] }
 0x105   : > { %7369 = vmatpush3.bf16.msra.mxu1 %v8839_v46  ;;  %v12026_v46 = vld [vmem:[#allocation2_spill] sm:$0xff] }
 0x106   : > { %1922 = vmatpush1.bf16.msra.mxu0 %v8845_v47  ;;  %7370 = vmatprep.subr.bf16.mxu1 %v12004_v5  ;;  %v12027_v47 = vld [vmem:[#allocation3_spill] sm:$0xff] }
 0x107   : > { %1923 = vmatprep.subr.bf16.mxu0 %v8852_v48  ;;  %v12028_v48 = vld [vmem:[#allocation4_spill] sm:$0xff] }
 0x109   : > { %7371 = vmatpush3.bf16.msra.mxu1 %v8858_v49  ;;  %v12029_v49 = vld [vmem:[#allocation5_spill] sm:$0xff] }
 0x10a   : > { %1924 = vmatpush1.bf16.msra.mxu0 %v8864_v50  ;;  %7372 = vmatprep.subr.bf16.mxu1 %v12004_v5  ;;  %v12030_v50 = vld [vmem:[#allocation6_spill] sm:$0xff] }
 0x10b   : > { %1925 = vmatprep.subr.bf16.mxu0 %v8871_v51  ;;  %v12031_v51 = vld [vmem:[#allocation7_spill] sm:$0xff] }
 0x10d   : > { %7373 = vmatpush3.bf16.msra.mxu1 %v8877_v52  ;;  %v12032_v52 = vld [vmem:[#allocation8_spill] sm:$0xff] }
 0x10e   : > { %1926 = vmatpush1.bf16.msra.mxu0 %v8883_v53  ;;  %7374 = vmatprep.subr.bf16.mxu1 %v12004_v5  ;;  %v12033_v53 = vld [vmem:[#allocation9_spill] sm:$0xff] }
 0x10f   : > { %1927 = vmatprep.subr.bf16.mxu0 %v8890_v54 }
 0x111   : > { %7375 = vmatpush3.bf16.msra.mxu1 %v8896_v55  ;;  %v9337_v55 = vld [vmem:[%s8421_s24 + $0x8] sm:$0xf] }
 0x112   : > { %1928 = vmatpush1.bf16.msra.mxu0 %v8902_v56  ;;  %7380 = vmatprep.subr.bf16.mxu1 %v12004_v5 }
 0x113   : > { %1998 = vmatprep.subr.bf16.mxu0 %v8909_v57  ;;  %v12034_v57 = vld [vmem:[#allocation10_spill] sm:$0xff] }
 0x114   : > { %v9298_v33 = vpop.f32.mrf.mxu1  ;;  %7377 = vmatmul.mubr.msk.bf16.vlgmr.msra.gmra.mxu1 %vm535_vm1, %v9301_v35 }
 0x115   : > { %v958_v37 = vpop.f32.mrf.mxu0  ;;  %6436 = vmatmul.mubr.msk.bf16.vlgmr.msra.gmra.mxu0 %vm535_vm1, %v9301_v35  ;;  %7381 = vmatpush3.bf16.msra.mxu1 %v8919_v58 }
 0x116   : > { %v1005_v39 = vadd.f32 %v958_v37, %v754_v23  ;;  %v7250_v40 = vpop.f32.mrf.mxu1  ;;  %1999 = vmatpush1.bf16.msra.mxu0 %v8925_v60  ;;  %7382 = vmatprep.subr.bf16.mxu1 %v12004_v5  ;;  %v11856_v23 = vlaneseq  ;;  %v12049_v37 = vld [vmem:[#allocation24_spill] sm:$0xff] }
 0x117   : > { %v9310_v41 = vpop.f32.mrf.mxu0  ;;  %2000 = vmatprep.subr.bf16.mxu0 %v8932_v59  ;;  %7392 = vmatprep.mubr.msk.bf16.mxu1 %vm8275_vm0, %v12004_v5 }
 0x118   : > { %v1002_v42 = vpop.f32.mrf.mxu1  ;;  %2026 = vmatprep.mubr.bf16.mxu0 %v12006_v36  ;;  %v9363_v29 = vshrl.u32 %v11856_v23, 7  ;;  %v12055_v23 = vld [vmem:[#allocation28_spill] sm:$0xff] }
 0x119   : > { %v962_v43 = vpop.f32.mrf.mxu0  ;;  %7383 = vmatpush3.bf16.msra.mxu1 %v8941_v61  ;;  %v1007_v42 = vadd.f32 %v9298_v33, %v9265_v21 }
 0x11a   : > { %v7251_v44 = vpop.f32.mrf.mxu1  ;;  %2001 = vmatpush1.bf16.msra.mxu0 %v8947_v62  ;;  %7384 = vmatprep.subr.bf16.mxu1 %v12004_v5  ;;  %12046 = vst [vmem:[#allocation2_spill] sm:$0xff] %v9363_v29  ;;  %v9371_v40 = vsub.s32 0, %v9363_v29  ;;  %v12051_v43 = vld [vmem:[#allocation25_spill] sm:$0xff] }
 0x11b   : > { %v963_v45 = vpop.f32.mrf.mxu0  ;;  %2002 = vmatprep.subr.bf16.mxu0 %v8954_v63  ;;  %v1434_v44 = vld [vmem:[%s11782_s2] sm:$0x7] }
 0x11c   : > { %12050 = vst [vmem:[#allocation3_spill] sm:$0xff] %v9371_v40  ;;  %v12052_v45 = vld [vmem:[#allocation26_spill] sm:$0xff] }
 0x11d   : > { %7385 = vmatpush3.bf16.msra.mxu1 %v8960_v0 }
 0x11e   : > { %2003 = vmatpush1.bf16.msra.mxu0 %v8966_v2  ;;  %7386 = vmatprep.subr.bf16.mxu1 %v12004_v5 }
 0x11f   : > { %2004 = vmatprep.subr.bf16.mxu0 %v8973_v3 }
 0x121   : > { %7387 = vmatpush3.bf16.msra.mxu1 %v8979_v4 }
 0x122   : > { %2005 = vmatpush1.bf16.msra.mxu0 %v12026_v46  ;;  %7388 = vmatprep.subr.bf16.mxu1 %v12004_v5 }
 0x123   : > { %2006 = vmatprep.subr.bf16.mxu0 %v12027_v47 }
 0x125   : > { %7389 = vmatpush3.bf16.msra.mxu1 %v12028_v48 }
 0x126   : > { %2007 = vmatpush1.bf16.msra.mxu0 %v12029_v49  ;;  %7390 = vmatprep.subr.bf16.mxu1 %v12004_v5 }
 0x127   : > { %2008 = vmatprep.subr.bf16.mxu0 %v12030_v50 }
 0x129   : > { %7391 = vmatpush3.bf16.msra.mxu1 %v12031_v51 }
 0x12a   : > { %2009 = vmatpush1.bf16.msra.mxu0 %v12032_v52  ;;  %7396 = vmatprep.subr.bf16.mxu1 %v12004_v5 }
 0x12b   : > { %2079 = vmatprep.subr.bf16.mxu0 %v12033_v53 }
 0x12c   : > { %v1207_v54 = vpop.f32.mrf.mxu1  ;;  %7393 = vmatmul.mubr.msk.bf16.vlgmr.msra.gmra.mxu1 %vm535_vm1, %v9337_v55 }
 0x12d   : > { %v1166_v56 = vpop.f32.mrf.mxu0  ;;  %6438 = vmatmul.mubr.msk.bf16.vlgmr.msra.gmra.mxu0 %vm535_vm1, %v9337_v55  ;;  %7397 = vmatpush3.bf16.msra.mxu1 %v12034_v57 }
 0x12e   : > { %v1213_v31 = vadd.f32 %v1166_v56, %v1005_v39  ;;  %v7266_v6 = vpop.f32.mrf.mxu1  ;;  %2080 = vmatpush1.bf16.msra.mxu0 %v12035_v7  ;;  %7398 = vmatprep.subr.bf16.mxu1 %v12004_v5  ;;  %v11857_v39 = vsub.s32 2, %v9363_v29  ;;  %v9382_v56 = vsub.s32 1, %v9363_v29 }
 0x12f   : > { %v1168_v8 = vpop.f32.mrf.mxu0  ;;  %2081 = vmatprep.subr.bf16.mxu0 %v12036_v9  ;;  %7408 = vmatprep.mubr.msk.bf16.mxu1 %vm8275_vm0, %v12004_v5  ;;  %v1215_v6 = vadd.f32 %v1207_v54, %v1007_v42  ;;  %v12054_v54 = vld [vmem:[#allocation27_spill] sm:$0xff] }
 0x130   : > { %v1210_v10 = vpop.f32.mrf.mxu1  ;;  %2107 = vmatprep.mubr.bf16.mxu0 %v12006_v36  ;;  %12053 = vst [vmem:[#allocation4_spill] sm:$0xff] %v9382_v56  ;;  %v9389_v33 = vrot.slane %v1434_v44, %v11857_v39  ;;  %v9401_v39 = vrot.slane %v1434_v44, %v9382_v56  ;;  %v12060_v56 = vld [vmem:[#allocation31_spill] sm:$0xff] }
 0x131   : > { %v1170_v11 = vpop.f32.mrf.mxu0  ;;  %7399 = vmatpush3.bf16.msra.mxu1 %v12037_v12  ;;  %v1006_v10 = vadd.f32 %v9310_v41, %v9275_v26 }
 0x132   : > { %v7267_v13 = vpop.f32.mrf.mxu1  ;;  %2082 = vmatpush1.bf16.msra.mxu0 %v12038_v14  ;;  %7400 = vmatprep.subr.bf16.mxu1 %v12004_v5  ;;  %v9394_v11 = vrot.slane %v1434_v44, %v9371_v40  ;;  %v12056_v40 = vld [vmem:[#allocation29_spill] sm:$0xff]  ;;  %v12058_v44 = vld [vmem:[#allocation30_spill] sm:$0xff] }
 0x133   : > { %v1171_v15 = vpop.f32.mrf.mxu0  ;;  %2083 = vmatprep.subr.bf16.mxu0 %v12039_v17  ;;  %v1214_v42 = vadd.f32 %v1168_v8, %v1006_v10 }
 0x135   : > { %7401 = vmatpush3.bf16.msra.mxu1 %v12040_v18 }
 0x136   : > { %2084 = vmatpush1.bf16.msra.mxu0 %v12041_v20  ;;  %7402 = vmatprep.subr.bf16.mxu1 %v12004_v5 }
 0x137   : > { %2085 = vmatprep.subr.bf16.mxu0 %v12042_v22 }
 0x139   : > { %7403 = vmatpush3.bf16.msra.mxu1 %v12043_v24 }
 0x13a   : > { %2086 = vmatpush1.bf16.msra.mxu0 %v12044_v25  ;;  %7404 = vmatprep.subr.bf16.mxu1 %v12004_v5 }
 0x13b   : > { %2087 = vmatprep.subr.bf16.mxu0 %v12045_v28 }
 0x13d   : > { %7405 = vmatpush3.bf16.msra.mxu1 %v12047_v30 }
 0x13e   : > { %2088 = vmatpush1.bf16.msra.mxu0 %v12048_v32  ;;  %7406 = vmatprep.subr.bf16.mxu1 %v12004_v5 }
 0x13f   : > { %2089 = vmatprep.subr.bf16.mxu0 %v12049_v37 }
 0x141   : > { %7407 = vmatpush3.bf16.msra.mxu1 %v12051_v43 }
 0x142   : > { %2090 = vmatpush1.bf16.msra.mxu0 %v12052_v45  ;;  %7412 = vmatprep.subr.bf16.mxu1 %v12004_v5 }
 0x143   : > { %2163 = vmatprep.subr.bf16.mxu0 %v9154_v34 }
 0x144   : > { %v1425_v21 = vpop.f32.mrf.mxu1  ;;  %7409 = vmatmul.mubr.msk.bf16.vlgmr.msra.gmra.mxu1 %vm535_vm1, %v8780_v38 }
 0x145   : > { %v1433_v13 = vadd.f32 %v1425_v21, %v1215_v6  ;;  %v1384_v15 = vpop.f32.mrf.mxu0  ;;  %6440 = vmatmul.mubr.msk.bf16.vlgmr.msra.gmra.mxu0 %vm535_vm1, %v8780_v38  ;;  %7413 = vmatpush3.bf16.msra.mxu1 %v12054_v54 }
 0x146   : > { %v1431_v26 = vadd.f32 %v1384_v15, %v1213_v31  ;;  %v7282_v41 = vpop.f32.mrf.mxu1  ;;  %2164 = vmatpush1.bf16.msra.mxu0 %v12055_v23  ;;  %7414 = vmatprep.subr.bf16.mxu1 %v12004_v5 }
 0x147   : > { %v1386_v29 = vpop.f32.mrf.mxu0  ;;  %2165 = vmatprep.subr.bf16.mxu0 %v12056_v40  ;;  %7424 = vmatprep.mubr.msk.bf16.mxu1 %vm8275_vm0, %v12004_v5  ;;  %v1453_v6 = vadd.f32 %v9389_v33, %v1433_v13 }
 0x148   : > { %v9409_v21 = vadd.f32 %v9394_v11, %v1431_v26  ;;  %v1432_v31 = vadd.f32 %v1386_v29, %v1214_v42  ;;  %v1428_v8 = vpop.f32.mrf.mxu1  ;;  %2191 = vmatprep.mubr.bf16.mxu0 %v12006_v36  ;;  %v9428_v26 = vld [vmem:[%s11781_s1 + $0x1e4] ss:$12 sps:$4 sm:$0xff]  }
 0x149   : > { %v1388_v10 = vpop.f32.mrf.mxu0  ;;  %7415 = vmatpush3.bf16.msra.mxu1 %v12058_v44  ;;  %v1456_v13 = vmax.f32 %v1453_v6, 0.0  ;;  %v9441_v6 = vld [vmem:[%s11781_s1 + $0x1e0] ss:$12 sps:$4 sm:$0xff]   ;;  %v9454_v8 = vld [vmem:[%s11781_s1 + $0x1d0] ss:$12 sps:$4 sm:$0xff]  }
 0x14a   : > { %12057 = vst [vmem:[#allocation5_spill] sm:$0xff] %v9409_v21  ;;  %v9414_v15 = vadd.f32 %v9401_v39, %v1432_v31  ;;  %v7283_v41 = vpop.f32.mrf.mxu1  ;;  %2166 = vmatpush1.bf16.msra.mxu0 %v12060_v56  ;;  %7416 = vmatprep.subr.bf16.mxu1 %v12004_v5  ;;  %12061 = vst [vmem:[#allocation7_spill] sm:$0xff] %v9441_v6  ;;  %v9448_v31 = vld [vmem:[%s11781_s1 + $0x1cc] ss:$12 sps:$4 sm:$0xff]   ;;  %v9460_v10 = vld [vmem:[%s11781_s1 + $0x1c8] ss:$12 sps:$4 sm:$0xff]  }
 0x14b   : > { %v1389_v40 = vpop.f32.mrf.mxu0  ;;  %2167 = vmatprep.subr.bf16.mxu0 %v9199_v16  ;;  %12062 = vst [vmem:[#allocation8_spill] sm:$0xff] %v9448_v31  ;;  %12063 = vst [vmem:[#allocation9_spill] sm:$0xff] %v9454_v8  ;;  %v9467_v41 = vld [vmem:[%s11781_s1 + $0x1b4] ss:$12 sps:$4 sm:$0xff]  }
 0x14c   : > { %12059 = vst [vmem:[#allocation6_spill] sm:$0xff] %v9414_v15  ;;  %v11864_v29 = vmax.f32 %v9414_v15, 0.0  ;;  %v9435_v40 = vld [vmem:[%s11781_s1 + $0x1e8] ss:$12 sps:$4 sm:$0xff]   ;;  %12064 = vst [vmem:[#allocation10_spill] sm:$0xff] %v9460_v10 }
 0x14d   : > { %7417 = vmatpush3.bf16.msra.mxu1 %v9205_v27  ;;  %12065 = vst [vmem:[#allocation11_spill] sm:$0xff] %v9467_v41 }
 0x14e   : > { %2168 = vmatpush1.bf16.msra.mxu0 %v9211_v1  ;;  %7418 = vmatprep.subr.bf16.mxu1 %v12004_v5  ;;  %v7548_v42 = vpack.i.bf16 %v1456_v13, %v11864_v29  ;;  %v9473_v13 = vld [vmem:[%s11781_s1 + $0x1b8] ss:$12 sps:$4 sm:$0xff]   ;;  %v9486_v29 = vld [vmem:[%s11781_s1 + $0x2bc] ss:$12 sps:$4 sm:$0xff]  }
 0x14f   : > { %2169 = vmatprep.subr.bf16.mxu0 %v9428_v26  ;;  %12066 = vst [vmem:[#allocation12_spill] sm:$0xff] %v9473_v13  ;;  %12068 = vst [vmem:[#allocation14_spill] sm:$0xff] %v9486_v29 }
 0x150   : > { %7549 = vrot.lane.b32.xlu1 %v7548_v42, %s8277_s26  ;;  %v9479_v42 = vld [vmem:[%s11781_s1 + $0x1b0] ss:$12 sps:$4 sm:$0xff]  }
 0x151   : > { %7419 = vmatpush3.bf16.msra.mxu1 %v9435_v40  ;;  %12067 = vst [vmem:[#allocation13_spill] sm:$0xff] %v9479_v42 }
 0x152   : > { %2170 = vmatpush1.bf16.msra.mxu0 %v9441_v6  ;;  %7420 = vmatprep.subr.bf16.mxu1 %v12004_v5 }
 0x153   : > { %2171 = vmatprep.subr.bf16.mxu0 %v9448_v31  ;;  %v9528_v31 = vld [vmem:[%s11781_s1 + $0x2a0] ss:$12 sps:$4 sm:$0xff]  }
 0x154   : > { %12073 = vst [vmem:[#allocation19_spill] sm:$0xff] %v9528_v31 }
 0x155   : > { %7421 = vmatpush3.bf16.msra.mxu1 %v9454_v8 }
 0x156   : > { %2172 = vmatpush1.bf16.msra.mxu0 %v9460_v10  ;;  %7422 = vmatprep.subr.bf16.mxu1 %v12004_v5  ;;  %v9513_v10 = vld [vmem:[%s11781_s1 + $0x2a4] ss:$12 sps:$4 sm:$0xff]  }
 0x157   : > { %2173 = vmatprep.subr.bf16.mxu0 %v9467_v41  ;;  %12071 = vst [vmem:[#allocation17_spill] sm:$0xff] %v9513_v10 }
 0x159   : > { %7423 = vmatpush3.bf16.msra.mxu1 %v9473_v13 }
 0x15a   : > { %2174 = vmatpush1.bf16.msra.mxu0 %v9479_v42  ;;  %7428 = vmatprep.subr.bf16.mxu1 %v12004_v5  ;;  %v9498_v42 = vld [vmem:[%s11781_s1 + $0x2c0] ss:$12 sps:$4 sm:$0xff]  }
 0x15b   : > { %2260 = vmatprep.subr.bf16.mxu0 %v9486_v29  ;;  %12069 = vst [vmem:[#allocation15_spill] sm:$0xff] %v9498_v42  ;;  %v9504_v29 = vld [vmem:[%s11781_s1 + $0x2b8] ss:$12 sps:$4 sm:$0xff]  }
 0x15c   : > { %v1544_v15 = vpop.f32.mrf.mxu1  ;;  %7425 = vmatmul.mubr.msk.bf16.vlgmr.msra.gmra.mxu1 %vm535_vm1, %v9257_v19  ;;  %12070 = vst [vmem:[#allocation16_spill] sm:$0xff] %v9504_v29 }
 0x15d   : > { %v9491_v21 = vpop.f32.mrf.mxu0  ;;  %6442 = vmatmul.mubr.msk.bf16.vlgmr.msra.gmra.mxu0 %vm535_vm1, %v9257_v19  ;;  %7429 = vmatpush3.bf16.msra.mxu1 %v9498_v42 }
 0x15e   : > { %v7298_v13 = vpop.f32.mrf.mxu1  ;;  %2261 = vmatpush1.bf16.msra.mxu0 %v9504_v29  ;;  %7430 = vmatprep.subr.bf16.mxu1 %v12004_v5  ;;  %v9522_v29 = vld [vmem:[%s11781_s1 + $0x2a8] ss:$12 sps:$4 sm:$0xff]  }
 0x15f   : > { %v9508_v41 = vpop.f32.mrf.mxu0  ;;  %2262 = vmatprep.subr.bf16.mxu0 %v9513_v10  ;;  %7440 = vmatprep.mubr.msk.bf16.mxu1 %vm8275_vm0, %v12004_v5  ;;  %12072 = vst [vmem:[#allocation18_spill] sm:$0xff] %v9522_v29 }
 0x160   : > { %v1547_v13 = vpop.f32.mrf.mxu1  ;;  %2288 = vmatprep.mubr.bf16.mxu0 %v12006_v36 }
 0x161   : > { %v1507_v42 = vpop.f32.mrf.mxu0  ;;  %7431 = vmatpush3.bf16.msra.mxu1 %v9522_v29  ;;  %v9543_v29 = vld [vmem:[%s11781_s1 + $0x290] ss:$12 sps:$4 sm:$0xff]  }
 0x162   : > { %v7299_v8 = vpop.f32.mrf.mxu1  ;;  %2263 = vmatpush1.bf16.msra.mxu0 %v9528_v31  ;;  %7432 = vmatprep.subr.bf16.mxu1 %v12004_v5  ;;  %v9535_v42 = vld [vmem:[%s11781_s1 + $0x28c] ss:$12 sps:$4 sm:$0xff]   ;;  %12075 = vst [vmem:[#allocation21_spill] sm:$0xff] %v9543_v29 }
 0x163   : > { %v1508_v13 = vpop.f32.mrf.mxu0  ;;  %12074 = vst [vmem:[#allocation20_spill] sm:$0xff] %v9535_v42  ;;  %2264 = vmatprep.subr.bf16.mxu0 %v9535_v42  ;;  %v6444_v8 = vcombine.low %v9337_v55, %v9337_v55  ;;  %v9556_v55 = vld [vmem:[%s11781_s1 + $0x274] ss:$12 sps:$4 sm:$0xff]  }
 0x164   : > { %v9549_v13 = vld [vmem:[%s11781_s1 + $0x288] ss:$12 sps:$4 sm:$0xff]   ;;  %12077 = vst [vmem:[#allocation23_spill] sm:$0xff] %v9556_v55 }
 0x165   : > { %7433 = vmatpush3.bf16.msra.mxu1 %v9543_v29  ;;  %12076 = vst [vmem:[#allocation22_spill] sm:$0xff] %v9549_v13  ;;  %v2249_v42 = vshll.u32 %v6444_v8, 16  ;;  %v9562_v29 = vld [vmem:[%s11781_s1 + $0x278] ss:$12 sps:$4 sm:$0xff]   ;;  %v2247_v31 = vshrl.u32 %v6444_v8, 16 }
 0x166   : > { %2265 = vmatpush1.bf16.msra.mxu0 %v9549_v13  ;;  %7434 = vmatprep.subr.bf16.mxu1 %v12004_v5  ;;  %12078 = vst [vmem:[#allocation24_spill] sm:$0xff] %v9562_v29  ;;  %v9568_v13 = vld [vmem:[%s11781_s1 + $0x270] ss:$12 sps:$4 sm:$0xff]  }
 0x167   : > { %2266 = vmatprep.subr.bf16.mxu0 %v9556_v55  ;;  %12079 = vst [vmem:[#allocation25_spill] sm:$0xff] %v9568_v13  ;;  %v9575_v55 = vld [vmem:[%s11781_s1 + $0x25c] ss:$12 sps:$4 sm:$0xff]   ;;  %v2251_v10 = vrot.slane %v2249_v42, 1  ;;  %v9594_v42 = vld [vmem:[%s11781_s1 + $0x244] ss:$12 sps:$4 sm:$0xff]  }
 0x168   : > { %12080 = vst [vmem:[#allocation26_spill] sm:$0xff] %v9575_v55  ;;  %12083 = vst [vmem:[#allocation30_spill] sm:$0xff] %v9594_v42 }
 0x169   : > { %7435 = vmatpush3.bf16.msra.mxu1 %v9562_v29  ;;  %v9581_v29 = vld [vmem:[%s11781_s1 + $0x260] ss:$12 sps:$4 sm:$0xff]   ;;  %v9597_v8 = vor.u32 %v2251_v10, %v2247_v31 }
 0x16a   : > { %2267 = vmatpush1.bf16.msra.mxu0 %v9568_v13  ;;  %7436 = vmatprep.subr.bf16.mxu1 %v12004_v5  ;;  %12081 = vst [vmem:[#allocation27_spill] sm:$0xff] %v9581_v29  ;;  %v9587_v13 = vld [vmem:[%s11781_s1 + $0x258] ss:$12 sps:$4 sm:$0xff]  }
 0x16b   : > { %2268 = vmatprep.subr.bf16.mxu0 %v9575_v55  ;;  %12082 = vst [vmem:[#allocation28_spill] sm:$0xff] %v9587_v13  ;;  %12084 = vst [vmem:[#allocation31_spill] sm:$0xff] %v9597_v8  ;;  %v8227_v31 = vld [vmem:[%s11781_s1 + $0x10c] ss:$12 sps:$4 sm:$0xff]  }
 0x16d   : > { %7437 = vmatpush3.bf16.msra.mxu1 %v9581_v29  ;;  %v9602_v29 = vld [vmem:[%s11781_s1 + $0x248] ss:$12 sps:$4 sm:$0xff]  }
 0x16e   : > { %2269 = vmatpush1.bf16.msra.mxu0 %v9587_v13  ;;  %7438 = vmatprep.subr.bf16.mxu1 %v12004_v5  ;;  %12085 = vst [vmem:[#allocation32_spill] sm:$0xff] %v9602_v29  ;;  %v9608_v13 = vld [vmem:[%s11781_s1 + $0x240] ss:$12 sps:$4 sm:$0xff]  }
 0x16f   : > { %2270 = vmatprep.subr.bf16.mxu0 %v9594_v42  ;;  %12086 = vst [vmem:[#allocation33_spill] sm:$0xff] %v9608_v13 }
 0x171   : > { %7439 = vmatpush3.bf16.msra.mxu1 %v9602_v29 }
 0x172   : > { %2271 = vmatpush1.bf16.msra.mxu0 %v9608_v13  ;;  %7444 = vmatprep.subr.bf16.mxu1 %v12004_v5  ;;  %v8228_v13 = vld [vmem:[%s11781_s1 + $0x110] ss:$12 sps:$4 sm:$0xff]  }
 0x173   : > { %2361 = vmatprep.subr.bf16.mxu0 %v8227_v31  ;;  %v8229_v31 = vld [vmem:[%s11781_s1 + $0x108] ss:$12 sps:$4 sm:$0xff]  }
 0x174   : > { %v1625_v10 = vpop.f32.mrf.mxu1  ;;  %7441 = vmatmul.mubr.msk.bf16.vlgmr.msra.gmra.mxu1 %vm535_vm1, %v9597_v8 }
 0x175   : > { %v9617_v42 = vadd.f32 %v1625_v10, %v1544_v15  ;;  %v1584_v29 = vpop.f32.mrf.mxu0  ;;  %6445 = vmatmul.mubr.msk.bf16.vlgmr.msra.gmra.mxu0 %vm535_vm1, %v9597_v8  ;;  %7445 = vmatpush3.bf16.msra.mxu1 %v8228_v13  ;;  %v8230_v10 = vld [vmem:[%s11781_s1 + $0xf4] ss:$12 sps:$4 sm:$0xff]  }
 0x176   : > { %v1585_v55 = vadd.f32 %v1584_v29, %v9491_v21  ;;  %v7314_v6 = vpop.f32.mrf.mxu1  ;;  %2362 = vmatpush1.bf16.msra.mxu0 %v8229_v31  ;;  %7446 = vmatprep.subr.bf16.mxu1 %v12004_v5 }
 0x177   : > { %v1586_v15 = vpop.f32.mrf.mxu0  ;;  %2363 = vmatprep.subr.bf16.mxu0 %v8230_v10  ;;  %7456 = vmatprep.mubr.msk.bf16.mxu1 %vm8275_vm0, %v12004_v5  ;;  %v8231_v6 = vld [vmem:[%s11781_s1 + $0xf8] ss:$12 sps:$4 sm:$0xff]   ;;  %v8232_v10 = vld [vmem:[%s11781_s1 + $0xf0] ss:$12 sps:$4 sm:$0xff]  }
 0x178   : > { %v9635_v13 = vadd.f32 %v1586_v15, %v9508_v41  ;;  %v1628_v21 = vpop.f32.mrf.mxu1  ;;  %2389 = vmatprep.mubr.bf16.mxu0 %v12006_v36  ;;  %v8233_v41 = vld [vmem:[%s11781_s1 + $0xdc] ss:$12 sps:$4 sm:$0xff]   ;;  %v8234_v15 = vld [vmem:[%s11781_s1 + $0xe0] ss:$12 sps:$4 sm:$0xff]  }
 0x179   : > { %v1588_v29 = vpop.f32.mrf.mxu0  ;;  %7447 = vmatpush3.bf16.msra.mxu1 %v8231_v6  ;;  %v8235_v21 = vld [vmem:[%s11781_s1 + $0xd8] ss:$12 sps:$4 sm:$0xff]   ;;  %v8238_v6 = vld [vmem:[%s11781_s1 + $0xc0] ss:$12 sps:$4 sm:$0xff]  }
 0x17a   : > { %v7315_v31 = vpop.f32.mrf.mxu1  ;;  %2364 = vmatpush1.bf16.msra.mxu0 %v8232_v10  ;;  %7448 = vmatprep.subr.bf16.mxu1 %v12004_v5  ;;  %v8237_v29 = vld [vmem:[%s11781_s1 + $0xc8] ss:$12 sps:$4 sm:$0xff]   ;;  %v8240_v10 = vld [vmem:[%s11781_s1 + $0xb0] ss:$12 sps:$4 sm:$0xff]  }
 0x17b   : > { %v1589_v8 = vpop.f32.mrf.mxu0  ;;  %2365 = vmatprep.subr.bf16.mxu0 %v8233_v41  ;;  %v8239_v31 = vld [vmem:[%s11781_s1 + $0xac] ss:$12 sps:$4 sm:$0xff]   ;;  %v8241_v41 = vld [vmem:[%s11781_s1 + $0xa8] ss:$12 sps:$4 sm:$0xff]  }
 0x17c   : > { %v8236_v8 = vld [vmem:[%s11781_s1 + $0xc4] ss:$12 sps:$4 sm:$0xff]  }
 0x17d   : > { %7449 = vmatpush3.bf16.msra.mxu1 %v8234_v15  ;;  %v8242_v15 = vld [vmem:[%s11781_s1 + $0x94] ss:$12 sps:$4 sm:$0xff]  }
 0x17e   : > { %2366 = vmatpush1.bf16.msra.mxu0 %v8235_v21  ;;  %7450 = vmatprep.subr.bf16.mxu1 %v12004_v5  ;;  %v8243_v21 = vld [vmem:[%s11781_s1 + $0x98] ss:$12 sps:$4 sm:$0xff]  }
 0x17f   : > { %2367 = vmatprep.subr.bf16.mxu0 %v8236_v8  ;;  %v8244_v8 = vld [vmem:[%s11781_s1 + $0x90] ss:$12 sps:$4 sm:$0xff]  }
 0x181   : > { %7451 = vmatpush3.bf16.msra.mxu1 %v8237_v29  ;;  %v8245_v29 = vld [vmem:[%s11781_s1 + $0x7c] ss:$12 sps:$4 sm:$0xff]  }
 0x182   : > { %2368 = vmatpush1.bf16.msra.mxu0 %v8238_v6  ;;  %7452 = vmatprep.subr.bf16.mxu1 %v12004_v5 }
 0x183   : > { %2369 = vmatprep.subr.bf16.mxu0 %v8239_v31 }
 0x185   : > { %7453 = vmatpush3.bf16.msra.mxu1 %v8240_v10 }
 0x186   : > { %2370 = vmatpush1.bf16.msra.mxu0 %v8241_v41  ;;  %7454 = vmatprep.subr.bf16.mxu1 %v12004_v5 }
 0x187   : > { %2371 = vmatprep.subr.bf16.mxu0 %v8242_v15 }
 0x189   : > { %7455 = vmatpush3.bf16.msra.mxu1 %v8243_v21 }
 0x18a   : > { %2372 = vmatpush1.bf16.msra.mxu0 %v8244_v8  ;;  %7460 = vmatprep.subr.bf16.mxu1 %v12004_v5 }
 0x18b   : > { %2442 = vmatprep.subr.bf16.mxu0 %v8245_v29 }
 0x18c   : > { %v9688_v6 = vpop.f32.mrf.mxu1  ;;  %7457 = vmatmul.mubr.msk.bf16.vlgmr.msra.gmra.mxu1 %vm535_vm1, %v8780_v38 }
 0x18d   : > { %v1665_v31 = vpop.f32.mrf.mxu0  ;;  %6447 = vmatmul.mubr.msk.bf16.vlgmr.msra.gmra.mxu0 %vm535_vm1, %v8780_v38  ;;  %7461 = vmatpush3.bf16.msra.mxu1 %v8919_v58 }
 0x18e   : > { %v1712_v10 = vadd.f32 %v1665_v31, %v1585_v55  ;;  %v7330_v41 = vpop.f32.mrf.mxu1  ;;  %2443 = vmatpush1.bf16.msra.mxu0 %v8925_v60  ;;  %7462 = vmatprep.subr.bf16.mxu1 %v12004_v5 }
 0x18f   : > { %v9697_v15 = vpop.f32.mrf.mxu0  ;;  %2444 = vmatprep.subr.bf16.mxu0 %v8932_v59  ;;  %7472 = vmatprep.mubr.msk.bf16.mxu1 %vm8275_vm0, %v12004_v5 }
 0x190   : > { %v1709_v21 = vpop.f32.mrf.mxu1  ;;  %2470 = vmatprep.mubr.bf16.mxu0 %v12006_v36 }
 0x191   : > { %v1669_v8 = vpop.f32.mrf.mxu0  ;;  %7463 = vmatpush3.bf16.msra.mxu1 %v8941_v61  ;;  %v6455_v21 = vcombine.low %v9301_v35, %v9301_v35 }
 0x192   : > { %v7331_v38 = vpop.f32.mrf.mxu1  ;;  %2445 = vmatpush1.bf16.msra.mxu0 %v8947_v62  ;;  %7464 = vmatprep.subr.bf16.mxu1 %v12004_v5  ;;  %v12103_v8 = vld [vmem:[#allocation21_spill] sm:$0xff] }
 0x193   : > { %v1670_v58 = vpop.f32.mrf.mxu0  ;;  %2446 = vmatprep.subr.bf16.mxu0 %v8954_v63  ;;  %v12104_v38 = vld [vmem:[#allocation22_spill] sm:$0xff] }
 0x194   : > { %v12105_v58 = vld [vmem:[#allocation23_spill] sm:$0xff] }
 0x195   : > { %7465 = vmatpush3.bf16.msra.mxu1 %v8960_v0 }
 0x196   : > { %2447 = vmatpush1.bf16.msra.mxu0 %v8966_v2  ;;  %7466 = vmatprep.subr.bf16.mxu1 %v12004_v5 }
 0x197   : > { %2448 = vmatprep.subr.bf16.mxu0 %v8973_v3 }
 0x199   : > { %7467 = vmatpush3.bf16.msra.mxu1 %v8979_v4 }
 0x19a   : > { %2449 = vmatpush1.bf16.msra.mxu0 %v12026_v46  ;;  %7468 = vmatprep.subr.bf16.mxu1 %v12004_v5  ;;  %v1714_v46 = vadd.f32 %v9688_v6, %v9617_v42  ;;  %v12099_v42 = vld [vmem:[#allocation17_spill] sm:$0xff]  ;;  %v12100_v6 = vld [vmem:[#allocation18_spill] sm:$0xff] }
 0x19b   : > { %2450 = vmatprep.subr.bf16.mxu0 %v12027_v47 }
 0x19d   : > { %7469 = vmatpush3.bf16.msra.mxu1 %v12028_v48  ;;  %v1713_v48 = vadd.f32 %v9697_v15, %v9635_v13  ;;  %v12102_v15 = vld [vmem:[#allocation20_spill] sm:$0xff] }
 0x19e   : > { %2451 = vmatpush1.bf16.msra.mxu0 %v12029_v49  ;;  %7470 = vmatprep.subr.bf16.mxu1 %v12004_v5 }
 0x19f   : > { %2452 = vmatprep.subr.bf16.mxu0 %v12030_v50 }
 0x1a1   : > { %7471 = vmatpush3.bf16.msra.mxu1 %v12031_v51 }
 0x1a2   : > { %2453 = vmatpush1.bf16.msra.mxu0 %v12032_v52  ;;  %7476 = vmatprep.subr.bf16.mxu1 %v12004_v5 }
 0x1a3   : > { %2523 = vmatprep.subr.bf16.mxu0 %v12033_v53 }
 0x1a4   : > { %v1790_v60 = vpop.f32.mrf.mxu1  ;;  %7473 = vmatmul.mubr.msk.bf16.vlgmr.msra.gmra.mxu1 %vm535_vm1, %v9301_v35 }
 0x1a5   : > { %v1749_v59 = vpop.f32.mrf.mxu0  ;;  %6449 = vmatmul.mubr.msk.bf16.vlgmr.msra.gmra.mxu0 %vm535_vm1, %v9301_v35  ;;  %7477 = vmatpush3.bf16.msra.mxu1 %v12034_v57  ;;  %v1798_v47 = vadd.f32 %v1790_v60, %v1714_v46  ;;  %v2693_v60 = vshll.u32 %v6455_v21, 16  ;;  %v12109_v35 = vld [vmem:[#allocation27_spill] sm:$0xff]  ;;  %v12112_v46 = vld [vmem:[#allocation32_spill] sm:$0xff] }
 0x1a6   : > { %v1796_v61 = vadd.f32 %v1749_v59, %v1712_v10  ;;  %v7346_v62 = vpop.f32.mrf.mxu1  ;;  %2524 = vmatpush1.bf16.msra.mxu0 %v12035_v7  ;;  %7478 = vmatprep.subr.bf16.mxu1 %v12004_v5  ;;  %v12087_v7 = vld [vmem:[#allocation29_spill] sm:$0xff]  ;;  %v12101_v10 = vld [vmem:[#allocation19_spill] sm:$0xff]  ;;  %v12106_v59 = vld [vmem:[#allocation24_spill] sm:$0xff] }
 0x1a7   : > { %v1751_v63 = vpop.f32.mrf.mxu0  ;;  %2525 = vmatprep.subr.bf16.mxu0 %v12036_v9  ;;  %7488 = vmatprep.mubr.msk.bf16.mxu1 %vm8275_vm0, %v12004_v5  ;;  %v12108_v62 = vld [vmem:[#allocation26_spill] sm:$0xff] }
 0x1a8   : > { %v1793_v0 = vpop.f32.mrf.mxu1  ;;  %2551 = vmatprep.mubr.bf16.mxu0 %v12006_v36  ;;  %v1797_v52 = vadd.f32 %v1751_v63, %v1713_v48  ;;  %v2691_v63 = vshrl.u32 %v6455_v21, 16 }
 0x1a9   : > { %v1753_v2 = vpop.f32.mrf.mxu0  ;;  %7479 = vmatpush3.bf16.msra.mxu1 %v12037_v12  ;;  %v2695_v0 = vrot.slane %v2693_v60, 1 }
 0x1aa   : > { %v7347_v3 = vpop.f32.mrf.mxu1  ;;  %2526 = vmatpush1.bf16.msra.mxu0 %v12038_v14  ;;  %7480 = vmatprep.subr.bf16.mxu1 %v12004_v5  ;;  %v12110_v2 = vld [vmem:[#allocation28_spill] sm:$0xff] }
 0x1ab   : > { %v1754_v4 = vpop.f32.mrf.mxu0  ;;  %2527 = vmatprep.subr.bf16.mxu0 %v12039_v17  ;;  %v12111_v3 = vld [vmem:[#allocation30_spill] sm:$0xff] }
 0x1ac   : > { %v2696_v4 = vor.u32 %v2695_v0, %v2691_v63  ;;  %v7698_v0 = vld [vmem:[%s11783_s3 + $0x190] ss:$12 sps:$4 sm:$0xff]  }
 0x1ad   : > { %7481 = vmatpush3.bf16.msra.mxu1 %v12040_v18 }
 0x1ae   : > { %2528 = vmatpush1.bf16.msra.mxu0 %v12041_v20  ;;  %7482 = vmatprep.subr.bf16.mxu1 %v12004_v5 }
 0x1af   : > { %2529 = vmatprep.subr.bf16.mxu0 %v12042_v22 }
 0x1b1   : > { %7483 = vmatpush3.bf16.msra.mxu1 %v12043_v24 }
 0x1b2   : > { %2530 = vmatpush1.bf16.msra.mxu0 %v12044_v25  ;;  %7484 = vmatprep.subr.bf16.mxu1 %v12004_v5 }
 0x1b3   : > { %2531 = vmatprep.subr.bf16.mxu0 %v12045_v28  ;;  %v12088_v28 = vld [vmem:[#allocation7_spill] sm:$0xff] }
 0x1b5   : > { %7485 = vmatpush3.bf16.msra.mxu1 %v12047_v30  ;;  %v12092_v30 = vld [vmem:[#allocation11_spill] sm:$0xff] }
 0x1b6   : > { %2532 = vmatpush1.bf16.msra.mxu0 %v12048_v32  ;;  %7486 = vmatprep.subr.bf16.mxu1 %v12004_v5  ;;  %v12093_v32 = vld [vmem:[#allocation12_spill] sm:$0xff] }
 0x1b7   : > { %2533 = vmatprep.subr.bf16.mxu0 %v12049_v37  ;;  %v12094_v37 = vld [vmem:[#allocation13_spill] sm:$0xff] }
 0x1b9   : > { %7487 = vmatpush3.bf16.msra.mxu1 %v12051_v43  ;;  %v12095_v43 = vld [vmem:[#allocation14_spill] sm:$0xff] }
 0x1ba   : > { %2534 = vmatpush1.bf16.msra.mxu0 %v12052_v45  ;;  %7492 = vmatprep.subr.bf16.mxu1 %v12004_v5 }
 0x1bb   : > { %2607 = vmatprep.subr.bf16.mxu0 %v9154_v34 }
 0x1bc   : > { %v1887_v49 = vpop.f32.mrf.mxu1  ;;  %7489 = vmatmul.mubr.msk.bf16.vlgmr.msra.gmra.mxu1 %vm535_vm1, %v9257_v19 }
 0x1bd   : > { %v1895_v50 = vadd.f32 %v1887_v49, %v1798_v47  ;;  %v1846_v51 = vpop.f32.mrf.mxu0  ;;  %6451 = vmatmul.mubr.msk.bf16.vlgmr.msra.gmra.mxu0 %vm535_vm1, %v9257_v19  ;;  %7493 = vmatpush3.bf16.msra.mxu1 %v12054_v54  ;;  %v12113_v47 = vld [vmem:[#allocation33_spill] sm:$0xff] }
 0x1be   : > { %v1893_v53 = vadd.f32 %v1846_v51, %v1796_v61  ;;  %v7362_v57 = vpop.f32.mrf.mxu1  ;;  %2608 = vmatpush1.bf16.msra.mxu0 %v12055_v23  ;;  %7494 = vmatprep.subr.bf16.mxu1 %v12004_v5  ;;  %v12107_v61 = vld [vmem:[#allocation25_spill] sm:$0xff] }
 0x1bf   : > { %v1848_v34 = vpop.f32.mrf.mxu0  ;;  %2609 = vmatprep.subr.bf16.mxu0 %v12087_v7  ;;  %7504 = vmatprep.mubr.msk.bf16.mxu1 %vm8275_vm0, %v12004_v5  ;;  %v1898_v9 = vadd.f32 %v1895_v50, %v9389_v33 }
 0x1c0   : > { %v9770_v12 = vadd.f32 %v1893_v53, %v9394_v11  ;;  %v1894_v19 = vadd.f32 %v1848_v34, %v1797_v52  ;;  %v1890_v14 = vpop.f32.mrf.mxu1  ;;  %2635 = vmatprep.mubr.bf16.mxu0 %v12006_v36 }
 0x1c1   : > { %v1850_v17 = vpop.f32.mrf.mxu0  ;;  %7495 = vmatpush3.bf16.msra.mxu1 %v12058_v44  ;;  %v1901_v23 = vmax.f32 %v1898_v9, 0.0  ;;  %v12097_v44 = vld [vmem:[#allocation15_spill] sm:$0xff] }
 0x1c2   : > { %v9775_v18 = vadd.f32 %v1894_v19, %v9401_v39  ;;  %v7363_v20 = vpop.f32.mrf.mxu1  ;;  %2610 = vmatpush1.bf16.msra.mxu0 %v12060_v56  ;;  %7496 = vmatprep.subr.bf16.mxu1 %v12004_v5  ;;  %v12096_v56 = vld [vmem:[#allocation31_spill] sm:$0xff] }
 0x1c3   : > { %v1851_v22 = vpop.f32.mrf.mxu0  ;;  %2611 = vmatprep.subr.bf16.mxu0 %v9199_v16  ;;  %v12089_v16 = vld [vmem:[#allocation8_spill] sm:$0xff] }
 0x1c4   : > { %v1900_v24 = vmax.f32 %v9775_v18, 0.0 }
 0x1c5   : > { %7497 = vmatpush3.bf16.msra.mxu1 %v9205_v27  ;;  %v12090_v27 = vld [vmem:[#allocation9_spill] sm:$0xff] }
 0x1c6   : > { %2612 = vmatpush1.bf16.msra.mxu0 %v9211_v1  ;;  %7498 = vmatprep.subr.bf16.mxu1 %v12004_v5  ;;  %v7553_v25 = vpack.i.bf16 %v1901_v23, %v1900_v24  ;;  %v12091_v1 = vld [vmem:[#allocation10_spill] sm:$0xff] }
 0x1c7   : > { %2613 = vmatprep.subr.bf16.mxu0 %v9428_v26 }
 0x1c8   : > { %7554 = vrot.lane.b32.xlu1 %v7553_v25, %s8277_s26 }
 0x1c9   : > { %7499 = vmatpush3.bf16.msra.mxu1 %v9435_v40  ;;  %v12098_v40 = vld [vmem:[#allocation16_spill] sm:$0xff] }
 0x1ca   : > { %2614 = vmatpush1.bf16.msra.mxu0 %v12088_v28  ;;  %7500 = vmatprep.subr.bf16.mxu1 %v12004_v5 }
 0x1cb   : > { %2615 = vmatprep.subr.bf16.mxu0 %v12089_v16 }
 0x1cd   : > { %7501 = vmatpush3.bf16.msra.mxu1 %v12090_v27 }
 0x1ce   : > { %2616 = vmatpush1.bf16.msra.mxu0 %v12091_v1  ;;  %7502 = vmatprep.subr.bf16.mxu1 %v12004_v5 }
 0x1cf   : > { %2617 = vmatprep.subr.bf16.mxu0 %v12092_v30 }
 0x1d1   : > { %7503 = vmatpush3.bf16.msra.mxu1 %v12093_v32 }
 0x1d2   : > { %2618 = vmatpush1.bf16.msra.mxu0 %v12094_v37  ;;  %7508 = vmatprep.subr.bf16.mxu1 %v12004_v5 }
 0x1d3   : > { %2704 = vmatprep.subr.bf16.mxu0 %v12095_v43 }
 0x1d4   : > { %v1988_v45 = vpop.f32.mrf.mxu1  ;;  %7505 = vmatmul.mubr.msk.bf16.vlgmr.msra.gmra.mxu1 %vm535_vm1, %v12096_v56 }
 0x1d5   : > { %v1947_v54 = vpop.f32.mrf.mxu0  ;;  %6453 = vmatmul.mubr.msk.bf16.vlgmr.msra.gmra.mxu0 %vm535_vm1, %v12096_v56  ;;  %7509 = vmatpush3.bf16.msra.mxu1 %v12097_v44 }
 0x1d6   : > { %v7378_v26 = vpop.f32.mrf.mxu1  ;;  %2705 = vmatpush1.bf16.msra.mxu0 %v12098_v40  ;;  %7510 = vmatprep.subr.bf16.mxu1 %v12004_v5  ;;  %v9834_v40 = vpop.permute.xlu1 %7549 }
 0x1d7   : > { %v1949_v55 = vpop.f32.mrf.mxu0  ;;  %2706 = vmatprep.subr.bf16.mxu0 %v12099_v42  ;;  %7520 = vmatprep.mubr.msk.bf16.mxu1 %vm8275_vm0, %v12004_v5 }
 0x1d8   : > { %v1991_v13 = vpop.f32.mrf.mxu1  ;;  %2732 = vmatprep.mubr.bf16.mxu0 %v12006_v36 }
 0x1d9   : > { %v1951_v29 = vpop.f32.mrf.mxu0  ;;  %7511 = vmatpush3.bf16.msra.mxu1 %v12100_v6 }
 0x1da   : > { %v7379_v31 = vpop.f32.mrf.mxu1  ;;  %2707 = vmatpush1.bf16.msra.mxu0 %v12101_v10  ;;  %7512 = vmatprep.subr.bf16.mxu1 %v12004_v5 }
 0x1db   : > { %v1952_v41 = vpop.f32.mrf.mxu0  ;;  %2708 = vmatprep.subr.bf16.mxu0 %v12102_v15  ;;  %v7551_v15 = vunpack.i.l.bf16 %v9834_v40 }
 0x1dc   : > { %v7552_v41 = vunpack.i.h.bf16 %v9834_v40  ;;  %v10045_v40 = vld [vmem:[%s11783_s3 + $0xb0] ss:$12 sps:$4 sm:$0xff]  }
 0x1dd   : > { %7513 = vmatpush3.bf16.msra.mxu1 %v12103_v8 }
 0x1de   : > { %2709 = vmatpush1.bf16.msra.mxu0 %v12104_v38  ;;  %7514 = vmatprep.subr.bf16.mxu1 %v12004_v5 }
 0x1df   : > { %2710 = vmatprep.subr.bf16.mxu0 %v12105_v58 }
 0x1e1   : > { %7515 = vmatpush3.bf16.msra.mxu1 %v12106_v59  ;;  %v7692_v59 = vld [vmem:[%s11783_s3 + $0x1a4] ss:$12 sps:$4 sm:$0xff]  }
 0x1e2   : > { %2711 = vmatpush1.bf16.msra.mxu0 %v12107_v61  ;;  %7516 = vmatprep.subr.bf16.mxu1 %v12004_v5  ;;  %v7694_v61 = vld [vmem:[%s11783_s3 + $0x1a8] ss:$12 sps:$4 sm:$0xff]  }
 0x1e3   : > { %2712 = vmatprep.subr.bf16.mxu0 %v12108_v62  ;;  %v7695_v62 = vld [vmem:[%s11783_s3 + $0x1ac] ss:$12 sps:$4 sm:$0xff]  }
 0x1e5   : > { %7517 = vmatpush3.bf16.msra.mxu1 %v12109_v35 }
 0x1e6   : > { %2713 = vmatpush1.bf16.msra.mxu0 %v12110_v2  ;;  %7518 = vmatprep.subr.bf16.mxu1 %v12004_v5 }
 0x1e7   : > { %2714 = vmatprep.subr.bf16.mxu0 %v12111_v3 }
 0x1e9   : > { %7519 = vmatpush3.bf16.msra.mxu1 %v12112_v46  ;;  %v1464_v46 = vsel %vm1463_vm2, %v7551_v15, %v7552_v41  ;;  %v9951_v15 = vld [vmem:[%s11783_s3 + $0xfc] ss:$12 sps:$4 sm:$0xff]  }
 0x1ea   : > { %2715 = vmatpush1.bf16.msra.mxu0 %v12113_v47  ;;  %3117 = vmatprep.subr.bf16.mxu1 %v12006_v36 }
 0x1eb   : > { %3076 = vmatprep.subr.bf16.mxu0 %v7694_v61 }
 0x1ec   : > { %v2069_v48 = vpop.f32.mrf.mxu1  ;;  %7521 = vmatmul.mubr.msk.bf16.vlgmr.msra.gmra.mxu1 %vm535_vm1, %v2696_v4 }
 0x1ed   : > { %v2070_v49 = vadd.f32 %v2069_v48, %v1988_v45  ;;  %v2028_v50 = vpop.f32.mrf.mxu0  ;;  %6456 = vmatmul.mubr.msk.bf16.vlgmr.msra.gmra.mxu0 %vm535_vm1, %v2696_v4  ;;  %3118 = vmatpush1.bf16.msra.mxu1 %v7695_v62  ;;  %v7699_v4 = vld [vmem:[%s11783_s3 + $0x194] ss:$12 sps:$4 sm:$0xff]  }
 0x1ee   : > { %v2029_v51 = vadd.f32 %v2028_v50, %v1947_v54  ;;  %v7394_v52 = vpop.f32.mrf.mxu1  ;;  %3077 = vmatpush1.bf16.msra.mxu0 %v7692_v59  ;;  %v7696_v50 = vld [vmem:[%s11783_s3 + $0x18c] ss:$12 sps:$4 sm:$0xff]   ;;  %3119 = vmatprep.subr.bf16.mxu1 %v12006_v36 }
 0x1ef   : > { %v2030_v53 = vpop.f32.mrf.mxu0  ;;  %3078 = vmatprep.subr.bf16.mxu0 %v7698_v0 }
 0x1f0   : > { %v2031_v5 = vadd.f32 %v2030_v53, %v1949_v55  ;;  %v2072_v57 = vpop.f32.mrf.mxu1  ;;  %v1899_v53 = vmax.f32 %v9770_v12, 0.0  ;;  %v7703_v12 = vld [vmem:[%s11783_s3 + $0x17c] ss:$12 sps:$4 sm:$0xff]  }
 0x1f1   : > { %v2032_v34 = vpop.f32.mrf.mxu0  ;;  %3120 = vmatpush1.bf16.msra.mxu1 %v7699_v4 }
 0x1f2   : > { %v7395_v7 = vpop.f32.mrf.mxu1  ;;  %v7702_v34 = vld [vmem:[%s11783_s3 + $0x178] ss:$12 sps:$4 sm:$0xff]   ;;  %3079 = vmatpush1.bf16.msra.mxu0 %v7696_v50  ;;  %3121 = vmatprep.subr.bf16.mxu1 %v12006_v36 }
 0x1f3   : > { %v2033_v9 = vpop.f32.mrf.mxu0  ;;  %3080 = vmatprep.subr.bf16.mxu0 %v7702_v34 }
 0x1f5   : > { %3122 = vmatpush1.bf16.msra.mxu1 %v7703_v12 }
 0x1f6   : > { %3123 = vmatprep.subr.bf16.mxu1 %v12006_v36 }
 0x204   : > { %v2150_v19 = vpop.f32.mrf.mxu1 }
 0x205   : > { %v2109_v14 = vpop.f32.mrf.mxu0  ;;  %v2158_v44 = vadd.f32 %v2150_v19, %v2070_v49 }
 0x206   : > { %v2156_v17 = vadd.f32 %v2109_v14, %v2029_v51  ;;  %v7410_v20 = vpop.f32.mrf.mxu1  ;;  %v12114_v51 = vld [vmem:[#allocation5_spill] sm:$0xff] }
 0x207   : > { %v2111_v22 = vpop.f32.mrf.mxu0  ;;  %v1454_v52 = vmax.f32 %v12114_v51, 0.0 }
 0x208   : > { %v2153_v23 = vpop.f32.mrf.mxu1  ;;  %v2157_v55 = vadd.f32 %v2111_v22, %v2031_v5  ;;  %v7706_v22 = vld [vmem:[%s11783_s3 + $0x160] ss:$12 sps:$4 sm:$0xff]  }
 0x209   : > { %v2113_v25 = vpop.f32.mrf.mxu0  ;;  %v1467_v9 = vmax.f32 %v1454_v52, %v1464_v46  ;;  %v7707_v23 = vld [vmem:[%s11783_s3 + $0x164] ss:$12 sps:$4 sm:$0xff]  }
 0x20a   : > { %v7411_v28 = vpop.f32.mrf.mxu1  ;;  %v7704_v25 = vld [vmem:[%s11783_s3 + $0x15c] ss:$12 sps:$4 sm:$0xff]   ;;  %3124 = vmatpush1.bf16.msra.mxu1 %v7707_v23 }
 0x20b   : > { %v2114_v16 = vpop.f32.mrf.mxu0  ;;  %v7710_v28 = vld [vmem:[%s11783_s3 + $0x148] ss:$12 sps:$4 sm:$0xff]   ;;  %3125 = vmatprep.subr.bf16.mxu1 %v12006_v36 }
 0x20c   : > { %v7711_v16 = vld [vmem:[%s11783_s3 + $0x14c] ss:$12 sps:$4 sm:$0xff]  }
 0x20e   : > { %3126 = vmatpush1.bf16.msra.mxu1 %v7711_v16 }
 0x20f   : > { %3127 = vmatprep.subr.bf16.mxu1 %v12006_v36 }
 0x21c   : > { %v2234_v27 = vpop.f32.mrf.mxu1 }
 0x21d   : > { %v2193_v1 = vpop.f32.mrf.mxu0  ;;  %v2242_v26 = vadd.f32 %v2234_v27, %v2158_v44  ;;  %v7708_v27 = vld [vmem:[%s11783_s3 + $0x144] ss:$12 sps:$4 sm:$0xff]  }
 0x21e   : > { %v2240_v30 = vadd.f32 %v2193_v1, %v2156_v17  ;;  %v7426_v32 = vpop.f32.mrf.mxu1  ;;  %v7700_v17 = vld [vmem:[%s11783_s3 + $0x174] ss:$12 sps:$4 sm:$0xff]   ;;  %v7714_v1 = vld [vmem:[%s11783_s3 + $0x130] ss:$12 sps:$4 sm:$0xff]  }
 0x21f   : > { %v2195_v37 = vpop.f32.mrf.mxu0  ;;  %3081 = vmatpush1.bf16.msra.mxu0 %v7700_v17  ;;  %v7712_v32 = vld [vmem:[%s11783_s3 + $0x12c] ss:$12 sps:$4 sm:$0xff]  }
 0x220   : > { %v2237_v43 = vpop.f32.mrf.mxu1  ;;  %v2241_v6 = vadd.f32 %v2195_v37, %v2157_v55  ;;  %3082 = vmatprep.subr.bf16.mxu0 %v7706_v22 }
 0x221   : > { %v2197_v45 = vpop.f32.mrf.mxu0  ;;  %v7718_v43 = vld [vmem:[%s11783_s3 + $0x118] ss:$12 sps:$4 sm:$0xff]  }
 0x222   : > { %v7427_v56 = vpop.f32.mrf.mxu1 }
 0x223   : > { %v2198_v54 = vpop.f32.mrf.mxu0  ;;  %3083 = vmatpush1.bf16.msra.mxu0 %v7704_v25 }
 0x224   : > { %3084 = vmatprep.subr.bf16.mxu0 %v7710_v28  ;;  %v7719_v54 = vld [vmem:[%s11783_s3 + $0x11c] ss:$12 sps:$4 sm:$0xff]  }
 0x227   : > { %3085 = vmatpush1.bf16.msra.mxu0 %v7708_v27 }
 0x228   : > { %3086 = vmatprep.subr.bf16.mxu0 %v7714_v1 }
 0x22b   : > { %3087 = vmatpush1.bf16.msra.mxu0 %v7712_v32 }
 0x22c   : > { %3088 = vmatprep.subr.bf16.mxu0 %v7718_v43  ;;  %v9982_v43 = vld [vmem:[%s11783_s3 + $0x1d4] ss:$12 sps:$4 sm:$0xff]  }
 0x234   : > { %v2331_v42 = vpop.f32.mrf.mxu1 }
 0x235   : > { %v2339_v13 = vadd.f32 %v2331_v42, %v2242_v26  ;;  %v2290_v29 = vpop.f32.mrf.mxu0  ;;  %v9931_v26 = vld [vmem:[%s11783_s3 + $0x114] ss:$12 sps:$4 sm:$0xff]  }
 0x236   : > { %v2337_v31 = vadd.f32 %v2290_v29, %v2240_v30  ;;  %v7442_v10 = vpop.f32.mrf.mxu1  ;;  %v7715_v30 = vld [vmem:[%s11783_s3 + $0x134] ss:$12 sps:$4 sm:$0xff]   ;;  %v6498_v29 = vld [vmem:[%s11783_s3 + $0x1ec] sm:$0xff]  ;;  %3089 = vmatpush1.bf16.msra.mxu0 %v9931_v26 }
 0x237   : > { %v2292_v21 = vpop.f32.mrf.mxu0  ;;  %v2342_v8 = vadd.f32 %v2339_v13, %v9389_v33  ;;  %3128 = vmatpush1.bf16.msra.mxu1 %v7715_v30  ;;  %v9937_v42 = vld [vmem:[%s11783_s3 + $0x100] ss:$12 sps:$4 sm:$0xff]  }
 0x238   : > { %v9840_v38 = vadd.f32 %v2337_v31, %v9394_v11  ;;  %v2338_v58 = vadd.f32 %v2292_v21, %v2241_v6  ;;  %v2334_v60 = vpop.f32.mrf.mxu1  ;;  %3129 = vmatprep.subr.bf16.mxu1 %v12006_v36  ;;  %v9945_v31 = vld [vmem:[%s11783_s3 + $0x104] ss:$12 sps:$4 sm:$0xff]   ;;  %v7726_v21 = vld [vmem:[%s11783_s3 + $0x1f4] ss:$0 sps:$4 sm:$0xff]   ;;  %3090 = vmatprep.subr.bf16.mxu0 %v9937_v42 }
 0x239   : > { %v2294_v63 = vpop.f32.mrf.mxu0  ;;  %v2345_v5 = vmax.f32 %v2342_v8, 0.0  ;;  %v9958_v8 = vcombine.high %v6498_v29, %v6498_v29  ;;  %v9964_v60 = vsel %vm3066_vm3, %v7726_v21, 0 }
 0x23a   : > { %v9855_v35 = vadd.f32 %v2338_v58, %v9401_v39  ;;  %v7443_v2 = vpop.f32.mrf.mxu1  ;;  %v9857_v3 = vpop.permute.xlu1 %7554  ;;  %v6530_v58 = vcombine.low %v6498_v29, %v6498_v29  ;;  %3091 = vmatpush1.bf16.msra.mxu0 %v9951_v15  ;;  %v9995_v29 = vld [vmem:[%s11783_s3 + $0x1c0] ss:$12 sps:$4 sm:$0xff]  }
 0x23b   : > { %v7557_v47 = vunpack.i.h.bf16 %v9857_v3  ;;  %v7556_v48 = vunpack.i.l.bf16 %v9857_v3  ;;  %v2295_v49 = vpop.f32.mrf.mxu0  ;;  %3130 = vmatpush1.bf16.msra.mxu1 %v7719_v54  ;;  %6533 = vmatprep.subr.msk.bf16.mxu0 %vm3066_vm3, %v9958_v8 }
 0x23c   : > { %v2344_v57 = vmax.f32 %v9855_v35, 0.0  ;;  %3131 = vmatprep.subr.bf16.mxu1 %v12006_v36  ;;  %v9969_v59 = vsel %vm3066_vm3, %v6530_v58, 0  ;;  %v10001_v58 = vld [vmem:[%s11783_s3 + $0x1bc] ss:$12 sps:$4 sm:$0xff]  }
 0x23d   : > { %v1908_v7 = vsel %vm1463_vm2, %v7556_v48, %v7557_v47 }
 0x23e   : > { %v1911_v19 = vmax.f32 %v1899_v53, %v1908_v7  ;;  %v7538_v14 = vpack.i.bf16 %v2345_v5, %v2344_v57  ;;  %3103 = vmatpush2.bf16.msra.mxu0 %v9969_v59 }
 0x23f   : > { %3132 = vmatpush1.bf16.msra.mxu1 %v9945_v31 }
 0x240   : > { %v9889_v20 = vmax.f32 %v1467_v9, %v1911_v19  ;;  %7539 = vrot.lane.b32.xlu0 %v7538_v14, %s8277_s26  ;;  %3143 = vmatprep.subr.bf16.mxu1 %v12006_v36 }
 0x243   : > { %3144 = vmatpush2.bf16.msra.mxu1 %v9964_v60 }
 0x244   : > { %3145 = vmatprep.subr.bf16.mxu1 %v12006_v36 }
 0x24c   : > { %v2432_v37 = vpop.f32.mrf.mxu1 }
 0x24d   : > { %v2391_v45 = vpop.f32.mrf.mxu0 }
 0x24e   : > { %v7458_v56 = vpop.f32.mrf.mxu1 }
 0x24f   : > { %v2393_v44 = vpop.f32.mrf.mxu0 }
 0x250   : > { %v2435_v55 = vpop.f32.mrf.mxu1 }
 0x251   : > { %v2395_v13 = vpop.f32.mrf.mxu0 }
 0x252   : > { %v7459_v6 = vpop.f32.mrf.mxu1 }
 0x253   : > { %v2396_v10 = vpop.f32.mrf.mxu0 }
 0x264   : > { %v2513_v61 = vpop.f32.mrf.mxu1 }
 0x265   : > { %v2514_v62 = vadd.f32 %v2513_v61, %v2432_v37  ;;  %v2472_v63 = vpop.f32.mrf.mxu0  ;;  %v9977_v37 = vld [vmem:[%s11783_s3 + $0x1d8] ss:$12 sps:$4 sm:$0xff]  }
 0x266   : > { %v2473_v0 = vadd.f32 %v2472_v63, %v2391_v45  ;;  %v7474_v2 = vpop.f32.mrf.mxu1  ;;  %v9987_v45 = vld [vmem:[%s11783_s3 + $0x1dc] ss:$12 sps:$4 sm:$0xff]   ;;  %3104 = vmatprep.subr.bf16.mxu0 %v9977_v37  ;;  %v10006_v61 = vld [vmem:[%s11783_s3 + $0x1c4] ss:$12 sps:$4 sm:$0xff]  }
 0x267   : > { %v2474_v4 = vpop.f32.mrf.mxu0  ;;  %3105 = vmatpush2.bf16.msra.mxu0 %v9982_v43  ;;  %3146 = vmatpush2.bf16.msra.mxu1 %v9987_v45 }
 0x268   : > { %v2475_v46 = vadd.f32 %v2474_v4, %v2393_v44  ;;  %v2516_v48 = vpop.f32.mrf.mxu1  ;;  %3147 = vmatprep.subr.bf16.mxu1 %v12006_v36  ;;  %3106 = vmatprep.subr.bf16.mxu0 %v9995_v29 }
 0x269   : > { %v2476_v49 = vpop.f32.mrf.mxu0  ;;  %v10016_v48 = vld [vmem:[%s11783_s3 + $0xac] ss:$12 sps:$4 sm:$0xff]  }
 0x26a   : > { %v7475_v50 = vpop.f32.mrf.mxu1 }
 0x26b   : > { %v2477_v51 = vpop.f32.mrf.mxu0  ;;  %3107 = vmatpush2.bf16.msra.mxu0 %v10001_v58  ;;  %3148 = vmatpush2.bf16.msra.mxu1 %v10006_v61 }
 0x26c   : > { %3378 = vmatprep.subr.bf16.mxu1 %v12006_v36  ;;  %3337 = vmatprep.subr.bf16.mxu0 %v10016_v48 }
 0x27c   : > { %v2594_v52 = vpop.f32.mrf.mxu1 }
 0x27d   : > { %v2553_v53 = vpop.f32.mrf.mxu0  ;;  %v2602_v32 = vadd.f32 %v2594_v52, %v2514_v62 }
 0x27e   : > { %v2600_v5 = vadd.f32 %v2553_v53, %v2473_v0  ;;  %v7490_v34 = vpop.f32.mrf.mxu1 }
 0x27f   : > { %v2555_v7 = vpop.f32.mrf.mxu0 }
 0x280   : > { %v2597_v9 = vpop.f32.mrf.mxu1  ;;  %v2601_v54 = vadd.f32 %v2555_v7, %v2475_v46 }
 0x281   : > { %v2557_v19 = vpop.f32.mrf.mxu0 }
 0x282   : > { %v7491_v14 = vpop.f32.mrf.mxu1 }
 0x283   : > { %v2558_v12 = vpop.f32.mrf.mxu0 }
 0x284   : > { %v2343_v12 = vmax.f32 %v9840_v38, 0.0 }
 0x294   : > { %v2678_v17 = vpop.f32.mrf.mxu1 }
 0x295   : > { %v2637_v22 = vpop.f32.mrf.mxu0  ;;  %v2686_v56 = vadd.f32 %v2678_v17, %v2602_v32 }
 0x296   : > { %v2684_v23 = vadd.f32 %v2637_v22, %v2600_v5  ;;  %v7506_v25 = vpop.f32.mrf.mxu1 }
 0x297   : > { %v2639_v28 = vpop.f32.mrf.mxu0 }
 0x298   : > { %v2681_v16 = vpop.f32.mrf.mxu1  ;;  %v2685_v6 = vadd.f32 %v2639_v28, %v2601_v54  ;;  %v12115_v28 = vld [vmem:[#allocation6_spill] sm:$0xff]  ;;  %v10081_v54 = vld [vmem:[%s11783_s3 + $0x7c] ss:$12 sps:$4 sm:$0xff]  }
 0x299   : > { %v2641_v27 = vpop.f32.mrf.mxu0  ;;  %v12116_v16 = vmax.f32 %v12115_v28, 0.0 }
 0x29a   : > { %v7507_v1 = vpop.f32.mrf.mxu1 }
 0x29b   : > { %v2642_v30 = vpop.f32.mrf.mxu0  ;;  %v1468_v27 = vmax.f32 %v12116_v16, %v7552_v41  ;;  %v10056_v41 = vld [vmem:[%s11783_s3 + $0x94] ss:$12 sps:$4 sm:$0xff]  }
 0x29c   : > { %v10262_v16 = vld [vmem:[%s11783_s3 + $0x2a0] ss:$12 sps:$4 sm:$0xff]  }
 0x29d   : > { %12117 = vst [vmem:[#allocation29_spill] sm:$0xff] %v10262_v16 }
 0x2ac   : > { %v2775_v44 = vpop.f32.mrf.mxu1 }
 0x2ad   : > { %v2783_v55 = vadd.f32 %v2775_v44, %v2686_v56  ;;  %v2734_v13 = vpop.f32.mrf.mxu0  ;;  %v10072_v56 = vld [vmem:[%s11783_s3 + $0x98] ss:$12 sps:$4 sm:$0xff]  }
 0x2ae   : > { %v2781_v10 = vadd.f32 %v2734_v13, %v2684_v23  ;;  %v7522_v21 = vpop.f32.mrf.mxu1  ;;  %v10090_v44 = vld [vmem:[%s11783_s3 + $0x78] ss:$12 sps:$4 sm:$0xff]  }
 0x2af   : > { %v2736_v62 = vpop.f32.mrf.mxu0  ;;  %v2786_v63 = vadd.f32 %v2783_v55, %v9389_v33  ;;  %v10095_v55 = vld [vmem:[%s11783_s3 + $0x80] ss:$12 sps:$4 sm:$0xff]   ;;  %v10102_v13 = vld [vmem:[%s11783_s3 + $0x64] ss:$12 sps:$4 sm:$0xff]  }
 0x2b0   : > { %v2784_v0 = vadd.f32 %v2781_v10, %v9394_v11  ;;  %v2782_v2 = vadd.f32 %v2736_v62, %v2685_v6  ;;  %v2778_v4 = vpop.f32.mrf.mxu1  ;;  %v10109_v6 = vld [vmem:[%s11783_s3 + $0x60] ss:$12 sps:$4 sm:$0xff]   ;;  %v10114_v10 = vld [vmem:[%s11783_s3 + $0x68] ss:$12 sps:$4 sm:$0xff]  }
 0x2b1   : > { %v2738_v46 = vpop.f32.mrf.mxu0  ;;  %v2789_v11 = vmax.f32 %v2786_v63, 0.0  ;;  %v10121_v21 = vld [vmem:[%s11783_s3 + $0x4c] ss:$12 sps:$4 sm:$0xff]   ;;  %v10128_v62 = vld [vmem:[%s11783_s3 + $0x48] ss:$12 sps:$4 sm:$0xff]  }
 0x2b2   : > { %v2785_v49 = vadd.f32 %v2782_v2, %v9401_v39  ;;  %v7523_v50 = vpop.f32.mrf.mxu1  ;;  %v7540_v53 = vpop.permute.xlu0 %7539  ;;  %v1912_v39 = vmax.f32 %v1900_v24, %v7557_v47  ;;  %v2787_v17 = vmax.f32 %v2784_v0, 0.0  ;;  %v10040_v24 = vld [vmem:[%s11783_s3 + $0xa8] ss:$12 sps:$4 sm:$0xff]   ;;  %v10133_v63 = vld [vmem:[%s11783_s3 + $0x50] ss:$12 sps:$4 sm:$0xff]  }
 0x2b3   : > { %v2739_v33 = vpop.f32.mrf.mxu0  ;;  %v7542_v5 = vunpack.i.h.bf16 %v7540_v53  ;;  %v7541_v34 = vunpack.i.l.bf16 %v7540_v53  ;;  %v10140_v0 = vld [vmem:[%s11783_s3 + $0x34] ss:$12 sps:$4 sm:$0xff]   ;;  %v10147_v2 = vld [vmem:[%s11783_s3 + $0x30] ss:$12 sps:$4 sm:$0xff]   ;;  %v10152_v4 = vld [vmem:[%s11783_s3 + $0x38] ss:$12 sps:$4 sm:$0xff]  }
 0x2b4   : > { %v2788_v51 = vmax.f32 %v2785_v49, 0.0  ;;  %v2802_v32 = vmax.f32 %v1468_v27, %v1912_v39  ;;  %v10159_v46 = vld [vmem:[%s11783_s3 + $0x1c] ss:$12 sps:$4 sm:$0xff]   ;;  %v10166_v49 = vld [vmem:[%s11783_s3 + $0x18] ss:$12 sps:$4 sm:$0xff]  }
 0x2b5   : > { %v2352_v9 = vsel %vm1463_vm2, %v7541_v34, %v7542_v5  ;;  %v2356_v22 = vmax.f32 %v2344_v57, %v7542_v5  ;;  %v10067_v57 = vld [vmem:[%s11783_s3 + $0x90] ss:$12 sps:$4 sm:$0xff]   ;;  %v10171_v50 = vld [vmem:[%s11783_s3 + $0x20] ss:$12 sps:$4 sm:$0xff]   ;;  %v7769_v34 = vld [vmem:[%s11783_s3 + $0xf8] ss:$0 sps:$4 sm:$0xff]  }
 0x2b6   : > { %v7543_v52 = vpack.i.bf16 %v2789_v11, %v2788_v51  ;;  %v2355_v1 = vmax.f32 %v2343_v12, %v2352_v9  ;;  %v10058_v47 = vpack.c.bf16 %v2802_v32, %v2802_v32  ;;  %v10178_v33 = vld [vmem:[%s11783_s3 + $0x4] ss:$12 sps:$4 sm:$0xff]   ;;  %v10211_v9 = vsel %vm3066_vm3, %v7769_v34, 0  ;;  %v10228_v12 = vld [vmem:[%s11783_s3 + $0xe0] ss:$12 sps:$4 sm:$0xff]  }
 0x2b7   : > { %v2849_v11 = vld [vmem:[%s11783_s3 + $0xf0] sm:$0xff]  ;;  %v10281_v32 = vld [vmem:[%s11783_s3 + $0x28c] ss:$12 sps:$4 sm:$0xff]  }
 0x2b8   : > { %7544 = vrot.lane.b32.xlu0 %v7543_v52, %s8277_s26  ;;  %v10193_v52 = vld [vmem:[%s11783_s3 + $0x8] ss:$12 sps:$4 sm:$0xff]   ;;  %v10197_v53 = vcombine.high %v2849_v11, %v2849_v11  ;;  %v6566_v5 = vcombine.low %v2849_v11, %v2849_v11  ;;  %v10235_v39 = vld [vmem:[%s11783_s3 + $0xc4] ss:$12 sps:$4 sm:$0xff]   ;;  %v3468_v27 = vshrl.u32 %v10058_v47, 16  ;;  %12119 = vst [vmem:[#allocation8_spill] sm:$0xff] %v10281_v32  ;;  %s384_s26 = scalar_lea.vmem %s11791_s11, %s6227_s19 }
 0x2b9   : > { %v10304_v11 = vld [vmem:[%s11783_s3 + $0x274] ss:$12 sps:$4 sm:$0xff]   ;;  %v10319_v34 = vld [vmem:[%s11783_s3 + $0x278] ss:$12 sps:$4 sm:$0xff]  }
 0x2ba   : > { %12122 = vst [vmem:[#allocation11_spill] sm:$0xff] %v10304_v11  ;;  %12124 = vst [vmem:[#allocation13_spill] sm:$0xff] %v10319_v34 }
 0x32a   : > { %v7545_v7 = vpop.permute.xlu0 %7544 }
 0x32b   : > { %v7547_v19 = vunpack.i.h.bf16 %v7545_v7  ;;  %v7546_v14 = vunpack.i.l.bf16 %v7545_v7  ;;  %v10208_v7 = vsel %vm3066_vm3, %v6566_v5, 0  ;;  %v10312_v5 = vld [vmem:[%s11783_s3 + $0x270] ss:$12 sps:$4 sm:$0xff]  }
 0x32c   : > { %12123 = vst [vmem:[#allocation12_spill] sm:$0xff] %v10312_v5 }
 0x32d   : > { %v2800_v23 = vmax.f32 %v2788_v51, %v7547_v19  ;;  %v2796_v25 = vsel %vm1463_vm2, %v7546_v14, %v7547_v19  ;;  %v10188_v51 = vld [vmem:[%s11783_s3] ss:$12 sps:$4 sm:$0xff]   ;;  %v10216_v19 = vld [vmem:[%s11783_s3 + $0xdc] ss:$12 sps:$4 sm:$0xff]   ;;  %v10223_v14 = vld [vmem:[%s11783_s3 + $0xd8] ss:$12 sps:$4 sm:$0xff]  }
 0x32e   : > { %v2799_v30 = vmax.f32 %v2787_v17, %v2796_v25  ;;  %v3470_v17 = vshll.u32 %v10058_v47, 16  ;;  %v10255_v25 = vld [vmem:[%s11783_s3 + $0x2a4] ss:$12 sps:$4 sm:$0xff]  }
 0x32f   : > { %v2806_v38 = vmax.f32 %v2356_v22, %v2800_v23  ;;  %v10243_v22 = vld [vmem:[%s11783_s3 + $0xc0] ss:$12 sps:$4 sm:$0xff]   ;;  %v10248_v23 = vld [vmem:[%s11783_s3 + $0xc8] ss:$12 sps:$4 sm:$0xff]  }
 0x330   : > { %v2805_v3 = vmax.f32 %v2355_v1, %v2799_v30  ;;  %v3472_v28 = vrot.slane %v3470_v17, 1  ;;  %v10267_v1 = vpack.c.bf16 %v9889_v20, %v9889_v20  ;;  %v10274_v30 = vld [vmem:[%s11783_s3 + $0x2a8] ss:$12 sps:$4 sm:$0xff]  }
 0x331   : > { %v10035_v18 = vpack.c.bf16 %v2806_v38, %v2806_v38  ;;  %12118 = vst [vmem:[#allocation7_spill] sm:$0xff] %v10274_v30  ;;  %v10291_v20 = vld [vmem:[%s11783_s3 + $0x288] ss:$12 sps:$4 sm:$0xff]  }
 0x332   : > { %v10047_v35 = vpack.c.bf16 %v2805_v3, %v2805_v3  ;;  %v10276_v38 = vor.u32 %v3472_v28, %v3468_v27  ;;  %12120 = vst [vmem:[#allocation9_spill] sm:$0xff] %v10291_v20  ;;  %v10299_v3 = vld [vmem:[%s11783_s3 + $0x290] ss:$12 sps:$4 sm:$0xff]   ;;  %v10331_v28 = vld [vmem:[%s11783_s3 + $0x258] ss:$12 sps:$4 sm:$0xff]  }
 0x333   : > { %6534 = vmatprep.mubr.msk.bf16.mxu0 %vm3062_vm4, %v10035_v18  ;;  %6535 = vmatprep.mubr.msk.bf16.mxu1 %vm3062_vm4, %v10035_v18  ;;  %12121 = vst [vmem:[#allocation10_spill] sm:$0xff] %v10299_v3  ;;  %v10324_v17 = vld [vmem:[%s11783_s3 + $0x25c] ss:$12 sps:$4 sm:$0xff]   ;;  %12126 = vst [vmem:[#allocation31_spill] sm:$0xff] %v10331_v28  ;;  %v10338_v27 = vld [vmem:[%s11783_s3 + $0x260] ss:$12 sps:$4 sm:$0xff]  }
 0x334   : > { %3109 = vmatmul.mubr.bf16.vlgmr.msra.gmra.mxu0 %v10047_v35  ;;  %3150 = vmatmul.mubr.bf16.vlgmr.msra.gmra.mxu1 %v10047_v35  ;;  %12125 = vst [vmem:[#allocation14_spill] sm:$0xff] %v10324_v17  ;;  %12127 = vst [vmem:[#allocation15_spill] sm:$0xff] %v10338_v27 }
 0x335   : > { %3338 = vmatpush1.bf16.msra.mxu0 %v10040_v24  ;;  %3379 = vmatpush1.bf16.msra.mxu1 %v10045_v40 }
 0x336   : > { %6570 = vmatprep.mubr.msk.bf16.mxu0 %vm3062_vm4, %v10058_v47  ;;  %6571 = vmatprep.mubr.msk.bf16.mxu1 %vm3062_vm4, %v10058_v47 }
 0x337   : > { %3339 = vmatprep.subr.bf16.mxu0 %v10056_v41  ;;  %3380 = vmatprep.subr.bf16.mxu1 %v12006_v36 }
 0x339   : > { %3340 = vmatpush1.bf16.msra.mxu0 %v10067_v57  ;;  %3381 = vmatpush1.bf16.msra.mxu1 %v10072_v56 }
 0x33a   : > { %3341 = vmatprep.subr.bf16.mxu0 %v10081_v54  ;;  %3382 = vmatprep.subr.bf16.mxu1 %v12006_v36 }
 0x33d   : > { %3342 = vmatpush1.bf16.msra.mxu0 %v10090_v44  ;;  %3383 = vmatpush1.bf16.msra.mxu1 %v10095_v55 }
 0x33e   : > { %3343 = vmatprep.subr.bf16.mxu0 %v10102_v13  ;;  %3384 = vmatprep.subr.bf16.mxu1 %v12006_v36 }
 0x341   : > { %3344 = vmatpush1.bf16.msra.mxu0 %v10109_v6  ;;  %3385 = vmatpush1.bf16.msra.mxu1 %v10114_v10 }
 0x342   : > { %3345 = vmatprep.subr.bf16.mxu0 %v10121_v21  ;;  %3386 = vmatprep.subr.bf16.mxu1 %v12006_v36 }
 0x345   : > { %3346 = vmatpush1.bf16.msra.mxu0 %v10128_v62  ;;  %3387 = vmatpush1.bf16.msra.mxu1 %v10133_v63 }
 0x346   : > { %3347 = vmatprep.subr.bf16.mxu0 %v10140_v0  ;;  %3388 = vmatprep.subr.bf16.mxu1 %v12006_v36 }
 0x349   : > { %3348 = vmatpush1.bf16.msra.mxu0 %v10147_v2  ;;  %3389 = vmatpush1.bf16.msra.mxu1 %v10152_v4 }
 0x34a   : > { %3349 = vmatprep.subr.bf16.mxu0 %v10159_v46  ;;  %3390 = vmatprep.subr.bf16.mxu1 %v12006_v36 }
 0x34d   : > { %3350 = vmatpush1.bf16.msra.mxu0 %v10166_v49  ;;  %3391 = vmatpush1.bf16.msra.mxu1 %v10171_v50 }
 0x34e   : > { %3351 = vmatprep.subr.bf16.mxu0 %v10178_v33  ;;  %3392 = vmatprep.subr.bf16.mxu1 %v12006_v36 }
 0x351   : > { %3352 = vmatpush1.bf16.msra.mxu0 %v10188_v51  ;;  %3393 = vmatpush1.bf16.msra.mxu1 %v10193_v52 }
 0x352   : > { %6569 = vmatprep.subr.msk.bf16.mxu0 %vm3066_vm3, %v10197_v53  ;;  %3404 = vmatprep.subr.bf16.mxu1 %v12006_v36 }
 0x355   : > { %3364 = vmatpush2.bf16.msra.mxu0 %v10208_v7  ;;  %3405 = vmatpush2.bf16.msra.mxu1 %v10211_v9 }
 0x356   : > { %3365 = vmatprep.subr.bf16.mxu0 %v10216_v19  ;;  %3406 = vmatprep.subr.bf16.mxu1 %v12006_v36 }
 0x359   : > { %3366 = vmatpush2.bf16.msra.mxu0 %v10223_v14  ;;  %3407 = vmatpush2.bf16.msra.mxu1 %v10228_v12 }
 0x35a   : > { %3367 = vmatprep.subr.bf16.mxu0 %v10235_v39  ;;  %3408 = vmatprep.subr.bf16.mxu1 %v12006_v36 }
 0x35d   : > { %3368 = vmatpush2.bf16.msra.mxu0 %v10243_v22  ;;  %3409 = vmatpush2.bf16.msra.mxu1 %v10248_v23 }
 0x35e   : > { %3655 = vmatprep.subr.bf16.mxu0 %v10255_v25  ;;  %3696 = vmatprep.subr.bf16.mxu1 %v12006_v36 }
 0x360   : > { %3370 = vmatmul.mubr.bf16.vlgmr.msra.gmra.mxu0 %v10267_v1  ;;  %3411 = vmatmul.mubr.bf16.vlgmr.msra.gmra.mxu1 %v10267_v1 }
 0x361   : > { %3656 = vmatpush1.bf16.msra.mxu0 %v10262_v16  ;;  %6648 = vmatprep.mubr.msk.bf16.mxu0 %vm3062_vm4, %v10276_v38  ;;  %v10496_v16 = vld [vmem:[%s11783_s3 + $0x3a4] ss:$12 sps:$4 sm:$0xff]  }
 0x362   : > { %3697 = vmatpush1.bf16.msra.mxu1 %v10274_v30  ;;  %6649 = vmatprep.mubr.msk.bf16.mxu1 %vm3062_vm4, %v10276_v38  ;;  %12150 = vst [vmem:[#allocation38_spill] sm:$0xff] %v10496_v16 }
 0x363   : > { %3657 = vmatprep.subr.bf16.mxu0 %v10281_v32  ;;  %3698 = vmatprep.subr.bf16.mxu1 %v12006_v36  ;;  %v10478_v32 = vld [vmem:[%s11783_s3 + $0x3a0] ss:$12 sps:$4 sm:$0xff]  }
 0x364   : > { %12148 = vst [vmem:[#allocation36_spill] sm:$0xff] %v10478_v32 }
 0x365   : > { %3658 = vmatpush1.bf16.msra.mxu0 %v10291_v20 }
 0x366   : > { %3699 = vmatpush1.bf16.msra.mxu1 %v10299_v3  ;;  %3659 = vmatprep.subr.bf16.mxu0 %v10304_v11  ;;  %v10343_v11 = vld [vmem:[%s11783_s3 + $0x244] ss:$12 sps:$4 sm:$0xff]  }
 0x367   : > { %3700 = vmatprep.subr.bf16.mxu1 %v12006_v36  ;;  %12128 = vst [vmem:[#allocation16_spill] sm:$0xff] %v10343_v11 }
 0x369   : > { %3660 = vmatpush1.bf16.msra.mxu0 %v10312_v5  ;;  %v10362_v5 = vld [vmem:[%s11783_s3 + $0x22c] ss:$12 sps:$4 sm:$0xff]  }
 0x36a   : > { %3701 = vmatpush1.bf16.msra.mxu1 %v10319_v34  ;;  %3661 = vmatprep.subr.bf16.mxu0 %v10324_v17  ;;  %v10350_v34 = vld [vmem:[%s11783_s3 + $0x240] ss:$12 sps:$4 sm:$0xff]   ;;  %v10357_v17 = vld [vmem:[%s11783_s3 + $0x248] ss:$12 sps:$4 sm:$0xff]   ;;  %12131 = vst [vmem:[#allocation19_spill] sm:$0xff] %v10362_v5 }
 0x36b   : > { %3702 = vmatprep.subr.bf16.mxu1 %v12006_v36  ;;  %12129 = vst [vmem:[#allocation17_spill] sm:$0xff] %v10350_v34  ;;  %12130 = vst [vmem:[#allocation18_spill] sm:$0xff] %v10357_v17 }
 0x36d   : > { %3662 = vmatpush1.bf16.msra.mxu0 %v10331_v28  ;;  %v10381_v28 = vld [vmem:[%s11783_s3 + $0x214] ss:$12 sps:$4 sm:$0xff]  }
 0x36e   : > { %3703 = vmatpush1.bf16.msra.mxu1 %v10338_v27  ;;  %3663 = vmatprep.subr.bf16.mxu0 %v10343_v11  ;;  %v10369_v27 = vld [vmem:[%s11783_s3 + $0x228] ss:$12 sps:$4 sm:$0xff]   ;;  %v10376_v11 = vld [vmem:[%s11783_s3 + $0x230] ss:$12 sps:$4 sm:$0xff]   ;;  %12134 = vst [vmem:[#allocation22_spill] sm:$0xff] %v10381_v28 }
 0x36f   : > { %3704 = vmatprep.subr.bf16.mxu1 %v12006_v36  ;;  %12132 = vst [vmem:[#allocation20_spill] sm:$0xff] %v10369_v27  ;;  %12133 = vst [vmem:[#allocation21_spill] sm:$0xff] %v10376_v11 }
 0x371   : > { %3664 = vmatpush1.bf16.msra.mxu0 %v10350_v34  ;;  %v10400_v34 = vld [vmem:[%s11783_s3 + $0x1fc] ss:$12 sps:$4 sm:$0xff]  }
 0x372   : > { %3705 = vmatpush1.bf16.msra.mxu1 %v10357_v17  ;;  %3665 = vmatprep.subr.bf16.mxu0 %v10362_v5  ;;  %v10388_v17 = vld [vmem:[%s11783_s3 + $0x210] ss:$12 sps:$4 sm:$0xff]   ;;  %v10395_v5 = vld [vmem:[%s11783_s3 + $0x218] ss:$12 sps:$4 sm:$0xff]   ;;  %12137 = vst [vmem:[#allocation25_spill] sm:$0xff] %v10400_v34 }
 0x373   : > { %3706 = vmatprep.subr.bf16.mxu1 %v12006_v36  ;;  %12135 = vst [vmem:[#allocation23_spill] sm:$0xff] %v10388_v17  ;;  %12136 = vst [vmem:[#allocation24_spill] sm:$0xff] %v10395_v5 }
 0x375   : > { %3666 = vmatpush1.bf16.msra.mxu0 %v10369_v27  ;;  %v6612_v27 = vld [vmem:[%s11783_s3 + $0x2e8] sm:$0xff] }
 0x376   : > { %3707 = vmatpush1.bf16.msra.mxu1 %v10376_v11  ;;  %3667 = vmatprep.subr.bf16.mxu0 %v10381_v28  ;;  %v10410_v28 = vld [vmem:[%s11783_s3 + $0x1f8] ss:$12 sps:$4 sm:$0xff]   ;;  %v10417_v11 = vld [vmem:[%s11783_s3 + $0x200] ss:$12 sps:$4 sm:$0xff]   ;;  %v10419_v3 = vcombine.high %v6612_v27, %v6612_v27  ;;  %v6644_v20 = vcombine.low %v6612_v27, %v6612_v27 }
 0x377   : > { %3708 = vmatprep.subr.bf16.mxu1 %v12006_v36  ;;  %12138 = vst [vmem:[#allocation26_spill] sm:$0xff] %v10410_v28  ;;  %12139 = vst [vmem:[#allocation27_spill] sm:$0xff] %v10417_v11  ;;  %v10435_v27 = vld [vmem:[%s11783_s3 + $0x2d4] ss:$12 sps:$4 sm:$0xff]  }
 0x378   : > { %12140 = vst [vmem:[#allocation28_spill] sm:$0xff] %v10419_v3  ;;  %12142 = vst [vmem:[#allocation32_spill] sm:$0xff] %v10435_v27 }
 0x379   : > { %3668 = vmatpush1.bf16.msra.mxu0 %v10388_v17  ;;  %v7812_v17 = vld [vmem:[%s11783_s3 + $0x2f0] ss:$0 sps:$4 sm:$0xff]  }
 0x37a   : > { %3709 = vmatpush1.bf16.msra.mxu1 %v10395_v5  ;;  %3669 = vmatprep.subr.bf16.mxu0 %v10400_v34  ;;  %v10430_v34 = vsel %vm3066_vm3, %v6644_v20, 0  ;;  %v10439_v5 = vsel %vm3066_vm3, %v7812_v17, 0  ;;  %v10452_v20 = vld [vmem:[%s11783_s3 + $0x2d8] ss:$12 sps:$4 sm:$0xff]   ;;  %v10457_v17 = vld [vmem:[%s11783_s3 + $0x2bc] ss:$12 sps:$4 sm:$0xff]  }
 0x37b   : > { %3710 = vmatprep.subr.bf16.mxu1 %v12006_v36  ;;  %12141 = vst [vmem:[#allocation30_spill] sm:$0xff] %v10430_v34  ;;  %12143 = vst [vmem:[#allocation33_spill] sm:$0xff] %v10439_v5 }
 0x37c   : > { %12145 = vst [vmem:[#allocation6_spill] sm:$0xff] %v10452_v20  ;;  %12146 = vst [vmem:[#allocation34_spill] sm:$0xff] %v10457_v17 }
 0x37d   : > { %3670 = vmatpush1.bf16.msra.mxu0 %v10410_v28 }
 0x37e   : > { %3711 = vmatpush1.bf16.msra.mxu1 %v10417_v11  ;;  %6647 = vmatprep.subr.msk.bf16.mxu0 %vm3066_vm3, %v10419_v3  ;;  %v10445_v11 = vld [vmem:[%s11783_s3 + $0x2d0] ss:$12 sps:$4 sm:$0xff]   ;;  %v3791_v3 = vshll.u32 %v10035_v18, 16 }
 0x37f   : > { %3722 = vmatprep.subr.bf16.mxu1 %v12006_v36  ;;  %12144 = vst [vmem:[#allocation5_spill] sm:$0xff] %v10445_v11 }
 0x380   : > { %v3793_v30 = vrot.slane %v3791_v3, 1  ;;  %v10502_v3 = vld [vmem:[%s11783_s3 + $0x388] ss:$12 sps:$4 sm:$0xff]  }
 0x381   : > { %3682 = vmatpush2.bf16.msra.mxu0 %v10430_v34  ;;  %v3464_v34 = vshll.u32 %v10267_v1, 16  ;;  %12151 = vst [vmem:[#allocation39_spill] sm:$0xff] %v10502_v3 }
 0x382   : > { %3723 = vmatpush2.bf16.msra.mxu1 %v10439_v5  ;;  %3683 = vmatprep.subr.bf16.mxu0 %v10435_v27  ;;  %v10466_v27 = vld [vmem:[%s11783_s3 + $0x2b8] ss:$12 sps:$4 sm:$0xff]   ;;  %v10473_v5 = vld [vmem:[%s11783_s3 + $0x2c0] ss:$12 sps:$4 sm:$0xff]  }
 0x383   : > { %3724 = vmatprep.subr.bf16.mxu1 %v12006_v36  ;;  %12147 = vst [vmem:[#allocation35_spill] sm:$0xff] %v10473_v5  ;;  %v3466_v28 = vrot.slane %v3464_v34, 1 }
 0x385   : > { %3684 = vmatpush2.bf16.msra.mxu0 %v10445_v11  ;;  %v3462_v11 = vshrl.u32 %v10267_v1, 16 }
 0x386   : > { %3725 = vmatpush2.bf16.msra.mxu1 %v10452_v20  ;;  %3685 = vmatprep.subr.bf16.mxu0 %v10457_v17  ;;  %v10486_v17 = vld [vmem:[%s11783_s3 + $0x39c] ss:$12 sps:$4 sm:$0xff]   ;;  %v3789_v20 = vshrl.u32 %v10035_v18, 16 }
 0x387   : > { %3726 = vmatprep.subr.bf16.mxu1 %v12006_v36  ;;  %12149 = vst [vmem:[#allocation37_spill] sm:$0xff] %v10486_v17  ;;  %v10489_v34 = vor.u32 %v3466_v28, %v3462_v11  ;;  %v10512_v28 = vld [vmem:[%s11783_s3 + $0x384] ss:$12 sps:$4 sm:$0xff]  }
 0x388   : > { %v10505_v11 = vor.u32 %v3793_v30, %v3789_v20  ;;  %12152 = vst [vmem:[#allocation40_spill] sm:$0xff] %v10512_v28  ;;  %v10525_v30 = vld [vmem:[%s11783_s3 + $0x370] ss:$12 sps:$4 sm:$0xff]   ;;  %v10535_v20 = vld [vmem:[%s11783_s3 + $0x36c] ss:$12 sps:$4 sm:$0xff]  }
 0x389   : > { %3686 = vmatpush2.bf16.msra.mxu0 %v10466_v27  ;;  %12154 = vst [vmem:[#allocation42_spill] sm:$0xff] %v10525_v30  ;;  %12155 = vst [vmem:[#allocation43_spill] sm:$0xff] %v10535_v20 }
 0x38a   : > { %3727 = vmatpush2.bf16.msra.mxu1 %v10473_v5  ;;  %3976 = vmatprep.subr.bf16.mxu0 %v10478_v32  ;;  %v10520_v32 = vld [vmem:[%s11783_s3 + $0x38c] ss:$12 sps:$4 sm:$0xff]  }
 0x38b   : > { %4017 = vmatprep.subr.bf16.mxu1 %v12006_v36  ;;  %12153 = vst [vmem:[#allocation41_spill] sm:$0xff] %v10520_v32 }
 0x38c   : > { %3688 = vmatmul.mubr.bf16.vlgmr.msra.gmra.mxu0 %v10489_v34 }
 0x38d   : > { %3729 = vmatmul.mubr.bf16.vlgmr.msra.gmra.mxu1 %v10489_v34  ;;  %3977 = vmatpush1.bf16.msra.mxu0 %v10486_v17 }
 0x38e   : > { %6726 = vmatprep.mubr.msk.bf16.mxu0 %vm3062_vm4, %v10505_v11  ;;  %4018 = vmatpush1.bf16.msra.mxu1 %v10496_v16  ;;  %v10542_v16 = vld [vmem:[%s11783_s3 + $0x374] ss:$12 sps:$4 sm:$0xff]  }
 0x38f   : > { %6727 = vmatprep.mubr.msk.bf16.mxu1 %vm3062_vm4, %v10505_v11  ;;  %3978 = vmatprep.subr.bf16.mxu0 %v10502_v3  ;;  %12156 = vst [vmem:[#allocation44_spill] sm:$0xff] %v10542_v16  ;;  %v10547_v3 = vld [vmem:[%s11783_s3 + $0x358] ss:$12 sps:$4 sm:$0xff]  }
 0x390   : > { %4019 = vmatprep.subr.bf16.mxu1 %v12006_v36  ;;  %12157 = vst [vmem:[#allocation45_spill] sm:$0xff] %v10547_v3 }
 0x391   : > { %3979 = vmatpush1.bf16.msra.mxu0 %v10512_v28  ;;  %v10566_v28 = vld [vmem:[%s11783_s3 + $0x340] ss:$12 sps:$4 sm:$0xff]  }
 0x392   : > { %4020 = vmatpush1.bf16.msra.mxu1 %v10520_v32  ;;  %3980 = vmatprep.subr.bf16.mxu0 %v10525_v30  ;;  %v10554_v32 = vld [vmem:[%s11783_s3 + $0x354] ss:$12 sps:$4 sm:$0xff]   ;;  %v10561_v30 = vld [vmem:[%s11783_s3 + $0x35c] ss:$12 sps:$4 sm:$0xff]   ;;  %12160 = vst [vmem:[#allocation48_spill] sm:$0xff] %v10566_v28 }
 0x393   : > { %4021 = vmatprep.subr.bf16.mxu1 %v12006_v36  ;;  %12158 = vst [vmem:[#allocation46_spill] sm:$0xff] %v10554_v32  ;;  %12159 = vst [vmem:[#allocation47_spill] sm:$0xff] %v10561_v30 }
 0x395   : > { %3981 = vmatpush1.bf16.msra.mxu0 %v10535_v20  ;;  %v10585_v20 = vld [vmem:[%s11783_s3 + $0x328] ss:$12 sps:$4 sm:$0xff]  }
 0x396   : > { %4022 = vmatpush1.bf16.msra.mxu1 %v10542_v16  ;;  %3982 = vmatprep.subr.bf16.mxu0 %v10547_v3  ;;  %v10573_v16 = vld [vmem:[%s11783_s3 + $0x33c] ss:$12 sps:$4 sm:$0xff]   ;;  %v10580_v3 = vld [vmem:[%s11783_s3 + $0x344] ss:$12 sps:$4 sm:$0xff]   ;;  %12163 = vst [vmem:[#allocation51_spill] sm:$0xff] %v10585_v20 }
 0x397   : > { %4023 = vmatprep.subr.bf16.mxu1 %v12006_v36  ;;  %12161 = vst [vmem:[#allocation49_spill] sm:$0xff] %v10573_v16  ;;  %12162 = vst [vmem:[#allocation50_spill] sm:$0xff] %v10580_v3 }
 0x399   : > { %3983 = vmatpush1.bf16.msra.mxu0 %v10554_v32  ;;  %v10604_v32 = vld [vmem:[%s11783_s3 + $0x310] ss:$12 sps:$4 sm:$0xff]  }
 0x39a   : > { %4024 = vmatpush1.bf16.msra.mxu1 %v10561_v30  ;;  %3984 = vmatprep.subr.bf16.mxu0 %v10566_v28  ;;  %v10592_v30 = vld [vmem:[%s11783_s3 + $0x324] ss:$12 sps:$4 sm:$0xff]   ;;  %v10599_v28 = vld [vmem:[%s11783_s3 + $0x32c] ss:$12 sps:$4 sm:$0xff]   ;;  %12166 = vst [vmem:[#allocation54_spill] sm:$0xff] %v10604_v32 }
 0x39b   : > { %4025 = vmatprep.subr.bf16.mxu1 %v12006_v36  ;;  %12164 = vst [vmem:[#allocation52_spill] sm:$0xff] %v10592_v30  ;;  %12165 = vst [vmem:[#allocation53_spill] sm:$0xff] %v10599_v28 }
 0x39d   : > { %3985 = vmatpush1.bf16.msra.mxu0 %v10573_v16  ;;  %v10623_v16 = vld [vmem:[%s11783_s3 + $0x2f8] ss:$12 sps:$4 sm:$0xff]  }
 0x39e   : > { %4026 = vmatpush1.bf16.msra.mxu1 %v10580_v3  ;;  %3986 = vmatprep.subr.bf16.mxu0 %v10585_v20  ;;  %v10611_v3 = vld [vmem:[%s11783_s3 + $0x30c] ss:$12 sps:$4 sm:$0xff]   ;;  %v10618_v20 = vld [vmem:[%s11783_s3 + $0x314] ss:$12 sps:$4 sm:$0xff]   ;;  %12169 = vst [vmem:[#allocation57_spill] sm:$0xff] %v10623_v16 }
 0x39f   : > { %4027 = vmatprep.subr.bf16.mxu1 %v12006_v36  ;;  %12167 = vst [vmem:[#allocation55_spill] sm:$0xff] %v10611_v3  ;;  %12168 = vst [vmem:[#allocation56_spill] sm:$0xff] %v10618_v20 }
 0x3a1   : > { %3987 = vmatpush1.bf16.msra.mxu0 %v10592_v30  ;;  %v6690_v30 = vld [vmem:[%s11783_s3 + $0x3e4] sm:$0xff] }
 0x3a2   : > { %4028 = vmatpush1.bf16.msra.mxu1 %v10599_v28  ;;  %3988 = vmatprep.subr.bf16.mxu0 %v10604_v32  ;;  %v10633_v32 = vld [vmem:[%s11783_s3 + $0x2f4] ss:$12 sps:$4 sm:$0xff]   ;;  %v10640_v28 = vld [vmem:[%s11783_s3 + $0x2fc] ss:$12 sps:$4 sm:$0xff]   ;;  %v10642_v17 = vcombine.high %v6690_v30, %v6690_v30  ;;  %v6722_v5 = vcombine.low %v6690_v30, %v6690_v30 }
 0x3a3   : > { %4029 = vmatprep.subr.bf16.mxu1 %v12006_v36  ;;  %12170 = vst [vmem:[#allocation58_spill] sm:$0xff] %v10633_v32  ;;  %12171 = vst [vmem:[#allocation59_spill] sm:$0xff] %v10640_v28  ;;  %v10658_v30 = vld [vmem:[%s11783_s3 + $0x3d0] ss:$12 sps:$4 sm:$0xff]  }
 0x3a4   : > { %12172 = vst [vmem:[#allocation60_spill] sm:$0xff] %v10642_v17  ;;  %12174 = vst [vmem:[#allocation62_spill] sm:$0xff] %v10658_v30 }
 0x3a5   : > { %3989 = vmatpush1.bf16.msra.mxu0 %v10611_v3  ;;  %v7855_v3 = vld [vmem:[%s11783_s3 + $0x3ec] ss:$0 sps:$4 sm:$0xff]  }
 0x3a6   : > { %4030 = vmatpush1.bf16.msra.mxu1 %v10618_v20  ;;  %3990 = vmatprep.subr.bf16.mxu0 %v10623_v16  ;;  %v10653_v16 = vsel %vm3066_vm3, %v6722_v5, 0  ;;  %v10662_v20 = vsel %vm3066_vm3, %v7855_v3, 0  ;;  %v10675_v5 = vld [vmem:[%s11783_s3 + $0x3d4] ss:$12 sps:$4 sm:$0xff]   ;;  %v10680_v3 = vld [vmem:[%s11783_s3 + $0x3b8] ss:$12 sps:$4 sm:$0xff]  }
 0x3a7   : > { %4031 = vmatprep.subr.bf16.mxu1 %v12006_v36  ;;  %12173 = vst [vmem:[#allocation61_spill] sm:$0xff] %v10653_v16  ;;  %12175 = vst [vmem:[#allocation63_spill] sm:$0xff] %v10662_v20 }
 0x3a8   : > { %12177 = vst [vmem:[#allocation65_spill] sm:$0xff] %v10675_v5  ;;  %12178 = vst [vmem:[#allocation66_spill] sm:$0xff] %v10680_v3 }
 0x3a9   : > { %3991 = vmatpush1.bf16.msra.mxu0 %v10633_v32  ;;  %v10700_v32 = vld [vmem:[%s11783_s3 + $0x49c] ss:$12 sps:$4 sm:$0xff]  }
 0x3aa   : > { %4032 = vmatpush1.bf16.msra.mxu1 %v10640_v28  ;;  %6725 = vmatprep.subr.msk.bf16.mxu0 %vm3066_vm3, %v10642_v17  ;;  %v10668_v28 = vld [vmem:[%s11783_s3 + $0x3cc] ss:$12 sps:$4 sm:$0xff]   ;;  %12181 = vst [vmem:[#allocation69_spill] sm:$0xff] %v10700_v32 }
 0x3ab   : > { %4043 = vmatprep.subr.bf16.mxu1 %v12006_v36  ;;  %12176 = vst [vmem:[#allocation64_spill] sm:$0xff] %v10668_v28 }
 0x3ad   : > { %4003 = vmatpush2.bf16.msra.mxu0 %v10653_v16  ;;  %v3785_v16 = vshll.u32 %v10047_v35, 16 }
 0x3ae   : > { %4044 = vmatpush2.bf16.msra.mxu1 %v10662_v20  ;;  %4004 = vmatprep.subr.bf16.mxu0 %v10658_v30  ;;  %v10688_v30 = vld [vmem:[%s11783_s3 + $0x3b4] ss:$12 sps:$4 sm:$0xff]   ;;  %v10695_v20 = vld [vmem:[%s11783_s3 + $0x3bc] ss:$12 sps:$4 sm:$0xff]  }
 0x3af   : > { %4045 = vmatprep.subr.bf16.mxu1 %v12006_v36  ;;  %12179 = vst [vmem:[#allocation67_spill] sm:$0xff] %v10688_v30  ;;  %12180 = vst [vmem:[#allocation68_spill] sm:$0xff] %v10695_v20  ;;  %v3787_v17 = vrot.slane %v3785_v16, 1  ;;  %v10717_v16 = vld [vmem:[%s11783_s3 + $0x4a0] ss:$12 sps:$4 sm:$0xff]  }
 0x3b0   : > { %12183 = vst [vmem:[#allocation71_spill] sm:$0xff] %v10717_v16 }
 0x3b1   : > { %4005 = vmatpush2.bf16.msra.mxu0 %v10668_v28  ;;  %v3783_v28 = vshrl.u32 %v10047_v35, 16 }
 0x3b2   : > { %4046 = vmatpush2.bf16.msra.mxu1 %v10675_v5  ;;  %4006 = vmatprep.subr.bf16.mxu0 %v10680_v3  ;;  %v10708_v3 = vld [vmem:[%s11783_s3 + $0x498] ss:$12 sps:$4 sm:$0xff]  }
 0x3b3   : > { %4047 = vmatprep.subr.bf16.mxu1 %v12006_v36  ;;  %12182 = vst [vmem:[#allocation70_spill] sm:$0xff] %v10708_v3  ;;  %v10711_v5 = vor.u32 %v3787_v17, %v3783_v28  ;;  %v10734_v17 = vld [vmem:[%s11783_s3 + $0x480] ss:$12 sps:$4 sm:$0xff]   ;;  %v10742_v28 = vld [vmem:[%s11783_s3 + $0x488] ss:$12 sps:$4 sm:$0xff]  }
 0x3b4   : > { %12186 = vst [vmem:[#allocation74_spill] sm:$0xff] %v10734_v17  ;;  %12187 = vst [vmem:[#allocation75_spill] sm:$0xff] %v10742_v28 }
 0x3b5   : > { %4007 = vmatpush2.bf16.msra.mxu0 %v10688_v30  ;;  %v10723_v30 = vld [vmem:[%s11783_s3 + $0x484] ss:$12 sps:$4 sm:$0xff]  }
 0x3b6   : > { %4048 = vmatpush2.bf16.msra.mxu1 %v10695_v20  ;;  %4288 = vmatprep.subr.bf16.mxu0 %v10700_v32  ;;  %12184 = vst [vmem:[#allocation72_spill] sm:$0xff] %v10723_v30  ;;  %v10727_v20 = vrot.slane %v10058_v47, 1  ;;  %v10747_v47 = vld [vmem:[%s11783_s3 + $0x46c] ss:$12 sps:$4 sm:$0xff]  }
 0x3b7   : > { %4329 = vmatprep.subr.bf16.mxu1 %v12006_v36  ;;  %12188 = vst [vmem:[#allocation76_spill] sm:$0xff] %v10747_v47 }
 0x3b8   : > { %4009 = vmatmul.mubr.bf16.vlgmr.msra.gmra.mxu0 %v10711_v5  ;;  %12185 = vst [vmem:[#allocation73_spill] sm:$0xff] %v10727_v20 }
 0x3b9   : > { %4050 = vmatmul.mubr.bf16.vlgmr.msra.gmra.mxu1 %v10711_v5  ;;  %4289 = vmatpush1.bf16.msra.mxu0 %v10708_v3  ;;  %v10764_v3 = vld [vmem:[%s11783_s3 + $0x470] ss:$12 sps:$4 sm:$0xff]  }
 0x3ba   : > { %6804 = vmatprep.mubr.msk.bf16.mxu0 %vm3062_vm4, %v10727_v20  ;;  %4330 = vmatpush1.bf16.msra.mxu1 %v10717_v16  ;;  %v10757_v16 = vld [vmem:[%s11783_s3 + $0x468] ss:$12 sps:$4 sm:$0xff]   ;;  %12190 = vst [vmem:[#allocation78_spill] sm:$0xff] %v10764_v3 }
 0x3bb   : > { %6805 = vmatprep.mubr.msk.bf16.mxu1 %vm3062_vm4, %v10727_v20  ;;  %4290 = vmatprep.subr.bf16.mxu0 %v10723_v30  ;;  %12189 = vst [vmem:[#allocation77_spill] sm:$0xff] %v10757_v16  ;;  %v10769_v30 = vld [vmem:[%s11783_s3 + $0x454] ss:$12 sps:$4 sm:$0xff]  }
 0x3bc   : > { %4331 = vmatprep.subr.bf16.mxu1 %v12006_v36  ;;  %12191 = vst [vmem:[#allocation79_spill] sm:$0xff] %v10769_v30 }
 0x3bd   : > { %4291 = vmatpush1.bf16.msra.mxu0 %v10734_v17  ;;  %v10788_v17 = vld [vmem:[%s11783_s3 + $0x43c] ss:$12 sps:$4 sm:$0xff]  }
 0x3be   : > { %4332 = vmatpush1.bf16.msra.mxu1 %v10742_v28  ;;  %4292 = vmatprep.subr.bf16.mxu0 %v10747_v47  ;;  %v10776_v28 = vld [vmem:[%s11783_s3 + $0x450] ss:$12 sps:$4 sm:$0xff]   ;;  %v10783_v47 = vld [vmem:[%s11783_s3 + $0x458] ss:$12 sps:$4 sm:$0xff]   ;;  %12194 = vst [vmem:[#allocation82_spill] sm:$0xff] %v10788_v17 }
 0x3bf   : > { %4333 = vmatprep.subr.bf16.mxu1 %v12006_v36  ;;  %12192 = vst [vmem:[#allocation80_spill] sm:$0xff] %v10776_v28  ;;  %12193 = vst [vmem:[#allocation81_spill] sm:$0xff] %v10783_v47 }
 0x3c1   : > { %4293 = vmatpush1.bf16.msra.mxu0 %v10757_v16  ;;  %v10807_v16 = vld [vmem:[%s11783_s3 + $0x424] ss:$12 sps:$4 sm:$0xff]  }
 0x3c2   : > { %4334 = vmatpush1.bf16.msra.mxu1 %v10764_v3  ;;  %4294 = vmatprep.subr.bf16.mxu0 %v10769_v30  ;;  %v10795_v3 = vld [vmem:[%s11783_s3 + $0x438] ss:$12 sps:$4 sm:$0xff]   ;;  %v10802_v30 = vld [vmem:[%s11783_s3 + $0x440] ss:$12 sps:$4 sm:$0xff]   ;;  %12197 = vst [vmem:[#allocation85_spill] sm:$0xff] %v10807_v16 }
 0x3c3   : > { %4335 = vmatprep.subr.bf16.mxu1 %v12006_v36  ;;  %12195 = vst [vmem:[#allocation83_spill] sm:$0xff] %v10795_v3  ;;  %12196 = vst [vmem:[#allocation84_spill] sm:$0xff] %v10802_v30 }
 0x3c5   : > { %4295 = vmatpush1.bf16.msra.mxu0 %v10776_v28  ;;  %v10826_v28 = vld [vmem:[%s11783_s3 + $0x40c] ss:$12 sps:$4 sm:$0xff]  }
 0x3c6   : > { %4336 = vmatpush1.bf16.msra.mxu1 %v10783_v47  ;;  %4296 = vmatprep.subr.bf16.mxu0 %v10788_v17  ;;  %v10814_v47 = vld [vmem:[%s11783_s3 + $0x420] ss:$12 sps:$4 sm:$0xff]   ;;  %v10821_v17 = vld [vmem:[%s11783_s3 + $0x428] ss:$12 sps:$4 sm:$0xff]   ;;  %12200 = vst [vmem:[#allocation88_spill] sm:$0xff] %v10826_v28 }
 0x3c7   : > { %4337 = vmatprep.subr.bf16.mxu1 %v12006_v36  ;;  %12198 = vst [vmem:[#allocation86_spill] sm:$0xff] %v10814_v47  ;;  %12199 = vst [vmem:[#allocation87_spill] sm:$0xff] %v10821_v17 }
 0x3c9   : > { %4297 = vmatpush1.bf16.msra.mxu0 %v10795_v3  ;;  %v10845_v3 = vld [vmem:[%s11783_s3 + $0x3f4] ss:$12 sps:$4 sm:$0xff]  }
 0x3ca   : > { %4338 = vmatpush1.bf16.msra.mxu1 %v10802_v30  ;;  %4298 = vmatprep.subr.bf16.mxu0 %v10807_v16  ;;  %v10833_v30 = vld [vmem:[%s11783_s3 + $0x408] ss:$12 sps:$4 sm:$0xff]   ;;  %v10840_v16 = vld [vmem:[%s11783_s3 + $0x410] ss:$12 sps:$4 sm:$0xff]   ;;  %12203 = vst [vmem:[#allocation91_spill] sm:$0xff] %v10845_v3 }
 0x3cb   : > { %4339 = vmatprep.subr.bf16.mxu1 %v12006_v36  ;;  %12201 = vst [vmem:[#allocation89_spill] sm:$0xff] %v10833_v30  ;;  %12202 = vst [vmem:[#allocation90_spill] sm:$0xff] %v10840_v16 }
 0x3cd   : > { %4299 = vmatpush1.bf16.msra.mxu0 %v10814_v47  ;;  %v6768_v47 = vld [vmem:[%s11783_s3 + $0x4e0] sm:$0xff] }
 0x3ce   : > { %4340 = vmatpush1.bf16.msra.mxu1 %v10821_v17  ;;  %4300 = vmatprep.subr.bf16.mxu0 %v10826_v28  ;;  %v10855_v28 = vld [vmem:[%s11783_s3 + $0x3f0] ss:$12 sps:$4 sm:$0xff]   ;;  %v10862_v17 = vld [vmem:[%s11783_s3 + $0x3f8] ss:$12 sps:$4 sm:$0xff]   ;;  %v10864_v32 = vcombine.high %v6768_v47, %v6768_v47  ;;  %v6800_v20 = vcombine.low %v6768_v47, %v6768_v47 }
 0x3cf   : > { %4341 = vmatprep.subr.bf16.mxu1 %v12006_v36  ;;  %12204 = vst [vmem:[#allocation92_spill] sm:$0xff] %v10855_v28  ;;  %12205 = vst [vmem:[#allocation93_spill] sm:$0xff] %v10862_v17  ;;  %v10880_v47 = vld [vmem:[%s11783_s3 + $0x4cc] ss:$12 sps:$4 sm:$0xff]  }
 0x3d0   : > { %12206 = vst [vmem:[#allocation94_spill] sm:$0xff] %v10864_v32  ;;  %12208 = vst [vmem:[#allocation96_spill] sm:$0xff] %v10880_v47 }
 0x3d1   : > { %4301 = vmatpush1.bf16.msra.mxu0 %v10833_v30  ;;  %v7898_v30 = vld [vmem:[%s11783_s3 + $0x4e8] ss:$0 sps:$4 sm:$0xff]  }
 0x3d2   : > { %4342 = vmatpush1.bf16.msra.mxu1 %v10840_v16  ;;  %4302 = vmatprep.subr.bf16.mxu0 %v10845_v3  ;;  %v10875_v3 = vsel %vm3066_vm3, %v6800_v20, 0  ;;  %v10884_v16 = vsel %vm3066_vm3, %v7898_v30, 0  ;;  %v10897_v20 = vld [vmem:[%s11783_s3 + $0x4d0] ss:$12 sps:$4 sm:$0xff]   ;;  %v10902_v30 = vld [vmem:[%s11783_s3 + $0x4b4] ss:$12 sps:$4 sm:$0xff]  }
 0x3d3   : > { %4343 = vmatprep.subr.bf16.mxu1 %v12006_v36  ;;  %12207 = vst [vmem:[#allocation95_spill] sm:$0xff] %v10875_v3  ;;  %12209 = vst [vmem:[#allocation97_spill] sm:$0xff] %v10884_v16 }
 0x3d4   : > { %12211 = vst [vmem:[#allocation99_spill] sm:$0xff] %v10897_v20  ;;  %12212 = vst [vmem:[#allocation100_spill] sm:$0xff] %v10902_v30 }
 0x3d5   : > { %4303 = vmatpush1.bf16.msra.mxu0 %v10855_v28 }
 0x3d6   : > { %4344 = vmatpush1.bf16.msra.mxu1 %v10862_v17  ;;  %6803 = vmatprep.subr.msk.bf16.mxu0 %vm3066_vm3, %v10864_v32  ;;  %v10890_v17 = vld [vmem:[%s11783_s3 + $0x4c8] ss:$12 sps:$4 sm:$0xff]  }
 0x3d7   : > { %4355 = vmatprep.subr.bf16.mxu1 %v12006_v36  ;;  %12210 = vst [vmem:[#allocation98_spill] sm:$0xff] %v10890_v17 }
 0x3d9   : > { %4315 = vmatpush2.bf16.msra.mxu0 %v10875_v3 }
 0x3da   : > { %4356 = vmatpush2.bf16.msra.mxu1 %v10884_v16  ;;  %4316 = vmatprep.subr.bf16.mxu0 %v10880_v47  ;;  %v10909_v16 = vld [vmem:[%s11783_s3 + $0x4b0] ss:$12 sps:$4 sm:$0xff]   ;;  %v10916_v47 = vld [vmem:[%s11783_s3 + $0x4b8] ss:$12 sps:$4 sm:$0xff]  }
 0x3db   : > { %4357 = vmatprep.subr.bf16.mxu1 %v12006_v36  ;;  %12213 = vst [vmem:[#allocation101_spill] sm:$0xff] %v10909_v16  ;;  %12214 = vst [vmem:[#allocation102_spill] sm:$0xff] %v10916_v47 }
 0x3dd   : > { %4317 = vmatpush2.bf16.msra.mxu0 %v10890_v17  ;;  %v10922_v17 = vrot.slane %v10267_v1, 1  ;;  %v8248_v1 = vld [vmem:[%s11783_s3 + $0x1ac] ss:$12 sps:$4 sm:$0xff]  }
 0x3de   : > { %4358 = vmatpush2.bf16.msra.mxu1 %v10897_v20  ;;  %4318 = vmatprep.subr.bf16.mxu0 %v10902_v30  ;;  %v8246_v20 = vld [vmem:[%s11783_s3 + $0x1a8] ss:$12 sps:$4 sm:$0xff]  }
 0x3df   : > { %4359 = vmatprep.subr.bf16.mxu1 %v12006_v36  ;;  %12215 = vst [vmem:[#allocation103_spill] sm:$0xff] %v10922_v17 }
 0x3e1   : > { %4319 = vmatpush2.bf16.msra.mxu0 %v10909_v16  ;;  %v8247_v16 = vld [vmem:[%s11783_s3 + $0x1a4] ss:$12 sps:$4 sm:$0xff]  }
 0x3e2   : > { %4360 = vmatpush2.bf16.msra.mxu1 %v10916_v47  ;;  %4406 = vmatprep.subr.bf16.mxu0 %v8246_v20  ;;  %v8249_v20 = vld [vmem:[%s11783_s3 + $0x190] ss:$12 sps:$4 sm:$0xff]   ;;  %v8251_v47 = vld [vmem:[%s11783_s3 + $0x194] ss:$12 sps:$4 sm:$0xff]  }
 0x3e3   : > { %4447 = vmatprep.subr.bf16.mxu1 %v12006_v36 }
 0x3e4   : > { %4321 = vmatmul.mubr.bf16.vlgmr.msra.gmra.mxu0 %v10922_v17 }
 0x3e5   : > { %4362 = vmatmul.mubr.bf16.vlgmr.msra.gmra.mxu1 %v10922_v17  ;;  %4407 = vmatpush1.bf16.msra.mxu0 %v8247_v16  ;;  %v8250_v16 = vld [vmem:[%s11783_s3 + $0x18c] ss:$12 sps:$4 sm:$0xff]  }
 0x3e6   : > { %6807 = vmatprep.mubr.msk.bf16.mxu0 %vm3062_vm4, %v10276_v38  ;;  %4448 = vmatpush1.bf16.msra.mxu1 %v8248_v1  ;;  %v8253_v1 = vld [vmem:[%s11783_s3 + $0x174] ss:$12 sps:$4 sm:$0xff]  }
 0x3e7   : > { %6808 = vmatprep.mubr.msk.bf16.mxu1 %vm3062_vm4, %v10276_v38  ;;  %4408 = vmatprep.subr.bf16.mxu0 %v8249_v20  ;;  %v8252_v38 = vld [vmem:[%s11783_s3 + $0x178] ss:$12 sps:$4 sm:$0xff]   ;;  %v8254_v20 = vld [vmem:[%s11783_s3 + $0x17c] ss:$12 sps:$4 sm:$0xff]  }
 0x3e8   : > { %4449 = vmatprep.subr.bf16.mxu1 %v12006_v36 }
 0x3e9   : > { %4409 = vmatpush1.bf16.msra.mxu0 %v8250_v16  ;;  %v8256_v16 = vld [vmem:[%s11783_s3 + $0x15c] ss:$12 sps:$4 sm:$0xff]  }
 0x3ea   : > { %4450 = vmatpush1.bf16.msra.mxu1 %v8251_v47  ;;  %4410 = vmatprep.subr.bf16.mxu0 %v8252_v38  ;;  %v8255_v47 = vld [vmem:[%s11783_s3 + $0x160] ss:$12 sps:$4 sm:$0xff]   ;;  %v8257_v38 = vld [vmem:[%s11783_s3 + $0x164] ss:$12 sps:$4 sm:$0xff]  }
 0x3eb   : > { %4451 = vmatprep.subr.bf16.mxu1 %v12006_v36 }
 0x3ed   : > { %4411 = vmatpush1.bf16.msra.mxu0 %v8253_v1  ;;  %v8258_v1 = vld [vmem:[%s11783_s3 + $0x148] ss:$12 sps:$4 sm:$0xff]  }
 0x3ee   : > { %4452 = vmatpush1.bf16.msra.mxu1 %v8254_v20  ;;  %4412 = vmatprep.subr.bf16.mxu0 %v8255_v47 }
 0x3ef   : > { %4453 = vmatprep.subr.bf16.mxu1 %v12006_v36 }
 0x3f1   : > { %4413 = vmatpush1.bf16.msra.mxu0 %v8256_v16  ;;  %v8259_v16 = vld [vmem:[%s11783_s3 + $0x144] ss:$12 sps:$4 sm:$0xff]  }
 0x3f2   : > { %4454 = vmatpush1.bf16.msra.mxu1 %v8257_v38  ;;  %4414 = vmatprep.subr.bf16.mxu0 %v8258_v1  ;;  %v8260_v38 = vld [vmem:[%s11783_s3 + $0x14c] ss:$12 sps:$4 sm:$0xff]   ;;  %v8261_v1 = vld [vmem:[%s11783_s3 + $0x130] ss:$12 sps:$4 sm:$0xff]  }
 0x3f3   : > { %4455 = vmatprep.subr.bf16.mxu1 %v12006_v36 }
 0x3f4   : > { %v10974_v20 = vpop.f32.mrf.mxu0  ;;  %v10976_v47 = vpop.f32.mrf.mxu1 }
 0x3f5   : > { %4415 = vmatpush1.bf16.msra.mxu0 %v8259_v16  ;;  %v8262_v16 = vld [vmem:[%s11783_s3 + $0x12c] ss:$12 sps:$4 sm:$0xff]  }
 0x3f6   : > { %4456 = vmatpush1.bf16.msra.mxu1 %v8260_v38  ;;  %v10984_v30 = vpop.f32.mrf.mxu0  ;;  %v3153_v3 = vpop.f32.mrf.mxu1  ;;  %4416 = vmatprep.subr.bf16.mxu0 %v8261_v1  ;;  %v8263_v38 = vld [vmem:[%s11783_s3 + $0x134] ss:$12 sps:$4 sm:$0xff]   ;;  %v8264_v1 = vld [vmem:[%s11783_s3 + $0x118] ss:$12 sps:$4 sm:$0xff]  }
 0x3f7   : > { %4457 = vmatprep.subr.bf16.mxu1 %v12006_v36 }
 0x3f8   : > { %v3114_v32 = vpop.f32.mrf.mxu0  ;;  %v3154_v28 = vpop.f32.mrf.mxu1 }
 0x3f9   : > { %4417 = vmatpush1.bf16.msra.mxu0 %v8262_v16  ;;  %v8265_v32 = vld [vmem:[%s11783_s3 + $0x11c] ss:$12 sps:$4 sm:$0xff]   ;;  %v12244_v28 = vld [vmem:[#allocation6_spill] sm:$0xff] }
 0x3fa   : > { %4458 = vmatpush1.bf16.msra.mxu1 %v8263_v38  ;;  %v3115_v3 = vpop.f32.mrf.mxu0  ;;  %v3155_v17 = vpop.f32.mrf.mxu1  ;;  %4418 = vmatprep.subr.bf16.mxu0 %v8264_v1  ;;  %v12248_v16 = vld [vmem:[#allocation37_spill] sm:$0xff]  ;;  %v12252_v1 = vld [vmem:[#allocation40_spill] sm:$0xff] }
 0x3fb   : > { %4459 = vmatprep.subr.bf16.mxu1 %v12006_v36  ;;  %v12243_v17 = vld [vmem:[#allocation5_spill] sm:$0xff]  ;;  %v12250_v3 = vld [vmem:[#allocation38_spill] sm:$0xff] }
 0x3fc   : > { %v12249_v38 = vld [vmem:[#allocation73_spill] sm:$0xff] }
 0x3fd   : > { %4419 = vmatpush1.bf16.msra.mxu0 %v9931_v26 }
 0x3fe   : > { %4460 = vmatpush1.bf16.msra.mxu1 %v8265_v32  ;;  %4420 = vmatprep.subr.bf16.mxu0 %v9937_v42  ;;  %v12253_v32 = vld [vmem:[#allocation41_spill] sm:$0xff] }
 0x3ff   : > { %4461 = vmatprep.subr.bf16.mxu1 %v12006_v36 }
 0x401   : > { %4421 = vmatpush1.bf16.msra.mxu0 %v9951_v15 }
 0x402   : > { %4462 = vmatpush1.bf16.msra.mxu1 %v9945_v31  ;;  %6806 = vmatprep.subr.msk.bf16.mxu0 %vm3066_vm3, %v9958_v8 }
 0x403   : > { %4473 = vmatprep.subr.bf16.mxu1 %v12006_v36 }
 0x405   : > { %4433 = vmatpush2.bf16.msra.mxu0 %v9969_v59 }
 0x406   : > { %4474 = vmatpush2.bf16.msra.mxu1 %v9964_v60  ;;  %4434 = vmatprep.subr.bf16.mxu0 %v9977_v37 }
 0x407   : > { %4475 = vmatprep.subr.bf16.mxu1 %v12006_v36 }
 0x409   : > { %4435 = vmatpush2.bf16.msra.mxu0 %v9982_v43 }
 0x40a   : > { %4476 = vmatpush2.bf16.msra.mxu1 %v9987_v45  ;;  %4436 = vmatprep.subr.bf16.mxu0 %v9995_v29 }
 0x40b   : > { %4477 = vmatprep.subr.bf16.mxu1 %v12006_v36 }
 0x40d   : > { %4437 = vmatpush2.bf16.msra.mxu0 %v10001_v58  ;;  %v12216_v58 = vld [vmem:[#allocation29_spill] sm:$0xff] }
 0x40e   : > { %4478 = vmatpush2.bf16.msra.mxu1 %v10006_v61  ;;  %4487 = vmatprep.subr.bf16.mxu0 %v10016_v48  ;;  %v12217_v61 = vld [vmem:[#allocation7_spill] sm:$0xff]  ;;  %v12218_v48 = vld [vmem:[#allocation8_spill] sm:$0xff] }
 0x40f   : > { %4528 = vmatprep.subr.bf16.mxu1 %v12006_v36 }
 0x410   : > { %4439 = vmatmul.mubr.bf16.vlgmr.msra.gmra.mxu0 %v10489_v34 }
 0x411   : > { %4480 = vmatmul.mubr.bf16.vlgmr.msra.gmra.mxu1 %v10489_v34  ;;  %4488 = vmatpush1.bf16.msra.mxu0 %v10040_v24  ;;  %v12219_v24 = vld [vmem:[#allocation9_spill] sm:$0xff] }
 0x412   : > { %6810 = vmatprep.mubr.msk.bf16.mxu0 %vm3062_vm4, %v10035_v18  ;;  %4529 = vmatpush1.bf16.msra.mxu1 %v10045_v40  ;;  %v12220_v40 = vld [vmem:[#allocation10_spill] sm:$0xff]  ;;  %v12241_v34 = vld [vmem:[#allocation33_spill] sm:$0xff] }
 0x413   : > { %6811 = vmatprep.mubr.msk.bf16.mxu1 %vm3062_vm4, %v10035_v18  ;;  %4489 = vmatprep.subr.bf16.mxu0 %v10056_v41  ;;  %v12221_v41 = vld [vmem:[#allocation11_spill] sm:$0xff] }
 0x414   : > { %4530 = vmatprep.subr.bf16.mxu1 %v12006_v36 }
 0x415   : > { %4490 = vmatpush1.bf16.msra.mxu0 %v10067_v57  ;;  %v12222_v57 = vld [vmem:[#allocation12_spill] sm:$0xff] }
 0x416   : > { %4531 = vmatpush1.bf16.msra.mxu1 %v10072_v56  ;;  %4491 = vmatprep.subr.bf16.mxu0 %v10081_v54  ;;  %v12223_v56 = vld [vmem:[#allocation13_spill] sm:$0xff]  ;;  %v12224_v54 = vld [vmem:[#allocation14_spill] sm:$0xff] }
 0x417   : > { %4532 = vmatprep.subr.bf16.mxu1 %v12006_v36 }
 0x419   : > { %4492 = vmatpush1.bf16.msra.mxu0 %v10090_v44  ;;  %v12225_v44 = vld [vmem:[#allocation31_spill] sm:$0xff] }
 0x41a   : > { %4533 = vmatpush1.bf16.msra.mxu1 %v10095_v55  ;;  %4493 = vmatprep.subr.bf16.mxu0 %v10102_v13  ;;  %v12226_v55 = vld [vmem:[#allocation15_spill] sm:$0xff]  ;;  %v12227_v13 = vld [vmem:[#allocation16_spill] sm:$0xff] }
 0x41b   : > { %4534 = vmatprep.subr.bf16.mxu1 %v12006_v36 }
 0x41d   : > { %4494 = vmatpush1.bf16.msra.mxu0 %v10109_v6 }
 0x41e   : > { %4535 = vmatpush1.bf16.msra.mxu1 %v10114_v10  ;;  %4495 = vmatprep.subr.bf16.mxu0 %v10121_v21 }
 0x41f   : > { %4536 = vmatprep.subr.bf16.mxu1 %v12006_v36 }
 0x420   : > { %v3371_v26 = vpop.f32.mrf.mxu0  ;;  %v3412_v42 = vpop.f32.mrf.mxu1 }
 0x421   : > { %v3372_v31 = vadd.f32 %v3371_v26, %v10974_v20  ;;  %v3413_v15 = vadd.f32 %v3412_v42, %v10976_v47  ;;  %4496 = vmatpush1.bf16.msra.mxu0 %v10128_v62  ;;  %v12228_v62 = vld [vmem:[#allocation17_spill] sm:$0xff]  ;;  %v12246_v20 = vld [vmem:[#allocation35_spill] sm:$0xff]  ;;  %v12247_v47 = vld [vmem:[#allocation36_spill] sm:$0xff] }
 0x422   : > { %4537 = vmatpush1.bf16.msra.mxu1 %v10133_v63  ;;  %v3373_v8 = vpop.f32.mrf.mxu0  ;;  %v3414_v60 = vpop.f32.mrf.mxu1  ;;  %4497 = vmatprep.subr.bf16.mxu0 %v10140_v0  ;;  %v12229_v0 = vld [vmem:[#allocation18_spill] sm:$0xff]  ;;  %v12256_v42 = vld [vmem:[#allocation44_spill] sm:$0xff] }
 0x423   : > { %v3374_v59 = vadd.f32 %v3373_v8, %v10984_v30  ;;  %4538 = vmatprep.subr.bf16.mxu1 %v12006_v36  ;;  %v12245_v30 = vld [vmem:[#allocation34_spill] sm:$0xff]  ;;  %v12259_v8 = vld [vmem:[#allocation47_spill] sm:$0xff]  ;;  %v12260_v60 = vld [vmem:[#allocation48_spill] sm:$0xff] }
 0x424   : > { %v3375_v37 = vpop.f32.mrf.mxu0  ;;  %v3415_v43 = vpop.f32.mrf.mxu1  ;;  %v12254_v26 = vld [vmem:[#allocation42_spill] sm:$0xff] }
 0x425   : > { %4498 = vmatpush1.bf16.msra.mxu0 %v10147_v2 }
 0x426   : > { %4539 = vmatpush1.bf16.msra.mxu1 %v10152_v4  ;;  %v3376_v45 = vpop.f32.mrf.mxu0  ;;  %v3416_v29 = vpop.f32.mrf.mxu1  ;;  %4499 = vmatprep.subr.bf16.mxu0 %v10159_v46  ;;  %v12230_v4 = vld [vmem:[#allocation19_spill] sm:$0xff] }
 0x427   : > { %4540 = vmatprep.subr.bf16.mxu1 %v12006_v36  ;;  %v12261_v45 = vld [vmem:[#allocation49_spill] sm:$0xff]  ;;  %v12262_v29 = vld [vmem:[#allocation50_spill] sm:$0xff] }
 0x429   : > { %4500 = vmatpush1.bf16.msra.mxu0 %v10166_v49 }
 0x42a   : > { %4541 = vmatpush1.bf16.msra.mxu1 %v10171_v50  ;;  %4501 = vmatprep.subr.bf16.mxu0 %v10178_v33 }
 0x42b   : > { %4542 = vmatprep.subr.bf16.mxu1 %v12006_v36 }
 0x42d   : > { %4502 = vmatpush1.bf16.msra.mxu0 %v10188_v51  ;;  %v12231_v51 = vld [vmem:[#allocation20_spill] sm:$0xff] }
 0x42e   : > { %4543 = vmatpush1.bf16.msra.mxu1 %v10193_v52  ;;  %6809 = vmatprep.subr.msk.bf16.mxu0 %vm3066_vm3, %v10197_v53  ;;  %v12232_v52 = vld [vmem:[#allocation21_spill] sm:$0xff] }
 0x42f   : > { %4554 = vmatprep.subr.bf16.mxu1 %v12006_v36 }
 0x431   : > { %4514 = vmatpush2.bf16.msra.mxu0 %v10208_v7  ;;  %v12233_v7 = vld [vmem:[#allocation22_spill] sm:$0xff] }
 0x432   : > { %4555 = vmatpush2.bf16.msra.mxu1 %v10211_v9  ;;  %4515 = vmatprep.subr.bf16.mxu0 %v10216_v19  ;;  %v12234_v19 = vld [vmem:[#allocation23_spill] sm:$0xff] }
 0x433   : > { %4556 = vmatprep.subr.bf16.mxu1 %v12006_v36 }
 0x435   : > { %4516 = vmatpush2.bf16.msra.mxu0 %v10223_v14  ;;  %v12235_v14 = vld [vmem:[#allocation24_spill] sm:$0xff] }
 0x436   : > { %4557 = vmatpush2.bf16.msra.mxu1 %v10228_v12  ;;  %4517 = vmatprep.subr.bf16.mxu0 %v10235_v39  ;;  %v12236_v12 = vld [vmem:[#allocation25_spill] sm:$0xff]  ;;  %v12237_v39 = vld [vmem:[#allocation26_spill] sm:$0xff] }
 0x437   : > { %4558 = vmatprep.subr.bf16.mxu1 %v12006_v36 }
 0x439   : > { %4518 = vmatpush2.bf16.msra.mxu0 %v10243_v22  ;;  %v12238_v22 = vld [vmem:[#allocation27_spill] sm:$0xff] }
 0x43a   : > { %4559 = vmatpush2.bf16.msra.mxu1 %v10248_v23  ;;  %4568 = vmatprep.subr.bf16.mxu0 %v10255_v25  ;;  %v12239_v23 = vld [vmem:[#allocation28_spill] sm:$0xff]  ;;  %v12240_v25 = vld [vmem:[#allocation30_spill] sm:$0xff] }
 0x43b   : > { %4609 = vmatprep.subr.bf16.mxu1 %v12006_v36 }
 0x43c   : > { %4520 = vmatmul.mubr.bf16.vlgmr.msra.gmra.mxu0 %v10047_v35 }
 0x43d   : > { %4561 = vmatmul.mubr.bf16.vlgmr.msra.gmra.mxu1 %v10047_v35  ;;  %4569 = vmatpush1.bf16.msra.mxu0 %v12216_v58 }
 0x43e   : > { %6813 = vmatprep.mubr.msk.bf16.mxu0 %vm3062_vm4, %v10505_v11  ;;  %4610 = vmatpush1.bf16.msra.mxu1 %v12217_v61  ;;  %v12263_v61 = vld [vmem:[#allocation51_spill] sm:$0xff] }
 0x43f   : > { %6814 = vmatprep.mubr.msk.bf16.mxu1 %vm3062_vm4, %v10505_v11  ;;  %4570 = vmatprep.subr.bf16.mxu0 %v12218_v48  ;;  %v12242_v11 = vld [vmem:[#allocation32_spill] sm:$0xff] }
 0x440   : > { %4611 = vmatprep.subr.bf16.mxu1 %v12006_v36 }
 0x441   : > { %4571 = vmatpush1.bf16.msra.mxu0 %v12219_v24 }
 0x442   : > { %4612 = vmatpush1.bf16.msra.mxu1 %v12220_v40  ;;  %4572 = vmatprep.subr.bf16.mxu0 %v12221_v41  ;;  %v12264_v41 = vld [vmem:[#allocation52_spill] sm:$0xff] }
 0x443   : > { %4613 = vmatprep.subr.bf16.mxu1 %v12006_v36 }
 0x445   : > { %4573 = vmatpush1.bf16.msra.mxu0 %v12222_v57  ;;  %v12265_v57 = vld [vmem:[#allocation53_spill] sm:$0xff] }
 0x446   : > { %4614 = vmatpush1.bf16.msra.mxu1 %v12223_v56  ;;  %4574 = vmatprep.subr.bf16.mxu0 %v12224_v54  ;;  %v12266_v54 = vld [vmem:[#allocation54_spill] sm:$0xff] }
 0x447   : > { %4615 = vmatprep.subr.bf16.mxu1 %v12006_v36 }
 0x449   : > { %4575 = vmatpush1.bf16.msra.mxu0 %v12225_v44 }
 0x44a   : > { %4616 = vmatpush1.bf16.msra.mxu1 %v12226_v55  ;;  %4576 = vmatprep.subr.bf16.mxu0 %v12227_v13  ;;  %v12267_v55 = vld [vmem:[#allocation55_spill] sm:$0xff]  ;;  %v12268_v13 = vld [vmem:[#allocation56_spill] sm:$0xff] }
 0x44b   : > { %4617 = vmatprep.subr.bf16.mxu1 %v12006_v36 }
 0x44c   : > { %v3689_v6 = vpop.f32.mrf.mxu0 }
 0x44d   : > { %v3736_v10 = vadd.f32 %v3689_v6, %v3372_v31  ;;  %v3730_v21 = vpop.f32.mrf.mxu1  ;;  %4577 = vmatpush1.bf16.msra.mxu0 %v12228_v62  ;;  %v12257_v31 = vld [vmem:[#allocation45_spill] sm:$0xff]  ;;  %v12272_v62 = vld [vmem:[#allocation60_spill] sm:$0xff] }
 0x44e   : > { %v11100_v63 = vadd.f32 %v3730_v21, %v3413_v15  ;;  %4618 = vmatpush1.bf16.msra.mxu1 %v12229_v0  ;;  %v3691_v2 = vpop.f32.mrf.mxu0  ;;  %4578 = vmatprep.subr.bf16.mxu0 %v12230_v4  ;;  %v12258_v15 = vld [vmem:[#allocation46_spill] sm:$0xff]  ;;  %v12269_v6 = vld [vmem:[#allocation57_spill] sm:$0xff]  ;;  %v12271_v21 = vld [vmem:[#allocation59_spill] sm:$0xff] }
 0x44f   : > { %v11104_v46 = vadd.f32 %v3691_v2, %v3374_v59  ;;  %v3732_v49 = vpop.f32.mrf.mxu1  ;;  %4619 = vmatprep.subr.bf16.mxu1 %v12006_v36  ;;  %v12273_v0 = vld [vmem:[#allocation61_spill] sm:$0xff]  ;;  %v12274_v2 = vld [vmem:[#allocation63_spill] sm:$0xff]  ;;  %v12275_v4 = vld [vmem:[#allocation62_spill] sm:$0xff] }
 0x450   : > { %v3693_v50 = vpop.f32.mrf.mxu0  ;;  %v12276_v49 = vld [vmem:[#allocation64_spill] sm:$0xff] }
 0x451   : > { %v3733_v33 = vpop.f32.mrf.mxu1  ;;  %4579 = vmatpush1.bf16.msra.mxu0 %v12231_v51  ;;  %v12277_v50 = vld [vmem:[#allocation65_spill] sm:$0xff]  ;;  %v12279_v51 = vld [vmem:[#allocation67_spill] sm:$0xff] }
 0x452   : > { %4620 = vmatpush1.bf16.msra.mxu1 %v12232_v52  ;;  %v3694_v53 = vpop.f32.mrf.mxu0  ;;  %4580 = vmatprep.subr.bf16.mxu0 %v12233_v7  ;;  %v12278_v33 = vld [vmem:[#allocation66_spill] sm:$0xff]  ;;  %v12280_v52 = vld [vmem:[#allocation68_spill] sm:$0xff]  ;;  %v12282_v7 = vld [vmem:[#allocation103_spill] sm:$0xff] }
 0x453   : > { %v3734_v9 = vpop.f32.mrf.mxu1  ;;  %4621 = vmatprep.subr.bf16.mxu1 %v12006_v36  ;;  %v12281_v53 = vld [vmem:[#allocation69_spill] sm:$0xff] }
 0x454   : > { %v4739_v9 = vrot.slane %v10035_v18, 1  ;;  %v12289_v18 = vld [vmem:[#allocation77_spill] sm:$0xff] }
 0x455   : > { %4581 = vmatpush1.bf16.msra.mxu0 %v12234_v19  ;;  %v12283_v19 = vld [vmem:[#allocation70_spill] sm:$0xff] }
 0x456   : > { %4622 = vmatpush1.bf16.msra.mxu1 %v12235_v14  ;;  %4582 = vmatprep.subr.bf16.mxu0 %v12236_v12  ;;  %v12284_v14 = vld [vmem:[#allocation71_spill] sm:$0xff]  ;;  %v12285_v12 = vld [vmem:[#allocation72_spill] sm:$0xff] }
 0x457   : > { %4623 = vmatprep.subr.bf16.mxu1 %v12006_v36 }
 0x459   : > { %4583 = vmatpush1.bf16.msra.mxu0 %v12237_v39  ;;  %v12286_v39 = vld [vmem:[#allocation74_spill] sm:$0xff] }
 0x45a   : > { %4624 = vmatpush1.bf16.msra.mxu1 %v12238_v22  ;;  %6812 = vmatprep.subr.msk.bf16.mxu0 %vm3066_vm3, %v12239_v23  ;;  %v12287_v22 = vld [vmem:[#allocation75_spill] sm:$0xff]  ;;  %v12288_v23 = vld [vmem:[#allocation76_spill] sm:$0xff] }
 0x45b   : > { %4635 = vmatprep.subr.bf16.mxu1 %v12006_v36 }
 0x45d   : > { %4595 = vmatpush2.bf16.msra.mxu0 %v12240_v25  ;;  %v12290_v25 = vld [vmem:[#allocation78_spill] sm:$0xff] }
 0x45e   : > { %4636 = vmatpush2.bf16.msra.mxu1 %v12241_v34  ;;  %4596 = vmatprep.subr.bf16.mxu0 %v12242_v11  ;;  %v12291_v34 = vld [vmem:[#allocation79_spill] sm:$0xff]  ;;  %v4372_v11 = vld [vmem:[%s11784_s4] sm:$0x7] }
 0x45f   : > { %4637 = vmatprep.subr.bf16.mxu1 %v12006_v36 }
 0x461   : > { %4597 = vmatpush2.bf16.msra.mxu0 %v12243_v17  ;;  %v12292_v17 = vld [vmem:[#allocation80_spill] sm:$0xff] }
 0x462   : > { %4638 = vmatpush2.bf16.msra.mxu1 %v12244_v28  ;;  %4598 = vmatprep.subr.bf16.mxu0 %v12245_v30  ;;  %v12293_v28 = vld [vmem:[#allocation81_spill] sm:$0xff]  ;;  %v12294_v30 = vld [vmem:[#allocation82_spill] sm:$0xff] }
 0x463   : > { %4639 = vmatprep.subr.bf16.mxu1 %v12006_v36 }
 0x465   : > { %4599 = vmatpush2.bf16.msra.mxu0 %v10466_v27  ;;  %v12251_v27 = vld [vmem:[#allocation39_spill] sm:$0xff] }
 0x466   : > { %4640 = vmatpush2.bf16.msra.mxu1 %v12246_v20  ;;  %4652 = vmatprep.subr.bf16.mxu0 %v12247_v47  ;;  %v12295_v20 = vld [vmem:[#allocation3_spill] sm:$0xff] }
 0x467   : > { %4693 = vmatprep.subr.bf16.mxu1 %v12006_v36  ;;  %v11209_v47 = vrot.slane %v4372_v11, %v12295_v20 }
 0x468   : > { %4601 = vmatmul.mubr.bf16.vlgmr.msra.gmra.mxu0 %v10711_v5 }
 0x469   : > { %4642 = vmatmul.mubr.bf16.vlgmr.msra.gmra.mxu1 %v10711_v5  ;;  %4653 = vmatpush1.bf16.msra.mxu0 %v12248_v16  ;;  %v12255_v5 = vld [vmem:[#allocation43_spill] sm:$0xff] }
 0x46a   : > { %6816 = vmatprep.mubr.msk.bf16.mxu0 %vm3062_vm4, %v12249_v38  ;;  %4694 = vmatpush1.bf16.msra.mxu1 %v12250_v3  ;;  %v12296_v3 = vld [vmem:[#allocation2_spill] sm:$0xff] }
 0x46b   : > { %6817 = vmatprep.mubr.msk.bf16.mxu1 %vm3062_vm4, %v12249_v38  ;;  %4654 = vmatprep.subr.bf16.mxu0 %v12251_v27  ;;  %v12297_v27 = vsub.s32 2, %v12296_v3 }
 0x46c   : > { %4695 = vmatprep.subr.bf16.mxu1 %v12006_v36 }
 0x46d   : > { %4655 = vmatpush1.bf16.msra.mxu0 %v12252_v1  ;;  %v11215_v1 = vrot.slane %v4372_v11, %v12297_v27  ;;  %v7907_v27 = vld [vmem:[%s11785_s5 + $0x70] ss:$8 sps:$4 sm:$0xff]  }
 0x46e   : > { %4696 = vmatpush1.bf16.msra.mxu1 %v12253_v32  ;;  %4656 = vmatprep.subr.bf16.mxu0 %v12254_v26 }
 0x46f   : > { %4697 = vmatprep.subr.bf16.mxu1 %v12006_v36 }
 0x471   : > { %4657 = vmatpush1.bf16.msra.mxu0 %v12255_v5 }
 0x472   : > { %4698 = vmatpush1.bf16.msra.mxu1 %v12256_v42  ;;  %4658 = vmatprep.subr.bf16.mxu0 %v12257_v31  ;;  %v12298_v42 = vld [vmem:[#allocation83_spill] sm:$0xff]  ;;  %v12299_v31 = vld [vmem:[#allocation4_spill] sm:$0xff] }
 0x473   : > { %4699 = vmatprep.subr.bf16.mxu1 %v12006_v36 }
 0x475   : > { %4659 = vmatpush1.bf16.msra.mxu0 %v12258_v15  ;;  %v11221_v15 = vrot.slane %v4372_v11, %v12299_v31 }
 0x476   : > { %4700 = vmatpush1.bf16.msra.mxu1 %v12259_v8  ;;  %4660 = vmatprep.subr.bf16.mxu0 %v12260_v60  ;;  %v12300_v60 = vld [vmem:[#allocation84_spill] sm:$0xff] }
 0x477   : > { %4701 = vmatprep.subr.bf16.mxu1 %v12006_v36 }
 0x478   : > { %v4010_v59 = vpop.f32.mrf.mxu0 }
 0x479   : > { %v11154_v37 = vadd.f32 %v4010_v59, %v3736_v10  ;;  %v4051_v43 = vpop.f32.mrf.mxu1  ;;  %4661 = vmatpush1.bf16.msra.mxu0 %v12261_v45  ;;  %v12270_v10 = vld [vmem:[#allocation58_spill] sm:$0xff] }
 0x47a   : > { %4702 = vmatpush1.bf16.msra.mxu1 %v12262_v29  ;;  %v4012_v58 = vpop.f32.mrf.mxu0  ;;  %4662 = vmatprep.subr.bf16.mxu0 %v12263_v61  ;;  %v4059_v16 = vadd.f32 %v4051_v43, %v11100_v63  ;;  %v12301_v63 = vld [vmem:[#allocation85_spill] sm:$0xff] }
 0x47b   : > { %v4053_v48 = vpop.f32.mrf.mxu1  ;;  %4703 = vmatprep.subr.bf16.mxu1 %v12006_v36  ;;  %v4058_v32 = vadd.f32 %v4012_v58, %v11104_v46 }
 0x47c   : > { %v4014_v24 = vpop.f32.mrf.mxu0  ;;  %v12302_v48 = vld [vmem:[#allocation86_spill] sm:$0xff] }
 0x47d   : > { %v4054_v40 = vpop.f32.mrf.mxu1  ;;  %4663 = vmatpush1.bf16.msra.mxu0 %v12264_v41  ;;  %v12303_v24 = vld [vmem:[#allocation87_spill] sm:$0xff]  ;;  %v12304_v41 = vld [vmem:[#allocation88_spill] sm:$0xff] }
 0x47e   : > { %4704 = vmatpush1.bf16.msra.mxu1 %v12265_v57  ;;  %v4015_v56 = vpop.f32.mrf.mxu0  ;;  %4664 = vmatprep.subr.bf16.mxu0 %v12266_v54 }
 0x47f   : > { %v4055_v44 = vpop.f32.mrf.mxu1  ;;  %4705 = vmatprep.subr.bf16.mxu1 %v12006_v36 }
 0x480   : > { %v12305_v44 = vld [vmem:[#allocation89_spill] sm:$0xff] }
 0x481   : > { %4665 = vmatpush1.bf16.msra.mxu0 %v12267_v55 }
 0x482   : > { %4706 = vmatpush1.bf16.msra.mxu1 %v12268_v13  ;;  %4666 = vmatprep.subr.bf16.mxu0 %v12269_v6  ;;  %v12306_v13 = vld [vmem:[#allocation90_spill] sm:$0xff]  ;;  %v12307_v6 = vld [vmem:[#allocation91_spill] sm:$0xff] }
 0x483   : > { %4707 = vmatprep.subr.bf16.mxu1 %v12006_v36 }
 0x485   : > { %4667 = vmatpush1.bf16.msra.mxu0 %v12270_v10  ;;  %v12308_v10 = vld [vmem:[#allocation92_spill] sm:$0xff] }
 0x486   : > { %4708 = vmatpush1.bf16.msra.mxu1 %v12271_v21  ;;  %6815 = vmatprep.subr.msk.bf16.mxu0 %vm3066_vm3, %v12272_v62  ;;  %v12309_v21 = vld [vmem:[#allocation93_spill] sm:$0xff]  ;;  %v12310_v62 = vld [vmem:[#allocation94_spill] sm:$0xff] }
 0x487   : > { %4719 = vmatprep.subr.bf16.mxu1 %v12006_v36 }
 0x489   : > { %4679 = vmatpush2.bf16.msra.mxu0 %v12273_v0  ;;  %v12311_v0 = vld [vmem:[#allocation95_spill] sm:$0xff] }
 0x48a   : > { %4720 = vmatpush2.bf16.msra.mxu1 %v12274_v2  ;;  %4680 = vmatprep.subr.bf16.mxu0 %v12275_v4  ;;  %v12312_v2 = vld [vmem:[#allocation97_spill] sm:$0xff]  ;;  %v12313_v4 = vld [vmem:[#allocation96_spill] sm:$0xff] }
 0x48b   : > { %4721 = vmatprep.subr.bf16.mxu1 %v12006_v36 }
 0x48d   : > { %4681 = vmatpush2.bf16.msra.mxu0 %v12276_v49  ;;  %v12314_v49 = vld [vmem:[#allocation98_spill] sm:$0xff] }
 0x48e   : > { %4722 = vmatpush2.bf16.msra.mxu1 %v12277_v50  ;;  %4682 = vmatprep.subr.bf16.mxu0 %v12278_v33  ;;  %v12315_v50 = vld [vmem:[#allocation99_spill] sm:$0xff]  ;;  %v12316_v33 = vld [vmem:[#allocation100_spill] sm:$0xff] }
 0x48f   : > { %4723 = vmatprep.subr.bf16.mxu1 %v12006_v36 }
 0x491   : > { %4683 = vmatpush2.bf16.msra.mxu0 %v12279_v51  ;;  %v12317_v51 = vld [vmem:[#allocation101_spill] sm:$0xff] }
 0x492   : > { %4724 = vmatpush2.bf16.msra.mxu1 %v12280_v52  ;;  %4744 = vmatprep.subr.bf16.mxu0 %v12281_v53  ;;  %v12318_v52 = vld [vmem:[#allocation102_spill] sm:$0xff]  ;;  %v4738_v53 = vrot.slane %v10047_v35, 1 }
 0x493   : > { %4785 = vmatprep.subr.bf16.mxu1 %v12006_v36 }
 0x494   : > { %4685 = vmatmul.mubr.bf16.vlgmr.msra.gmra.mxu0 %v12282_v7 }
 0x495   : > { %4726 = vmatmul.mubr.bf16.vlgmr.msra.gmra.mxu1 %v12282_v7  ;;  %4745 = vmatpush1.bf16.msra.mxu0 %v12283_v19 }
 0x496   : > { %6819 = vmatprep.mubr.msk.bf16.mxu0 %vm3062_vm4, %v4739_v9  ;;  %4786 = vmatpush1.bf16.msra.mxu1 %v12284_v14 }
 0x497   : > { %6820 = vmatprep.mubr.msk.bf16.mxu1 %vm3062_vm4, %v4739_v9  ;;  %4746 = vmatprep.subr.bf16.mxu0 %v12285_v12 }
 0x498   : > { %4787 = vmatprep.subr.bf16.mxu1 %v12006_v36 }
 0x499   : > { %4747 = vmatpush1.bf16.msra.mxu0 %v12286_v39 }
 0x49a   : > { %4788 = vmatpush1.bf16.msra.mxu1 %v12287_v22  ;;  %4748 = vmatprep.subr.bf16.mxu0 %v12288_v23 }
 0x49b   : > { %4789 = vmatprep.subr.bf16.mxu1 %v12006_v36 }
 0x49d   : > { %4749 = vmatpush1.bf16.msra.mxu0 %v12289_v18 }
 0x49e   : > { %4790 = vmatpush1.bf16.msra.mxu1 %v12290_v25  ;;  %4750 = vmatprep.subr.bf16.mxu0 %v12291_v34 }
 0x49f   : > { %4791 = vmatprep.subr.bf16.mxu1 %v12006_v36 }
 0x4a1   : > { %4751 = vmatpush1.bf16.msra.mxu0 %v12292_v17 }
 0x4a2   : > { %4792 = vmatpush1.bf16.msra.mxu1 %v12293_v28  ;;  %4752 = vmatprep.subr.bf16.mxu0 %v12294_v30 }
 0x4a3   : > { %4793 = vmatprep.subr.bf16.mxu1 %v12006_v36 }
 0x4a4   : > { %v4322_v38 = vpop.f32.mrf.mxu0 }
 0x4a5   : > { %v4369_v26 = vadd.f32 %v4322_v38, %v11154_v37  ;;  %v4363_v5 = vpop.f32.mrf.mxu1  ;;  %4753 = vmatpush1.bf16.msra.mxu0 %v12298_v42  ;;  %v7915_v42 = vld [vmem:[%s11785_s5 + $0x64] ss:$8 sps:$4 sm:$0xff]  }
 0x4a6   : > { %v4371_v8 = vadd.f32 %v4363_v5, %v4059_v16  ;;  %4794 = vmatpush1.bf16.msra.mxu1 %v12300_v60  ;;  %v4324_v59 = vpop.f32.mrf.mxu0  ;;  %4754 = vmatprep.subr.bf16.mxu0 %v12301_v63  ;;  %v7912_v5 = vld [vmem:[%s11785_s5 + $0x114] ss:$8 sps:$4 sm:$0xff]   ;;  %v7913_v60 = vld [vmem:[%s11785_s5 + $0x60] ss:$8 sps:$4 sm:$0xff]  }
 0x4a7   : > { %v11226_v43 = vadd.f32 %v11209_v47, %v4369_v26  ;;  %v4370_v45 = vadd.f32 %v4324_v59, %v4058_v32  ;;  %v4365_v29 = vpop.f32.mrf.mxu1  ;;  %4795 = vmatprep.subr.bf16.mxu1 %v12006_v36  ;;  %v7909_v32 = vld [vmem:[%s11785_s5 + $0x74] ss:$8 sps:$4 sm:$0xff]   ;;  %v7910_v26 = vld [vmem:[%s11785_s5 + $0x110] ss:$8 sps:$4 sm:$0xff]   ;;  %v7916_v59 = vld [vmem:[%s11785_s5 + $0x100] ss:$8 sps:$4 sm:$0xff]  }
 0x4a8   : > { %v4391_v46 = vadd.f32 %v11215_v1, %v4371_v8  ;;  %v4326_v37 = vpop.f32.mrf.mxu0  ;;  %v7918_v8 = vld [vmem:[%s11785_s5 + $0x104] ss:$8 sps:$4 sm:$0xff]   ;;  %v7921_v63 = vld [vmem:[%s11785_s5 + $0x54] ss:$8 sps:$4 sm:$0xff]   ;;  %v7919_v29 = vld [vmem:[%s11785_s5 + $0x50] ss:$8 sps:$4 sm:$0xff]  }
 0x4a9   : > { %v11231_v58 = vadd.f32 %v11221_v15, %v4370_v45  ;;  %v4366_v61 = vpop.f32.mrf.mxu1  ;;  %4755 = vmatpush1.bf16.msra.mxu0 %v12302_v48  ;;  %v7924_v45 = vld [vmem:[%s11785_s5 + $0xf4] ss:$8 sps:$4 sm:$0xff]   ;;  %v7927_v37 = vld [vmem:[%s11785_s5 + $0x44] ss:$8 sps:$4 sm:$0xff]   ;;  %v7925_v48 = vld [vmem:[%s11785_s5 + $0x40] ss:$8 sps:$4 sm:$0xff]  }
 0x4aa   : > { %4796 = vmatpush1.bf16.msra.mxu1 %v12303_v24  ;;  %v4327_v40 = vpop.f32.mrf.mxu0  ;;  %4756 = vmatprep.subr.bf16.mxu0 %v12304_v41  ;;  %v4394_v57 = vmax.f32 %v4391_v46, 0.0  ;;  %v7922_v46 = vld [vmem:[%s11785_s5 + $0xf0] ss:$8 sps:$4 sm:$0xff]   ;;  %v7930_v61 = vld [vmem:[%s11785_s5 + $0xe4] ss:$8 sps:$4 sm:$0xff]  }
 0x4ab   : > { %v4393_v56 = vmax.f32 %v11231_v58, 0.0  ;;  %v4367_v54 = vpop.f32.mrf.mxu1  ;;  %4797 = vmatprep.subr.bf16.mxu1 %v12006_v36  ;;  %v7928_v24 = vld [vmem:[%s11785_s5 + $0xe0] ss:$8 sps:$4 sm:$0xff]   ;;  %v7933_v40 = vld [vmem:[%s11785_s5 + $0x34] ss:$8 sps:$4 sm:$0xff]  }
 0x4ac   : > { %v7936_v41 = vld [vmem:[%s11785_s5 + $0xd4] ss:$8 sps:$4 sm:$0xff]   ;;  %v7934_v54 = vld [vmem:[%s11785_s5 + $0xd0] ss:$8 sps:$4 sm:$0xff]  }
 0x4ad   : > { %4757 = vmatpush1.bf16.msra.mxu0 %v12305_v44  ;;  %v7558_v55 = vpack.i.bf16 %v4394_v57, %v4393_v56  ;;  %v7931_v57 = vld [vmem:[%s11785_s5 + $0x30] ss:$8 sps:$4 sm:$0xff]   ;;  %v7939_v44 = vld [vmem:[%s11785_s5 + $0x24] ss:$8 sps:$4 sm:$0xff]  }
 0x4ae   : > { %4798 = vmatpush1.bf16.msra.mxu1 %v12306_v13  ;;  %4758 = vmatprep.subr.bf16.mxu0 %v12307_v6  ;;  %v7937_v13 = vld [vmem:[%s11785_s5 + $0x20] ss:$8 sps:$4 sm:$0xff]  }
 0x4af   : > { %7559 = vrot.lane.b32.xlu0 %v7558_v55, %s8278_s29  ;;  %4799 = vmatprep.subr.bf16.mxu1 %v12006_v36  ;;  %v7942_v55 = vld [vmem:[%s11785_s5 + $0xc4] ss:$8 sps:$4 sm:$0xff]   ;;  %v7940_v6 = vld [vmem:[%s11785_s5 + $0xc0] ss:$8 sps:$4 sm:$0xff]  }
 0x4b1   : > { %4759 = vmatpush1.bf16.msra.mxu0 %v12308_v10  ;;  %v7945_v10 = vld [vmem:[%s11785_s5 + $0x14] ss:$8 sps:$4 sm:$0xff]  }
 0x4b2   : > { %4800 = vmatpush1.bf16.msra.mxu1 %v12309_v21  ;;  %6818 = vmatprep.subr.msk.bf16.mxu0 %vm3066_vm3, %v12310_v62  ;;  %v7948_v21 = vld [vmem:[%s11785_s5 + $0xb4] ss:$8 sps:$4 sm:$0xff]   ;;  %v7943_v62 = vld [vmem:[%s11785_s5 + $0x10] ss:$8 sps:$4 sm:$0xff]  }
 0x4b3   : > { %4811 = vmatprep.subr.bf16.mxu1 %v12006_v36 }
 0x4b5   : > { %4771 = vmatpush2.bf16.msra.mxu0 %v12311_v0  ;;  %v7946_v0 = vld [vmem:[%s11785_s5 + $0xb0] ss:$8 sps:$4 sm:$0xff]  }
 0x4b6   : > { %4812 = vmatpush2.bf16.msra.mxu1 %v12312_v2  ;;  %4772 = vmatprep.subr.bf16.mxu0 %v12313_v4  ;;  %v7951_v2 = vld [vmem:[%s11785_s5 + $0x4] ss:$8 sps:$4 sm:$0xff]  }
 0x4b7   : > { %4813 = vmatprep.subr.bf16.mxu1 %v12006_v36  ;;  %v7954_v4 = vld [vmem:[%s11785_s5 + $0xa4] ss:$8 sps:$4 sm:$0xff]  }
 0x4b9   : > { %4773 = vmatpush2.bf16.msra.mxu0 %v12314_v49  ;;  %v7949_v49 = vld [vmem:[%s11785_s5] ss:$8 sps:$4 sm:$0xff]  }
 0x4ba   : > { %4814 = vmatpush2.bf16.msra.mxu1 %v12315_v50  ;;  %4774 = vmatprep.subr.bf16.mxu0 %v12316_v33  ;;  %v7952_v50 = vld [vmem:[%s11785_s5 + $0xa0] ss:$8 sps:$4 sm:$0xff]  }
 0x4bb   : > { %4815 = vmatprep.subr.bf16.mxu1 %v12006_v36 }
 0x4bd   : > { %4775 = vmatpush2.bf16.msra.mxu0 %v12317_v51 }
 0x4be   : > { %4816 = vmatpush2.bf16.msra.mxu1 %v12318_v52  ;;  %5001 = vmatprep.subr.bf16.mxu0 %v7912_v5 }
 0x4bf   : > { %5144 = vmatprep.subr.bf16.mxu1 %v7909_v32  ;;  %v7960_v32 = vld [vmem:[%s11785_s5 + $0x134] ss:$8 sps:$4 sm:$0xff]  }
 0x4c0   : > { %4777 = vmatmul.mubr.bf16.vlgmr.msra.gmra.mxu0 %v4738_v53 }
 0x4c1   : > { %4818 = vmatmul.mubr.bf16.vlgmr.msra.gmra.mxu1 %v4738_v53  ;;  %5002 = vmatpush1.bf16.msra.mxu0 %v7910_v26 }
 0x4c2   : > { %5145 = vmatpush1.bf16.msra.mxu1 %v7907_v27  ;;  %5003 = vmatprep.subr.bf16.mxu0 %v7918_v8  ;;  %v7958_v8 = vld [vmem:[%s11785_s5 + $0x130] ss:$8 sps:$4 sm:$0xff]  }
 0x4c3   : > { %5146 = vmatprep.subr.bf16.mxu1 %v7915_v42 }
 0x4c5   : > { %5004 = vmatpush1.bf16.msra.mxu0 %v7916_v59 }
 0x4c6   : > { %5147 = vmatpush1.bf16.msra.mxu1 %v7913_v60  ;;  %5005 = vmatprep.subr.bf16.mxu0 %v7924_v45 }
 0x4c7   : > { %5148 = vmatprep.subr.bf16.mxu1 %v7921_v63  ;;  %v7963_v63 = vld [vmem:[%s11785_s5 + $0x84] ss:$8 sps:$4 sm:$0xff]  }
 0x4c9   : > { %5006 = vmatpush1.bf16.msra.mxu0 %v7922_v46 }
 0x4ca   : > { %5149 = vmatpush1.bf16.msra.mxu1 %v7919_v29  ;;  %5007 = vmatprep.subr.bf16.mxu0 %v7930_v61 }
 0x4cb   : > { %5150 = vmatprep.subr.bf16.mxu1 %v7927_v37  ;;  %v7961_v37 = vld [vmem:[%s11785_s5 + $0x80] ss:$8 sps:$4 sm:$0xff]  }
 0x4cd   : > { %5008 = vmatpush1.bf16.msra.mxu0 %v7928_v24  ;;  %v7966_v24 = vld [vmem:[%s11785_s5 + $0x124] ss:$8 sps:$4 sm:$0xff]  }
 0x4ce   : > { %5151 = vmatpush1.bf16.msra.mxu1 %v7925_v48  ;;  %5009 = vmatprep.subr.bf16.mxu0 %v7936_v41 }
 0x4cf   : > { %5152 = vmatprep.subr.bf16.mxu1 %v7933_v40 }
 0x4d0   : > { %v4440_v7 = vpop.f32.mrf.mxu0 }
 0x4d1   : > { %v4481_v9 = vpop.f32.mrf.mxu1  ;;  %5010 = vmatpush1.bf16.msra.mxu0 %v7934_v54 }
 0x4d2   : > { %v4442_v19 = vpop.f32.mrf.mxu0  ;;  %5153 = vmatpush1.bf16.msra.mxu1 %v7931_v57  ;;  %5011 = vmatprep.subr.bf16.mxu0 %v7942_v55 }
 0x4d3   : > { %v4483_v14 = vpop.f32.mrf.mxu1  ;;  %5154 = vmatprep.subr.bf16.mxu1 %v7939_v44 }
 0x4d4   : > { %v4444_v12 = vpop.f32.mrf.mxu0 }
 0x4d5   : > { %v4484_v39 = vpop.f32.mrf.mxu1  ;;  %5012 = vmatpush1.bf16.msra.mxu0 %v7940_v6 }
 0x4d6   : > { %v4445_v22 = vpop.f32.mrf.mxu0  ;;  %5155 = vmatpush1.bf16.msra.mxu1 %v7937_v13  ;;  %5013 = vmatprep.subr.bf16.mxu0 %v7948_v21 }
 0x4d7   : > { %v4485_v23 = vpop.f32.mrf.mxu1  ;;  %5156 = vmatprep.subr.bf16.mxu1 %v7945_v10 }
 0x4d9   : > { %5014 = vmatpush1.bf16.msra.mxu0 %v7946_v0 }
 0x4da   : > { %5157 = vmatpush1.bf16.msra.mxu1 %v7943_v62  ;;  %5015 = vmatprep.subr.bf16.mxu0 %v7954_v4 }
 0x4db   : > { %5158 = vmatprep.subr.bf16.mxu1 %v7951_v2 }
 0x4dd   : > { %5016 = vmatpush1.bf16.msra.mxu0 %v7952_v50 }
 0x4de   : > { %5159 = vmatpush1.bf16.msra.mxu1 %v7949_v49  ;;  %5029 = vmatprep.subr.bf16.mxu0 %v7960_v32  ;;  %v4392_v49 = vmax.f32 %v11226_v43, 0.0  ;;  %v7975_v43 = vld [vmem:[%s11785_s5 + $0x244] ss:$8 sps:$4 sm:$0xff]   ;;  %v7988_v32 = vld [vmem:[%s11785_s5 + $0x180] ss:$8 sps:$4 sm:$0xff]  }
 0x4e1   : > { %5030 = vmatpush2.bf16.msra.mxu0 %v7958_v8  ;;  %v7994_v8 = vld [vmem:[%s11785_s5 + $0x170] ss:$8 sps:$4 sm:$0xff]  }
 0x4e2   : > { %5031 = vmatprep.subr.bf16.mxu0 %v7966_v24  ;;  %v8009_v24 = vld [vmem:[%s11785_s5 + $0x1e0] ss:$8 sps:$4 sm:$0xff]  }
 0x4fc   : > { %v4521_v18 = vpop.f32.mrf.mxu0 }
 0x4fd   : > { %v11261_v25 = vadd.f32 %v4521_v18, %v4440_v7  ;;  %v4562_v36 = vpop.f32.mrf.mxu1 }
 0x4fe   : > { %v11263_v34 = vadd.f32 %v4562_v36, %v4481_v9  ;;  %v4523_v11 = vpop.f32.mrf.mxu0 }
 0x4ff   : > { %v11265_v17 = vadd.f32 %v4523_v11, %v4442_v19  ;;  %v4564_v35 = vpop.f32.mrf.mxu1 }
 0x500   : > { %v4525_v28 = vpop.f32.mrf.mxu0 }
 0x501   : > { %v4565_v30 = vpop.f32.mrf.mxu1 }
 0x502   : > { %v4526_v16 = vpop.f32.mrf.mxu0 }
 0x503   : > { %v4566_v38 = vpop.f32.mrf.mxu1 }
 0x521   : > { %v7560_v6 = vpop.permute.xlu0 %7559 }
 0x522   : > { %v7562_v10 = vunpack.i.h.bf16 %v7560_v6  ;;  %v7561_v21 = vunpack.i.l.bf16 %v7560_v6 }
 0x524   : > { %v4401_v0 = vsel %vm535_vm1, %v7561_v21, %v7562_v10 }
 0x528   : > { %v4602_v33 = vpop.f32.mrf.mxu0 }
 0x529   : > { %v4649_v51 = vadd.f32 %v4602_v33, %v11261_v25  ;;  %v4643_v52 = vpop.f32.mrf.mxu1  ;;  %v4405_v33 = vmax.f32 %v4393_v56, %v7562_v10  ;;  %v7970_v56 = vld [vmem:[%s11785_s5 + $0x1b0] ss:$8 sps:$4 sm:$0xff]  }
 0x52a   : > { %v4651_v53 = vadd.f32 %v4643_v52, %v11263_v34  ;;  %v4604_v7 = vpop.f32.mrf.mxu0  ;;  %v7957_v34 = vld [vmem:[%s11785_s5 + $0x94] ss:$8 sps:$4 sm:$0xff]   ;;  %v8027_v10 = vld [vmem:[%s11785_s5 + $0x2f0] ss:$8 sps:$4 sm:$0xff]  }
 0x52b   : > { %v4650_v9 = vadd.f32 %v4604_v7, %v11265_v17  ;;  %v4645_v19 = vpop.f32.mrf.mxu1  ;;  %v7955_v17 = vld [vmem:[%s11785_s5 + $0x90] ss:$8 sps:$4 sm:$0xff]   ;;  %5172 = vmatprep.subr.bf16.mxu1 %v7957_v34 }
 0x52c   : > { %v4606_v14 = vpop.f32.mrf.mxu0  ;;  %5173 = vmatpush2.bf16.msra.mxu1 %v7955_v17  ;;  %v7982_v34 = vld [vmem:[%s11785_s5 + $0x190] ss:$8 sps:$4 sm:$0xff]   ;;  %v7990_v17 = vld [vmem:[%s11785_s5 + $0x184] ss:$8 sps:$4 sm:$0xff]  }
 0x52d   : > { %v4646_v12 = vpop.f32.mrf.mxu1  ;;  %5174 = vmatprep.subr.bf16.mxu1 %v7963_v63  ;;  %v8005_v63 = vld [vmem:[%s11785_s5 + $0x1f4] ss:$8 sps:$4 sm:$0xff]  }
 0x52e   : > { %v4607_v39 = vpop.f32.mrf.mxu0  ;;  %v7967_v12 = vld [vmem:[%s11785_s5 + $0x250] ss:$8 sps:$4 sm:$0xff]  }
 0x52f   : > { %v4647_v22 = vpop.f32.mrf.mxu1 }
 0x530   : > { %5175 = vmatpush2.bf16.msra.mxu1 %v7961_v37  ;;  %v8011_v37 = vld [vmem:[%s11785_s5 + $0x1e4] ss:$8 sps:$4 sm:$0xff]  }
 0x554   : > { %v4686_v23 = vpop.f32.mrf.mxu0 }
 0x555   : > { %v4733_v18 = vadd.f32 %v4686_v23, %v4649_v51  ;;  %v4727_v36 = vpop.f32.mrf.mxu1  ;;  %v7978_v23 = vld [vmem:[%s11785_s5 + $0x1a4] ss:$8 sps:$4 sm:$0xff]  }
 0x556   : > { %v4688_v11 = vpop.f32.mrf.mxu0  ;;  %v4735_v38 = vadd.f32 %v4727_v36, %v4651_v53  ;;  %v4404_v53 = vmax.f32 %v4392_v49, %v4401_v0  ;;  %v7973_v36 = vld [vmem:[%s11785_s5 + $0x240] ss:$8 sps:$4 sm:$0xff]   ;;  %v8033_v49 = vld [vmem:[%s11785_s5 + $0x2d0] ss:$8 sps:$4 sm:$0xff]  }
 0x557   : > { %v4729_v35 = vpop.f32.mrf.mxu1  ;;  %v4734_v26 = vadd.f32 %v4688_v11, %v4650_v9 }
 0x558   : > { %v4690_v28 = vpop.f32.mrf.mxu0  ;;  %v7981_v35 = vld [vmem:[%s11785_s5 + $0x234] ss:$8 sps:$4 sm:$0xff]  }
 0x559   : > { %v4730_v25 = vpop.f32.mrf.mxu1  ;;  %v7976_v28 = vld [vmem:[%s11785_s5 + $0x1a0] ss:$8 sps:$4 sm:$0xff]  }
 0x55a   : > { %v4691_v30 = vpop.f32.mrf.mxu0  ;;  %v7984_v25 = vld [vmem:[%s11785_s5 + $0x194] ss:$8 sps:$4 sm:$0xff]  }
 0x55b   : > { %v4731_v16 = vpop.f32.mrf.mxu1  ;;  %v7979_v30 = vld [vmem:[%s11785_s5 + $0x230] ss:$8 sps:$4 sm:$0xff]  }
 0x55c   : > { %v7987_v16 = vld [vmem:[%s11785_s5 + $0x224] ss:$8 sps:$4 sm:$0xff]  }
 0x580   : > { %v4778_v27 = vpop.f32.mrf.mxu0 }
 0x581   : > { %v4825_v5 = vadd.f32 %v4778_v27, %v4733_v18  ;;  %v4819_v42 = vpop.f32.mrf.mxu1  ;;  %v7993_v27 = vld [vmem:[%s11785_s5 + $0x214] ss:$8 sps:$4 sm:$0xff]  }
 0x582   : > { %v4827_v60 = vadd.f32 %v4819_v42, %v4735_v38  ;;  %v4780_v59 = vpop.f32.mrf.mxu0  ;;  %v7985_v38 = vld [vmem:[%s11785_s5 + $0x220] ss:$8 sps:$4 sm:$0xff]   ;;  %v7999_v42 = vld [vmem:[%s11785_s5 + $0x204] ss:$8 sps:$4 sm:$0xff]  }
 0x583   : > { %v4828_v45 = vadd.f32 %v4825_v5, %v11209_v47  ;;  %v4826_v29 = vadd.f32 %v4780_v59, %v4734_v26  ;;  %v4821_v46 = vpop.f32.mrf.mxu1  ;;  %v7964_v47 = vld [vmem:[%s11785_s5 + $0x120] ss:$8 sps:$4 sm:$0xff]   ;;  %v7996_v26 = vld [vmem:[%s11785_s5 + $0x174] ss:$8 sps:$4 sm:$0xff]   ;;  %v7991_v5 = vld [vmem:[%s11785_s5 + $0x210] ss:$8 sps:$4 sm:$0xff]  }
 0x584   : > { %v4830_v61 = vadd.f32 %v4827_v60, %v11215_v1  ;;  %v4782_v48 = vpop.f32.mrf.mxu0  ;;  %v7969_v1 = vld [vmem:[%s11785_s5 + $0x254] ss:$8 sps:$4 sm:$0xff]   ;;  %5032 = vmatpush2.bf16.msra.mxu0 %v7964_v47  ;;  %v8002_v60 = vld [vmem:[%s11785_s5 + $0x164] ss:$8 sps:$4 sm:$0xff]   ;;  %v7997_v59 = vld [vmem:[%s11785_s5 + $0x200] ss:$8 sps:$4 sm:$0xff]  }
 0x585   : > { %v4829_v40 = vadd.f32 %v4826_v29, %v11221_v15  ;;  %v4822_v41 = vpop.f32.mrf.mxu1  ;;  %5484 = vmatprep.subr.bf16.mxu1 %v7969_v1  ;;  %v7972_v15 = vld [vmem:[%s11785_s5 + $0x1b4] ss:$8 sps:$4 sm:$0xff]   ;;  %v4831_v50 = vmax.f32 %v4828_v45, 0.0  ;;  %v8000_v45 = vld [vmem:[%s11785_s5 + $0x160] ss:$8 sps:$4 sm:$0xff]  }
 0x586   : > { %v4783_v57 = vpop.f32.mrf.mxu0  ;;  %v4833_v54 = vmax.f32 %v4830_v61, 0.0  ;;  %5314 = vmatprep.subr.bf16.mxu0 %v7972_v15  ;;  %v8008_v29 = vld [vmem:[%s11785_s5 + $0x154] ss:$8 sps:$4 sm:$0xff]   ;;  %v8003_v46 = vld [vmem:[%s11785_s5 + $0x1f0] ss:$8 sps:$4 sm:$0xff]  }
 0x587   : > { %v4832_v44 = vmax.f32 %v4829_v40, 0.0  ;;  %v4823_v55 = vpop.f32.mrf.mxu1  ;;  %v8006_v61 = vld [vmem:[%s11785_s5 + $0x150] ss:$8 sps:$4 sm:$0xff]   ;;  %v8014_v48 = vld [vmem:[%s11785_s5 + $0x144] ss:$8 sps:$4 sm:$0xff]  }
 0x588   : > { %v8017_v40 = vld [vmem:[%s11785_s5 + $0x274] ss:$8 sps:$4 sm:$0xff]   ;;  %v8012_v41 = vld [vmem:[%s11785_s5 + $0x140] ss:$8 sps:$4 sm:$0xff]   ;;  %v8015_v57 = vld [vmem:[%s11785_s5 + $0x270] ss:$8 sps:$4 sm:$0xff]  }
 0x589   : > { %v7563_v13 = vpack.i.bf16 %v4833_v54, %v4832_v44  ;;  %v8020_v47 = vld [vmem:[%s11785_s5 + $0x1d4] ss:$8 sps:$4 sm:$0xff]   ;;  %v8023_v1 = vld [vmem:[%s11785_s5 + $0x264] ss:$8 sps:$4 sm:$0xff]   ;;  %v8018_v54 = vld [vmem:[%s11785_s5 + $0x1d0] ss:$8 sps:$4 sm:$0xff]  }
 0x58a   : > { %v8021_v55 = vld [vmem:[%s11785_s5 + $0x260] ss:$8 sps:$4 sm:$0xff]  }
 0x58b   : > { %7564 = vrot.lane.b32.xlu1 %v7563_v13, %s8278_s29  ;;  %v8024_v15 = vld [vmem:[%s11785_s5 + $0x1c0] ss:$8 sps:$4 sm:$0xff]   ;;  %v8029_v13 = vld [vmem:[%s11785_s5 + $0x2f4] ss:$8 sps:$4 sm:$0xff]  }
 0x5fd   : > { %v7565_v62 = vpop.permute.xlu1 %7564 }
 0x5fe   : > { %v7567_v2 = vunpack.i.h.bf16 %v7565_v62  ;;  %v7566_v4 = vunpack.i.l.bf16 %v7565_v62  ;;  %v8032_v62 = vld [vmem:[%s11785_s5 + $0x2e4] ss:$8 sps:$4 sm:$0xff]  }
 0x600   : > { %v4844_v51 = vmax.f32 %v4832_v44, %v7567_v2  ;;  %v4840_v52 = vsel %vm535_vm1, %v7566_v4, %v7567_v2  ;;  %v8026_v44 = vld [vmem:[%s11785_s5 + $0x1c4] ss:$8 sps:$4 sm:$0xff]   ;;  %v8030_v2 = vld [vmem:[%s11785_s5 + $0x2e0] ss:$8 sps:$4 sm:$0xff]   ;;  %v8035_v4 = vld [vmem:[%s11785_s5 + $0x2d4] ss:$8 sps:$4 sm:$0xff]  }
 0x601   : > { %v4843_v7 = vmax.f32 %v4831_v50, %v4840_v52  ;;  %v8038_v50 = vld [vmem:[%s11785_s5 + $0x2c4] ss:$8 sps:$4 sm:$0xff]   ;;  %v8039_v52 = vld [vmem:[%s11785_s5 + $0x2b0] ss:$8 sps:$4 sm:$0xff]  }
 0x602   : > { %v4846_v9 = vmax.f32 %v4405_v33, %v4844_v51  ;;  %v8036_v33 = vld [vmem:[%s11785_s5 + $0x2c0] ss:$8 sps:$4 sm:$0xff]   ;;  %v8041_v51 = vld [vmem:[%s11785_s5 + $0x2b4] ss:$8 sps:$4 sm:$0xff]  }
 0x603   : > { %v4845_v19 = vmax.f32 %v4404_v53, %v4843_v7  ;;  %v8044_v53 = vld [vmem:[%s11785_s5 + $0x2a4] ss:$8 sps:$4 sm:$0xff]   ;;  %v8042_v7 = vld [vmem:[%s11785_s5 + $0x2a0] ss:$8 sps:$4 sm:$0xff]  }
 0x604   : > { %v11405_v14 = vpack.c.bf16 %v4846_v9, %v4846_v9  ;;  %v8047_v9 = vld [vmem:[%s11785_s5 + $0x294] ss:$8 sps:$4 sm:$0xff]  }
 0x605   : > { %v11410_v39 = vpack.c.bf16 %v4845_v19, %v4845_v19  ;;  %v8045_v19 = vld [vmem:[%s11785_s5 + $0x290] ss:$8 sps:$4 sm:$0xff]  }
 0x606   : > { %6882 = vmatprep.mubr.msk.bf16.mxu1 %vm4997_vm5, %v11405_v14  ;;  %v4894_v58 = vshrl.u32 %v11405_v14, 16  ;;  %v5209_v18 = vrot.slane %v11405_v14, 1  ;;  %v5549_v0 = vrot.slane %v11405_v14, 2  ;;  %v8050_v14 = vld [vmem:[%s11785_s5 + $0x284] ss:$8 sps:$4 sm:$0xff]  }
 0x607   : > { %5177 = vmatmul.mubr.bf16.vlgmr.msra.gmra.mxu1 %v11410_v39  ;;  %v4891_v22 = vshrl.u32 %v11410_v39, 16  ;;  %v5208_v21 = vrot.slane %v11410_v39, 1 }
 0x608   : > { %5485 = vmatpush1.bf16.msra.mxu1 %v7967_v12  ;;  %6861 = vmatprep.mubr.msk.bf16.mxu0 %vm4997_vm5, %v4894_v58  ;;  %v5379_v11 = vrot.slane %v4894_v58, 1  ;;  %v8048_v12 = vld [vmem:[%s11785_s5 + $0x280] ss:$8 sps:$4 sm:$0xff]   ;;  %v8051_v58 = vld [vmem:[%s11785_s5 + $0x310] ss:$8 sps:$4 sm:$0xff]  }
 0x609   : > { %5034 = vmatmul.mubr.bf16.vlgmr.msra.gmra.mxu0 %v4891_v22  ;;  %5486 = vmatprep.subr.bf16.mxu1 %v7975_v43  ;;  %v5378_v6 = vrot.slane %v4891_v22, 1  ;;  %v8053_v43 = vld [vmem:[%s11785_s5 + $0x314] ss:$8 sps:$4 sm:$0xff]   ;;  %v8057_v22 = vld [vmem:[%s11787_s7 + $0x70] ss:$8 sps:$4 sm:$0xff]  }
 0x60a   : > { %5315 = vmatpush1.bf16.msra.mxu0 %v7970_v56  ;;  %6923 = vmatprep.mubr.msk.bf16.mxu0 %vm4997_vm5, %v5209_v18  ;;  %v8056_v56 = vld [vmem:[%s11785_s5 + $0x304] ss:$8 sps:$4 sm:$0xff]  }
 0x60b   : > { %6964 = vmatprep.mubr.msk.bf16.mxu1 %vm4997_vm5, %v5379_v11  ;;  %5316 = vmatprep.subr.bf16.mxu0 %v7978_v23  ;;  %v8059_v23 = vld [vmem:[%s11787_s7 + $0x74] ss:$8 sps:$4 sm:$0xff]   ;;  %v8062_v18 = vld [vmem:[%s11787_s7 + $0x64] ss:$8 sps:$4 sm:$0xff]   ;;  %v8060_v11 = vld [vmem:[%s11787_s7 + $0x60] ss:$8 sps:$4 sm:$0xff]  }
 0x60c   : > { %5487 = vmatpush1.bf16.msra.mxu1 %v7973_v36  ;;  %v8054_v36 = vld [vmem:[%s11785_s5 + $0x300] ss:$8 sps:$4 sm:$0xff]  }
 0x60d   : > { %5488 = vmatprep.subr.bf16.mxu1 %v7981_v35  ;;  %v5548_v35 = vrot.slane %v11410_v39, 2  ;;  %v8069_v39 = vld [vmem:[%s11787_s7 + $0x30] ss:$8 sps:$4 sm:$0xff]  }
 0x60e   : > { %5317 = vmatpush1.bf16.msra.mxu0 %v7976_v28  ;;  %v8065_v28 = vld [vmem:[%s11787_s7 + $0x54] ss:$8 sps:$4 sm:$0xff]  }
 0x60f   : > { %5318 = vmatprep.subr.bf16.mxu0 %v7984_v25  ;;  %v8063_v25 = vld [vmem:[%s11787_s7 + $0x50] ss:$8 sps:$4 sm:$0xff]  }
 0x610   : > { %5489 = vmatpush1.bf16.msra.mxu1 %v7979_v30  ;;  %v8068_v30 = vld [vmem:[%s11787_s7 + $0x44] ss:$8 sps:$4 sm:$0xff]  }
 0x611   : > { %5490 = vmatprep.subr.bf16.mxu1 %v7987_v16  ;;  %v8066_v16 = vld [vmem:[%s11787_s7 + $0x40] ss:$8 sps:$4 sm:$0xff]  }
 0x612   : > { %5319 = vmatpush1.bf16.msra.mxu0 %v7982_v34  ;;  %v8071_v34 = vld [vmem:[%s11787_s7 + $0x34] ss:$8 sps:$4 sm:$0xff]  }
 0x613   : > { %5320 = vmatprep.subr.bf16.mxu0 %v7990_v17  ;;  %v8074_v17 = vld [vmem:[%s11787_s7 + $0x24] ss:$8 sps:$4 sm:$0xff]  }
 0x614   : > { %5491 = vmatpush1.bf16.msra.mxu1 %v7985_v38  ;;  %v8072_v38 = vld [vmem:[%s11787_s7 + $0x20] ss:$8 sps:$4 sm:$0xff]  }
 0x615   : > { %5492 = vmatprep.subr.bf16.mxu1 %v7993_v27  ;;  %v8077_v27 = vld [vmem:[%s11787_s7 + $0x14] ss:$8 sps:$4 sm:$0xff]  }
 0x616   : > { %5321 = vmatpush1.bf16.msra.mxu0 %v7988_v32  ;;  %v8075_v32 = vld [vmem:[%s11787_s7 + $0x10] ss:$8 sps:$4 sm:$0xff]  }
 0x617   : > { %5322 = vmatprep.subr.bf16.mxu0 %v7996_v26  ;;  %v8080_v26 = vld [vmem:[%s11787_s7 + $0x4] ss:$8 sps:$4 sm:$0xff]  }
 0x618   : > { %5493 = vmatpush1.bf16.msra.mxu1 %v7991_v5  ;;  %v8078_v5 = vld [vmem:[%s11787_s7] ss:$8 sps:$4 sm:$0xff]  }
 0x619   : > { %5494 = vmatprep.subr.bf16.mxu1 %v7999_v42  ;;  %v8083_v42 = vld [vmem:[%s11787_s7 + $0xe4] ss:$8 sps:$4 sm:$0xff]  }
 0x61a   : > { %5323 = vmatpush1.bf16.msra.mxu0 %v7994_v8  ;;  %v8081_v8 = vld [vmem:[%s11787_s7 + $0xe0] ss:$8 sps:$4 sm:$0xff]  }
 0x61b   : > { %5324 = vmatprep.subr.bf16.mxu0 %v8002_v60  ;;  %v8086_v60 = vld [vmem:[%s11787_s7 + $0xd4] ss:$8 sps:$4 sm:$0xff]  }
 0x61c   : > { %5495 = vmatpush1.bf16.msra.mxu1 %v7997_v59  ;;  %v8084_v59 = vld [vmem:[%s11787_s7 + $0xd0] ss:$8 sps:$4 sm:$0xff]  }
 0x61d   : > { %5496 = vmatprep.subr.bf16.mxu1 %v8005_v63  ;;  %v8089_v63 = vld [vmem:[%s11787_s7 + $0xc4] ss:$8 sps:$4 sm:$0xff]  }
 0x61e   : > { %5325 = vmatpush1.bf16.msra.mxu0 %v8000_v45  ;;  %v8087_v45 = vld [vmem:[%s11787_s7 + $0xc0] ss:$8 sps:$4 sm:$0xff]  }
 0x61f   : > { %5326 = vmatprep.subr.bf16.mxu0 %v8008_v29  ;;  %v8092_v29 = vld [vmem:[%s11787_s7 + $0xb4] ss:$8 sps:$4 sm:$0xff]  }
 0x620   : > { %5497 = vmatpush1.bf16.msra.mxu1 %v8003_v46  ;;  %v8090_v46 = vld [vmem:[%s11787_s7 + $0xb0] ss:$8 sps:$4 sm:$0xff]  }
 0x621   : > { %5498 = vmatprep.subr.bf16.mxu1 %v8011_v37  ;;  %v8095_v37 = vld [vmem:[%s11787_s7 + $0xa4] ss:$8 sps:$4 sm:$0xff]  }
 0x622   : > { %5327 = vmatpush1.bf16.msra.mxu0 %v8006_v61  ;;  %v8093_v61 = vld [vmem:[%s11787_s7 + $0xa0] ss:$8 sps:$4 sm:$0xff]  }
 0x623   : > { %5328 = vmatprep.subr.bf16.mxu0 %v8014_v48  ;;  %v8098_v48 = vld [vmem:[%s11787_s7 + $0x94] ss:$8 sps:$4 sm:$0xff]  }
 0x624   : > { %5499 = vmatpush1.bf16.msra.mxu1 %v8009_v24  ;;  %v8096_v24 = vld [vmem:[%s11787_s7 + $0x90] ss:$8 sps:$4 sm:$0xff]  }
 0x625   : > { %5512 = vmatprep.subr.bf16.mxu1 %v8017_v40  ;;  %v8101_v40 = vld [vmem:[%s11787_s7 + $0x84] ss:$8 sps:$4 sm:$0xff]  }
 0x626   : > { %5329 = vmatpush1.bf16.msra.mxu0 %v8012_v41  ;;  %v8099_v41 = vld [vmem:[%s11787_s7 + $0x80] ss:$8 sps:$4 sm:$0xff]  }
 0x627   : > { %5342 = vmatprep.subr.bf16.mxu0 %v8020_v47  ;;  %v8102_v47 = vld [vmem:[%s11789_s9 + $0x70] ss:$8 sps:$4 sm:$0xff]  }
 0x628   : > { %5513 = vmatpush2.bf16.msra.mxu1 %v8015_v57  ;;  %v8104_v57 = vld [vmem:[%s11789_s9 + $0x74] ss:$8 sps:$4 sm:$0xff]  }
 0x629   : > { %5514 = vmatprep.subr.bf16.mxu1 %v8023_v1  ;;  %v8107_v1 = vld [vmem:[%s11789_s9 + $0x64] ss:$8 sps:$4 sm:$0xff]  }
 0x62a   : > { %5343 = vmatpush2.bf16.msra.mxu0 %v8018_v54  ;;  %v8105_v54 = vld [vmem:[%s11789_s9 + $0x60] ss:$8 sps:$4 sm:$0xff]  }
 0x62b   : > { %5344 = vmatprep.subr.bf16.mxu0 %v8026_v44  ;;  %v8110_v44 = vld [vmem:[%s11789_s9 + $0x54] ss:$8 sps:$4 sm:$0xff]  }
 0x62c   : > { %5515 = vmatpush2.bf16.msra.mxu1 %v8021_v55  ;;  %v8108_v55 = vld [vmem:[%s11789_s9 + $0x50] ss:$8 sps:$4 sm:$0xff]  }
 0x62d   : > { %5911 = vmatprep.subr.bf16.mxu1 %v8059_v23 }
 0x62e   : > { %5345 = vmatpush2.bf16.msra.mxu0 %v8024_v15  ;;  %v8113_v15 = vld [vmem:[%s11789_s9 + $0x44] ss:$8 sps:$4 sm:$0xff]  }
 0x62f   : > { %5517 = vmatmul.mubr.bf16.vlgmr.msra.gmra.mxu1 %v5378_v6  ;;  %5654 = vmatprep.subr.bf16.mxu0 %v8029_v13  ;;  %v8111_v13 = vld [vmem:[%s11789_s9 + $0x40] ss:$8 sps:$4 sm:$0xff]   ;;  %v8116_v6 = vld [vmem:[%s11789_s9 + $0x34] ss:$8 sps:$4 sm:$0xff]  }
 0x630   : > { %5912 = vmatpush1.bf16.msra.mxu1 %v8057_v22 }
 0x631   : > { %5347 = vmatmul.mubr.bf16.vlgmr.msra.gmra.mxu0 %v5208_v21  ;;  %5913 = vmatprep.subr.bf16.mxu1 %v8062_v18  ;;  %v8119_v21 = vld [vmem:[%s11789_s9 + $0x24] ss:$8 sps:$4 sm:$0xff]  }
 0x632   : > { %5655 = vmatpush1.bf16.msra.mxu0 %v8027_v10  ;;  %7005 = vmatprep.mubr.msk.bf16.mxu0 %vm4997_vm5, %v5549_v0  ;;  %v8114_v10 = vld [vmem:[%s11789_s9 + $0x30] ss:$8 sps:$4 sm:$0xff]   ;;  %v8122_v0 = vld [vmem:[%s11789_s9 + $0x14] ss:$8 sps:$4 sm:$0xff]  }
 0x633   : > { %5656 = vmatprep.subr.bf16.mxu0 %v8032_v62  ;;  %v8117_v62 = vld [vmem:[%s11789_s9 + $0x20] ss:$8 sps:$4 sm:$0xff]  }
 0x634   : > { %5914 = vmatpush1.bf16.msra.mxu1 %v8060_v11 }
 0x635   : > { %5915 = vmatprep.subr.bf16.mxu1 %v8065_v28 }
 0x636   : > { %5657 = vmatpush1.bf16.msra.mxu0 %v8030_v2  ;;  %v8120_v2 = vld [vmem:[%s11789_s9 + $0x10] ss:$8 sps:$4 sm:$0xff]  }
 0x637   : > { %5658 = vmatprep.subr.bf16.mxu0 %v8035_v4  ;;  %v8125_v4 = vld [vmem:[%s11789_s9 + $0x4] ss:$8 sps:$4 sm:$0xff]  }
 0x638   : > { %5916 = vmatpush1.bf16.msra.mxu1 %v8063_v25 }
 0x639   : > { %5917 = vmatprep.subr.bf16.mxu1 %v8068_v30 }
 0x63a   : > { %5659 = vmatpush1.bf16.msra.mxu0 %v8033_v49  ;;  %v5976_v49 = vld [vmem:[%s11789_s9 + $0xa0] sm:$0xff] }
 0x63b   : > { %5660 = vmatprep.subr.bf16.mxu0 %v8038_v50  ;;  %v8123_v50 = vld [vmem:[%s11789_s9] ss:$8 sps:$4 sm:$0xff]  }
 0x63c   : > { %5918 = vmatpush1.bf16.msra.mxu1 %v8066_v16 }
 0x63d   : > { %5919 = vmatprep.subr.bf16.mxu1 %v8071_v34 }
 0x63e   : > { %5661 = vmatpush1.bf16.msra.mxu0 %v8036_v33  ;;  %v7058_v33 = vcombine.high %v5976_v49, %v5976_v49 }
 0x63f   : > { %5662 = vmatprep.subr.bf16.mxu0 %v8041_v51  ;;  %v7057_v51 = vcombine.low %v5976_v49, %v5976_v49  ;;  %v5977_v49 = vld [vmem:[%s11790_s10] sm:$0x3] }
 0x640   : > { %5920 = vmatpush1.bf16.msra.mxu1 %v8069_v39  ;;  %v5697_v39 = vld [vmem:[%s11786_s6] sm:$0x3] }
 0x641   : > { %5921 = vmatprep.subr.bf16.mxu1 %v8074_v17 }
 0x642   : > { %5663 = vmatpush1.bf16.msra.mxu0 %v8039_v52  ;;  %v6098_v52 = vsel %vm3066_vm3, %v7057_v51, 0 }
 0x643   : > { %5664 = vmatprep.subr.bf16.mxu0 %v8044_v53 }
 0x644   : > { %5922 = vmatpush1.bf16.msra.mxu1 %v8072_v38  ;;  %v5702_v38 = vrot.slane %v5697_v39, %v12295_v20 }
 0x645   : > { %5923 = vmatprep.subr.bf16.mxu1 %v8077_v27 }
 0x646   : > { %5665 = vmatpush1.bf16.msra.mxu0 %v8042_v7 }
 0x647   : > { %5666 = vmatprep.subr.bf16.mxu0 %v8047_v9 }
 0x648   : > { %5924 = vmatpush1.bf16.msra.mxu1 %v8075_v32 }
 0x649   : > { %5925 = vmatprep.subr.bf16.mxu1 %v8080_v26 }
 0x64a   : > { %5667 = vmatpush1.bf16.msra.mxu0 %v8045_v19 }
 0x64b   : > { %5668 = vmatprep.subr.bf16.mxu0 %v8050_v14 }
 0x64c   : > { %5926 = vmatpush1.bf16.msra.mxu1 %v8078_v5  ;;  %v5706_v5 = vrot.slane %v5697_v39, %v12299_v31 }
 0x64d   : > { %5929 = vmatprep.subr.bf16.mxu1 %v8083_v42 }
 0x64e   : > { %5669 = vmatpush1.bf16.msra.mxu0 %v8048_v12 }
 0x64f   : > { %5682 = vmatprep.subr.bf16.mxu0 %v8053_v43 }
 0x650   : > { %5930 = vmatpush2.bf16.msra.mxu1 %v8081_v8 }
 0x651   : > { %5931 = vmatprep.subr.bf16.mxu1 %v8086_v60 }
 0x652   : > { %5683 = vmatpush2.bf16.msra.mxu0 %v8051_v58 }
 0x653   : > { %5684 = vmatprep.subr.bf16.mxu0 %v8056_v56 }
 0x654   : > { %5932 = vmatpush2.bf16.msra.mxu1 %v8084_v59 }
 0x655   : > { %5933 = vmatprep.subr.bf16.mxu1 %v8089_v63 }
 0x656   : > { %5685 = vmatpush2.bf16.msra.mxu0 %v8054_v36 }
 0x657   : > { %6103 = vmatprep.subr.bf16.mxu0 %v8104_v57 }
 0x658   : > { %5934 = vmatpush2.bf16.msra.mxu1 %v8087_v45 }
 0x659   : > { %5687 = vmatmul.mubr.bf16.vlgmr.msra.gmra.mxu0 %v5548_v35  ;;  %5935 = vmatprep.subr.bf16.mxu1 %v8092_v29 }
 0x65a   : > { %6104 = vmatpush1.bf16.msra.mxu0 %v8102_v47  ;;  %v5745_v47 = vld [vmem:[%s11788_s8] sm:$0x3] }
 0x65b   : > { %6105 = vmatprep.subr.bf16.mxu0 %v8107_v1  ;;  %v5900_v57 = vrot.slane %v5745_v47, %v12295_v20  ;;  %v5904_v1 = vrot.slane %v5745_v47, %v12299_v31 }
 0x65c   : > { %5936 = vmatpush2.bf16.msra.mxu1 %v8090_v46 }
 0x65d   : > { %5937 = vmatprep.subr.bf16.mxu1 %v8095_v37 }
 0x65e   : > { %6106 = vmatpush1.bf16.msra.mxu0 %v8105_v54 }
 0x65f   : > { %6107 = vmatprep.subr.bf16.mxu0 %v8110_v44 }
 0x660   : > { %5938 = vmatpush2.bf16.msra.mxu1 %v8093_v61 }
 0x661   : > { %5939 = vmatprep.subr.bf16.mxu1 %v8098_v48  ;;  %v8130_v48 = vld [vmem:[%s11789_s9 + $0x94] ss:$8 sps:$4 sm:$0xff]  }
 0x662   : > { %6108 = vmatpush1.bf16.msra.mxu0 %v8108_v55 }
 0x663   : > { %6109 = vmatprep.subr.bf16.mxu0 %v8113_v15 }
 0x664   : > { %5940 = vmatpush2.bf16.msra.mxu1 %v8096_v24  ;;  %v8128_v24 = vld [vmem:[%s11789_s9 + $0x90] ss:$8 sps:$4 sm:$0xff]  }
 0x665   : > { %5941 = vmatprep.subr.bf16.mxu1 %v8101_v40  ;;  %v8133_v40 = vld [vmem:[%s11789_s9 + $0x84] ss:$8 sps:$4 sm:$0xff]  }
 0x666   : > { %6110 = vmatpush1.bf16.msra.mxu0 %v8111_v13 }
 0x667   : > { %6111 = vmatprep.subr.bf16.mxu0 %v8116_v6 }
 0x668   : > { %5942 = vmatpush2.bf16.msra.mxu1 %v8099_v41  ;;  %v8131_v41 = vld [vmem:[%s11789_s9 + $0x80] ss:$8 sps:$4 sm:$0xff]  }
 0x66a   : > { %6112 = vmatpush1.bf16.msra.mxu0 %v8114_v10 }
 0x66b   : > { %6113 = vmatprep.subr.bf16.mxu0 %v8119_v21 }
 0x66e   : > { %6114 = vmatpush1.bf16.msra.mxu0 %v8117_v62 }
 0x66f   : > { %6115 = vmatprep.subr.bf16.mxu0 %v8122_v0 }
 0x672   : > { %6116 = vmatpush1.bf16.msra.mxu0 %v8120_v2  ;;  %v8279_v2 = vmov 1966171168  }
 0x673   : > { %6117 = vmatprep.subr.bf16.mxu0 %v8125_v4  ;;  %v6148_v4 = vunpack.c.l.s4 %v8279_v2 }
 0x675   : > { %v6149_v51 = vunpack.c.0.s8 %v6148_v4 }
 0x676   : > { %6118 = vmatpush1.bf16.msra.mxu0 %v8123_v50  ;;  %v6087_v50 = vrot.slane %v5977_v49, %v12295_v20 }
 0x677   : > { %7059 = vmatprep.subr.msk.bf16.mxu0 %vm3066_vm3, %v7058_v33  ;;  %v6091_v33 = vrot.slane %v5977_v49, %v12299_v31 }
 0x67a   : > { %6130 = vmatpush2.bf16.msra.mxu0 %v6098_v52 }
 0x67b   : > { %6131 = vmatprep.subr.bf16.mxu0 %v8130_v48 }
 0x67e   : > { %6132 = vmatpush2.bf16.msra.mxu0 %v8128_v24 }
 0x67f   : > { %6133 = vmatprep.subr.bf16.mxu0 %v8133_v40 }
 0x682   : > { %6134 = vmatpush2.bf16.msra.mxu0 %v8131_v41 }
 0x6c7   : > { %v5178_v53 = vpop.f32.mrf.mxu1 }
 0x6c9   : > { %v5035_v7 = vpop.f32.mrf.mxu0  ;;  %v5180_v9 = vpop.f32.mrf.mxu1 }
 0x6ca   : > { %v5179_v19 = vadd.f32 %v5178_v53, %v5035_v7 }
 0x6cb   : > { %v5037_v14 = vpop.f32.mrf.mxu0  ;;  %v5182_v12 = vpop.f32.mrf.mxu1 }
 0x6cc   : > { %v5181_v43 = vadd.f32 %v5180_v9, %v5037_v14 }
 0x6cd   : > { %v5039_v58 = vpop.f32.mrf.mxu0  ;;  %v5183_v56 = vpop.f32.mrf.mxu1 }
 0x6ce   : > { %v12319_v56 = vlaneseq }
 0x6cf   : > { %v5040_v22 = vpop.f32.mrf.mxu0 }
 0x6d0   : > { %vm6164_vm7 = vcmp.lt.s32.totalorder %v12319_v56, 160 }
 0x6ef   : > { %v5518_v23 = vpop.f32.mrf.mxu1 }
 0x6f1   : > { %v5348_v18 = vpop.f32.mrf.mxu0  ;;  %v5520_v36 = vpop.f32.mrf.mxu1 }
 0x6f2   : > { %v5355_v16 = vadd.f32 %v5348_v18, %v5179_v19  ;;  %v6152_v19 = vsub.s32 %v6149_v51, %v12296_v3 }
 0x6f3   : > { %v5350_v11 = vpop.f32.mrf.mxu0  ;;  %v5522_v35 = vpop.f32.mrf.mxu1 }
 0x6f4   : > { %v5356_v34 = vadd.f32 %v5350_v11, %v5181_v43  ;;  %v5525_v17 = vadd.f32 %v5518_v23, %v5355_v16 }
 0x6f5   : > { %v5352_v28 = vpop.f32.mrf.mxu0  ;;  %v5523_v25 = vpop.f32.mrf.mxu1 }
 0x6f6   : > { %v5526_v26 = vadd.f32 %v5520_v36, %v5356_v34 }
 0x6f7   : > { %v5353_v30 = vpop.f32.mrf.mxu0 }
 0x719   : > { %v5688_v27 = vpop.f32.mrf.mxu0 }
 0x71a   : > { %v5695_v32 = vadd.f32 %v5688_v27, %v5525_v17 }
 0x71b   : > { %v5690_v42 = vpop.f32.mrf.mxu0 }
 0x71c   : > { %v5709_v8 = vadd.f32 %v5702_v38, %v5695_v32  ;;  %v5696_v60 = vadd.f32 %v5690_v42, %v5526_v26 }
 0x71d   : > { %v5692_v59 = vpop.f32.mrf.mxu0 }
 0x71e   : > { %v5710_v63 = vadd.f32 %v5706_v5, %v5696_v60  ;;  %v5711_v45 = vmax.f32 %v5709_v8, 0.0 }
 0x71f   : > { %v5693_v29 = vpop.f32.mrf.mxu0 }
 0x720   : > { %v5712_v46 = vmax.f32 %v5710_v63, 0.0  ;;  %v5713_v61 = vpack.c.bf16 %v5711_v45, %v5711_v45 }
 0x722   : > { %v5714_v37 = vpack.c.bf16 %v5712_v46, %v5712_v46 }
 0x724   : > { %7036 = vmatprep.mubr.msk.bf16.mxu1 %vm5907_vm6, %v5714_v37 }
 0x725   : > { %5944 = vmatmul.mubr.bf16.vlgmr.msra.gmra.mxu1 %v5713_v61 }
 0x7e5   : > { %v5945_v54 = vpop.f32.mrf.mxu1 }
 0x7e6   : > { %v5946_v44 = vadd.f32 %v5945_v54, %v5900_v57 }
 0x7e7   : > { %v5947_v55 = vpop.f32.mrf.mxu1 }
 0x7e8   : > { %v5948_v15 = vadd.f32 %v5947_v55, %v5904_v1  ;;  %v5952_v13 = vmax.f32 %v5946_v44, 0.0 }
 0x7e9   : > { %v5949_v6 = vpop.f32.mrf.mxu1 }
 0x7ea   : > { %v5953_v10 = vmax.f32 %v5948_v15, 0.0  ;;  %v5954_v0 = vpack.c.bf16 %v5952_v13, %v5952_v13 }
 0x7eb   : > { %v5950_v21 = vpop.f32.mrf.mxu1 }
 0x7ec   : > { %v5955_v62 = vpack.c.bf16 %v5953_v10, %v5953_v10 }
 0x7ee   : > { %7060 = vmatprep.mubr.msk.bf16.mxu0 %vm3062_vm4, %v5955_v62 }
 0x7ef   : > { %6136 = vmatmul.mubr.bf16.vlgmr.msra.gmra.mxu0 %v5954_v0 }
 0x8af   : > { %v6137_v52 = vpop.f32.mrf.mxu0 }
 0x8b0   : > { %v6138_v7 = vadd.f32 %v6137_v52, %v6087_v50 }
 0x8b1   : > { %v6139_v53 = vpop.f32.mrf.mxu0 }
 0x8b2   : > { %v6140_v9 = vadd.f32 %v6139_v53, %v6091_v33 }
 0x8b3   : > { %v6141_v14 = vpop.f32.mrf.mxu0 }
 0x8b4   : > { %v6146_v12 = vcombine.low %v6138_v7, %v6140_v9 }
 0x8b5   : > { %v6142_v43 = vpop.f32.mrf.mxu0 }
 0x8b6   : > { %v6153_v58 = vrot.slane %v6146_v12, %v6152_v19 }
 0x8b8   : > { %v6160_v20 = vrot.slane %v6153_v58, %v6152_v19 }
 0x8ba   : > { %6166 = vst.msk [vmem:[%s384_s26] sm:$0x3] %vm6164_vm7, %v6160_v20 }
 0x8bb PF: > { %s21_s17 = sadd.s32 1, %s8272_s17  }
 0x8bc   : > { %p18_p4 = scmp.ge.s32.totalorder %s21_s17, 4  }
 0x8be   :  { %20 = sbr.rel (!%p18_p4) target bundleno = 1 (0x1), region = 106 }

</bundles_post_ra>
